<compile_context>
chip_gen: v6e
topology: v6e:2x2x1
jax: 0.10.0
libtpu: 0.0.40
codegen_flags: <defaults>
</compile_context>

<pallas_src>
import jax
import jax.numpy as jnp
import numpy as np
from jax import lax
from jax.experimental import pallas as pl
from jax.experimental.pallas import tpu as pltpu

LANE = 128


def _round_up(n, m=LANE):
    return ((n + m - 1) // m) * m


def _pad_to(a, shape):
    pads = [(0, t - s) for s, t in zip(a.shape, shape)]
    if all(p == (0, 0) for p in pads):
        return a
    return jnp.pad(a, pads)


def _pick_block_b(B, H, W, Cin_p, Cmid_p, Cout_p, budget_bytes=36 << 20):
    """Images per grid step.

    Constraints: Bt divides B; Bt <= B//2 when B >= 2 (grid >= 2 so v7x's two
    TensorCores both get work); per-step VMEM estimate fits `budget_bytes`.
    Prefers the smallest Bt whose matmul M dim (Bt*H*W) reaches 512.
    """
    def vmem_est(bt):
        m = bt * H * W
        est = 0
        est += 2 * bt * H * W * Cin_p * 4            # x block, double-buffered f32
        est += 2 * bt * H * W * Cout_p * 4           # out block, double-buffered f32
        est += 2 * 2 * bt * Cmid_p * 4               # gate blocks
        est += bt * (H + 2) * (W + 2) * Cmid_p * 2   # padded scratch (bf16)
        est += m * 3 * Cmid_p * 2                    # one kh im2col slab (bf16)
        est += 3 * m * Cmid_p * 4                    # h1 / h2 / conv2 acc (f32)
        est += (Cin_p + 9 * Cmid_p + Cout_p) * Cmid_p * 2  # bf16 weights (1-buf)
        return est

    cap = B // 2 if B >= 2 else 1
    divisors = [d for d in range(1, max(cap, 1) + 1) if B % d == 0]
    fitting = [d for d in divisors if vmem_est(d) <= budget_bytes] or [1]
    for d in fitting:
        if d * H * W >= 512:
            return d
    return fitting[-1]


# ----------------------------------------------------------------------------
# Fused MoE bottleneck kernel (Bt images per grid step, channels padded to a
# multiple of 128; BN scales pre-folded into gates / w3):
#   conv1(1x1)*g1s + b1 -> relu
#   -> conv2(3x3, pad1, 3x accumulated K=3*Cmid_p im2col matmuls)*g2s + b2 -> relu
#   -> conv3(1x1, s3-folded) + b3 -> +identity -> relu
# ----------------------------------------------------------------------------
def _bottleneck_kernel(x_ref, g1_ref, g2_ref,
                       w1_ref, w2_ref, w3_ref,
                       b1_ref, b2_ref, b3_ref,
                       out_ref, pad_ref):
    Bt, H, W, Cin_p = x_ref.shape
    Cmid_p = w1_ref.shape[1]
    Cout_p = w3_ref.shape[1]
    HW = H * W
    M = Bt * HW

    x2d = x_ref[...].reshape(M, Cin_p)                       # f32 (residual path)

    # --- conv1 (1x1 MoE) : bf16 MXU operands, f32 accumulation ---------------
    h1 = jnp.dot(x2d.astype(jnp.bfloat16), w1_ref[...],
                 preferred_element_type=jnp.float32)
    # gate1 * bn1-scale already folded into g1_ref (wrapper)
    h1 = h1.reshape(Bt, HW, Cmid_p) * g1_ref[...] + b1_ref[...]
    h1 = jnp.maximum(h1, 0.0)

    # --- conv2 (3x3 MoE, stride=1, pad=1): bf16 padded scratch + im2col ------
    # Zero only the 1-pixel halo each step (interior fully overwritten); doing
    # it every step keeps it correct when the batch axis runs "parallel".
    zrow = jnp.zeros((Bt, 1, W + 2, Cmid_p), jnp.bfloat16)
    zcol = jnp.zeros((Bt, H, 1, Cmid_p), jnp.bfloat16)
    pad_ref[:, pl.ds(0, 1), :, :] = zrow
    pad_ref[:, pl.ds(H + 1, 1), :, :] = zrow
    pad_ref[:, pl.ds(1, H), pl.ds(0, 1), :] = zcol
    pad_ref[:, pl.ds(1, H), pl.ds(W + 1, 1), :] = zcol
    pad_ref[:, pl.ds(1, H), pl.ds(1, W), :] = (
        h1.reshape(Bt, H, W, Cmid_p).astype(jnp.bfloat16))

    # 3 accumulated matmuls with K = 3*Cmid_p: fills the 256-deep MXU on
    # v6e/v7x while keeping peak im2col VMEM ~3x smaller than a 9*Cmid_p slab.
    acc = jnp.zeros((M, Cmid_p), jnp.float32)
    for kh in range(3):
        slab = jnp.concatenate(
            [pad_ref[:, pl.ds(kh, H), pl.ds(kw, W), :] for kw in range(3)],
            axis=-1).reshape(M, 3 * Cmid_p)                  # bf16
        acc = acc + jnp.dot(slab, w2_ref[kh],
                            preferred_element_type=jnp.float32)
    h2 = acc.reshape(Bt, HW, Cmid_p) * g2_ref[...] + b2_ref[...]
    h2 = jnp.maximum(h2, 0.0).reshape(M, Cmid_p)

    # --- conv3 (1x1, bn3 scale folded into w3) + bias + residual + relu ------
    h3 = jnp.dot(h2.astype(jnp.bfloat16), w3_ref[...],
                 preferred_element_type=jnp.float32)
    h3 = h3 + b3_ref[...]
    out = jnp.maximum(h3 + x2d, 0.0)         # identity add: Cin_p == Cout_p
    out_ref[...] = out.reshape(Bt, H, W, Cout_p).astype(out_ref.dtype)


def moe_bottleneck_pallas(x_p, g1_p, g2_p, w1_p, w2_p, w3_p, b1, b2, b3):
    B, H, W, Cin_p = x_p.shape
    Cmid_p = w1_p.shape[1]
    Cout_p = w3_p.shape[1]
    assert Cin_p == Cout_p, "identity add requires Cin == out_channels*expansion"
    Bt = _pick_block_b(B, H, W, Cin_p, Cmid_p, Cout_p)

    def call(single_buffer_consts):
        def const_spec(shape):
            idx = lambda i, _n=len(shape): (0,) * _n
            if single_buffer_consts:
                # grid-invariant operand: one VMEM buffer is enough
                return pl.BlockSpec(shape, idx, pipeline_mode=pl.Buffered(1))
            return pl.BlockSpec(shape, idx)

        in_specs = [
            pl.BlockSpec((Bt, H, W, Cin_p), lambda i: (i, 0, 0, 0)),  # x
            pl.BlockSpec((Bt, 1, Cmid_p), lambda i: (i, 0, 0)),       # g1*s1 rows
            pl.BlockSpec((Bt, 1, Cmid_p), lambda i: (i, 0, 0)),       # g2*s2 rows
            const_spec((Cin_p, Cmid_p)),                              # w1 (bf16)
            const_spec((3, 3 * Cmid_p, Cmid_p)),                      # w2 im2col (bf16)
            const_spec((Cmid_p, Cout_p)),                             # w3*s3 (bf16)
            const_spec((1, Cmid_p)),                                  # bn1 bias
            const_spec((1, Cmid_p)),                                  # bn2 bias
            const_spec((1, Cout_p)),                                  # bn3 bias
        ]
        out_specs = pl.BlockSpec((Bt, H, W, Cout_p), lambda i: (i, 0, 0, 0))
        return pl.pallas_call(
            _bottleneck_kernel,
            grid=(B // Bt,),
            in_specs=in_specs,
            out_specs=out_specs,
            out_shape=jax.ShapeDtypeStruct((B, H, W, Cout_p), jnp.float32),
            scratch_shapes=[pltpu.VMEM((Bt, H + 2, W + 2, Cmid_p), jnp.bfloat16)],
            compiler_params=pltpu.CompilerParams(
                dimension_semantics=("parallel",),       # v7x: batch over both TCs
                vmem_limit_bytes=48 * 1024 * 1024),
        )(x_p, g1_p, g2_p, w1_p, w2_p, w3_p, b1, b2, b3)

    try:
        return call(True)
    except Exception:
        # Fallback for jax versions without BlockSpec(pipeline_mode=...):
        # identical numerics, just default double-buffered constants.
        return call(False)


# ----------------------------------------------------------------------------
# Module wrapper (PyTorch-facing NCHW interface).
# ----------------------------------------------------------------------------
def moe_bottleneck_a(x_nchw, embeddings, params):
    x = jnp.transpose(x_nchw, (0, 2, 3, 1)).astype(jnp.float32)
    B, H, W, Cin = x.shape
    Cmid = params["w1"].shape[1]
    Cout = params["w3"].shape[1]
    assert Cin == Cout, "identity path requires Cin == out_channels*expansion"

    # Gating networks: micro-matmuls -> plain JAX.
    g1 = jax.nn.softmax(embeddings @ params["wg1"], axis=-1)   # (B, Cmid)
    g2 = jax.nn.softmax(embeddings @ params["wg2"], axis=-1)   # (B, Cmid)

    # Lane-dense zero padding of all channel dims to multiples of 128.
    Cin_p, Cmid_p, Cout_p = _round_up(Cin), _round_up(Cmid), _round_up(Cout)
    x_p = _pad_to(x, (B, H, W, Cin_p))

    # Fold BN scales: s1/s2 into the per-batch gates, s3 into w3's columns.
    g1s = (g1.astype(jnp.float32) * params["s1"]).reshape(B, 1, Cmid)
    g2s = (g2.astype(jnp.float32) * params["s2"]).reshape(B, 1, Cmid)
    g1_p = _pad_to(g1s, (B, 1, Cmid_p))
    g2_p = _pad_to(g2s, (B, 1, Cmid_p))

    # Weights stored bf16 (MXU-native); zero padding keeps padded lanes exact 0.
    w1_p = _pad_to(params["w1"], (Cin_p, Cmid_p)).astype(jnp.bfloat16)
    w2_p = (_pad_to(params["w2"], (3, 3, Cmid_p, Cmid_p))
            .reshape(3, 3 * Cmid_p, Cmid_p).astype(jnp.bfloat16))
    w3_fold = params["w3"] * params["s3"]                     # fold s3 (f32 first)
    w3_p = _pad_to(w3_fold, (Cmid_p, Cout_p)).astype(jnp.bfloat16)

    b1 = _pad_to(params["b1"], (1, Cmid_p))
    b2 = _pad_to(params["b2"], (1, Cmid_p))
    b3 = _pad_to(params["b3"], (1, Cout_p))

    out_p = moe_bottleneck_pallas(x_p, g1_p, g2_p, w1_p, w2_p, w3_p, b1, b2, b3)
    out = jnp.transpose(out_p[..., :Cout], (0, 3, 1, 2))
    return out, [g1, g2]


# ----------------------------------------------------------------------------
# Pure-JAX f32 reference (same BN fold semantics / same assumed MoE semantics)
# ----------------------------------------------------------------------------
def moe_bottleneck_a_ref(x_nchw, embeddings, params):
    x = jnp.transpose(x_nchw, (0, 2, 3, 1))
    g1 = jax.nn.softmax(embeddings @ params["wg1"], axis=-1)
    g2 = jax.nn.softmax(embeddings @ params["wg2"], axis=-1)
    h = jnp.einsum("bhwc,cd->bhwd", x, params["w1"]) * g1[:, None, None, :]
    h = h * params["s1"][0] + params["b1"][0]
    h = jax.nn.relu(h)
    h = lax.conv_general_dilated(
        h, params["w2"], window_strides=(1, 1), padding="SAME",
        dimension_numbers=("NHWC", "HWIO", "NHWC"))
    h = h * g2[:, None, None, :]
    h = h * params["s2"][0] + params["b2"][0]
    h = jax.nn.relu(h)
    h = jnp.einsum("bhwc,cd->bhwd", h, params["w3"])
    h = h * params["s3"][0] + params["b3"][0]
    out = jax.nn.relu(h + x)
    return jnp.transpose(out, (0, 3, 1, 2)), [g1, g2]


def _fold_bn(key, c, eps=1e-5):
    k1, k2, k3, k4 = jax.random.split(key, 4)
    gamma = 1.0 + 0.1 * jax.random.normal(k1, (c,), jnp.float32)
    beta = 0.1 * jax.random.normal(k2, (c,), jnp.float32)
    mean = 0.1 * jax.random.normal(k3, (c,), jnp.float32)
    var = 0.5 + jax.random.uniform(k4, (c,), jnp.float32)
    scale = gamma / jnp.sqrt(var + eps)
    bias = beta - mean * scale
    return scale.reshape(1, c), bias.reshape(1, c)


if __name__ == "__main__":
    # Small shapes consistent with the module:
    # out_channels=8, expansion=4 -> in_channels=32 (identity add works with
    # downsample=None, stride=1); base_width=64, groups=1 -> mid=8.
    B, H, W = 2, 8, 8
    out_channels, expansion = 8, 4
    in_channels = out_channels * expansion      # 32
    mid_channels = out_channels                 # 8
    emb_dim = 16

    key = jax.random.PRNGKey(0)
    ks = jax.random.split(key, 12)

    x = 0.5 * jax.random.normal(ks[0], (B, in_channels, H, W), jnp.float32)
    emb = jax.random.normal(ks[1], (B, emb_dim), jnp.float32)

    params = {}
    params["wg1"] = 0.2 * jax.random.normal(ks[2], (emb_dim, mid_channels), jnp.float32)
    params["wg2"] = 0.2 * jax.random.normal(ks[3], (emb_dim, out_channels), jnp.float32)
    params["w1"] = 0.2 * jax.random.normal(ks[4], (in_channels, mid_channels), jnp.float32)
    params["w2"] = 0.2 * jax.random.normal(ks[5], (3, 3, mid_channels, mid_channels), jnp.float32)
    params["w3"] = 0.2 * jax.random.normal(ks[6], (mid_channels, out_channels * expansion), jnp.float32)
    params["s1"], params["b1"] = _fold_bn(ks[7], mid_channels)
    params["s2"], params["b2"] = _fold_bn(ks[8], mid_channels)
    params["s3"], params["b3"] = _fold_bn(ks[9], out_channels * expansion)

    out, gates = moe_bottleneck_a(x, emb, params)
    out = jax.block_until_ready(out)
    gates = [jax.block_until_ready(g) for g in gates]

    ref_out, ref_gates = moe_bottleneck_a_ref(x, emb, params)
    # bf16 MXU operands (f32 accumulation) -> slightly looser tolerance.
    np.testing.assert_allclose(np.asarray(out), np.asarray(ref_out),
                               rtol=2e-2, atol=2e-2)
    np.testing.assert_allclose(np.asarray(gates[0]), np.asarray(ref_gates[0]),
                               rtol=1e-5, atol=1e-5)
    np.testing.assert_allclose(np.asarray(gates[1]), np.asarray(ref_gates[1]),
                               rtol=1e-5, atol=1e-5)

    print("KERNEL_OK")
</pallas_src>

<mosaic_0001>
module attributes {stable_mosaic.version = 11 : i64} {
  func.func @_bottleneck_kernel(%arg0: i32, %arg1: memref<1x8x8x128xf32, #tpu.memory_space<vmem>>, %arg2: memref<1x1x128xf32, #tpu.memory_space<vmem>>, %arg3: memref<1x1x128xf32, #tpu.memory_space<vmem>>, %arg4: memref<128x128xbf16, #tpu.memory_space<vmem>>, %arg5: memref<3x384x128xbf16, #tpu.memory_space<vmem>>, %arg6: memref<128x128xbf16, #tpu.memory_space<vmem>>, %arg7: memref<1x128xf32, #tpu.memory_space<vmem>>, %arg8: memref<1x128xf32, #tpu.memory_space<vmem>>, %arg9: memref<1x128xf32, #tpu.memory_space<vmem>>, %arg10: memref<1x8x8x128xf32, #tpu.memory_space<vmem>>, %arg11: memref<1x10x10x128xbf16, #tpu.memory_space<vmem>>) attributes {dimension_semantics = [#tpu.dimension_semantics<parallel>], iteration_bounds = array<i64: 2>, scalar_prefetch = 0 : i64, scratch_operands = 1 : i64, tpu.core_type = #tpu.core_type<tc>, window_params = [{transform_indices = @transform_0, window_bounds = array<i64: 1, 8, 8, 128>}, {transform_indices = @transform_1, window_bounds = array<i64: 1, 1, 128>}, {transform_indices = @transform_2, window_bounds = array<i64: 1, 1, 128>}, {pipeline_mode = #tpu.pipeline_mode<synchronous>, transform_indices = @transform_3, window_bounds = array<i64: 128, 128>}, {pipeline_mode = #tpu.pipeline_mode<synchronous>, transform_indices = @transform_4, window_bounds = array<i64: 3, 384, 128>}, {pipeline_mode = #tpu.pipeline_mode<synchronous>, transform_indices = @transform_5, window_bounds = array<i64: 128, 128>}, {pipeline_mode = #tpu.pipeline_mode<synchronous>, transform_indices = @transform_6, window_bounds = array<i64: 1, 128>}, {pipeline_mode = #tpu.pipeline_mode<synchronous>, transform_indices = @transform_7, window_bounds = array<i64: 1, 128>}, {pipeline_mode = #tpu.pipeline_mode<synchronous>, transform_indices = @transform_8, window_bounds = array<i64: 1, 128>}, {transform_indices = @transform_9, window_bounds = array<i64: 1, 8, 8, 128>}]} {
    %c0 = arith.constant 0 : index
    %c0_0 = arith.constant 0 : index
    %c0_1 = arith.constant 0 : index
    %c0_2 = arith.constant 0 : index
    %0 = vector.load %arg1[%c0, %c0_0, %c0_1, %c0_2] : memref<1x8x8x128xf32, #tpu.memory_space<vmem>>, vector<1x8x8x128xf32>
    %1 = vector.shape_cast %0 : vector<1x8x8x128xf32> to vector<64x128xf32>
    %2 = arith.truncf %1 : vector<64x128xf32> to vector<64x128xbf16>
    %c0_3 = arith.constant 0 : index
    %c0_4 = arith.constant 0 : index
    %3 = vector.load %arg4[%c0_3, %c0_4] : memref<128x128xbf16, #tpu.memory_space<vmem>>, vector<128x128xbf16>
    %cst = arith.constant dense<0.000000e+00> : vector<64x128xf32>
    %4 = tpu.matmul %2, %3, %cst {dimension_numbers = #tpu.dot_dimension_numbers<[1], [0], [0], [1], [0, 0, 1, 1], [], []>} : vector<64x128xbf16>, vector<128x128xbf16>, vector<64x128xf32> -> vector<64x128xf32>
    %5 = vector.shape_cast %4 : vector<64x128xf32> to vector<1x64x128xf32>
    %c0_5 = arith.constant 0 : index
    %c0_6 = arith.constant 0 : index
    %c0_7 = arith.constant 0 : index
    %6 = vector.load %arg2[%c0_5, %c0_6, %c0_7] : memref<1x1x128xf32, #tpu.memory_space<vmem>>, vector<1x1x128xf32>
    %7 = vector.broadcast %6 : vector<1x1x128xf32> to vector<1x64x128xf32>
    %8 = arith.mulf %5, %7 : vector<1x64x128xf32>
    %c0_8 = arith.constant 0 : index
    %c0_9 = arith.constant 0 : index
    %9 = vector.load %arg7[%c0_8, %c0_9] : memref<1x128xf32, #tpu.memory_space<vmem>>, vector<1x128xf32>
    %10 = vector.shape_cast %9 : vector<1x128xf32> to vector<1x1x128xf32>
    %11 = vector.broadcast %10 : vector<1x1x128xf32> to vector<1x64x128xf32>
    %12 = arith.addf %8, %11 : vector<1x64x128xf32>
    %cst_10 = arith.constant 0.000000e+00 : f32
    %13 = vector.broadcast %cst_10 : f32 to vector<1x64x128xf32>
    %14 = arith.maximumf %12, %13 : vector<1x64x128xf32>
    %cst_11 = arith.constant 0.000000e+00 : bf16
    %15 = vector.broadcast %cst_11 : bf16 to vector<1x1x10x128xbf16>
    %cst_12 = arith.constant 0.000000e+00 : bf16
    %16 = vector.broadcast %cst_12 : bf16 to vector<1x8x1x128xbf16>
    %c0_13 = arith.constant 0 : index
    %c0_14 = arith.constant 0 : index
    %c0_15 = arith.constant 0 : index
    %c0_16 = arith.constant 0 : index
    %17 = vector.load %arg11[%c0_13, %c0_14, %c0_15, %c0_16] : memref<1x10x10x128xbf16, #tpu.memory_space<vmem>>, vector<1x1x10x128xbf16>
    tpu.vector_store %arg11[%c0_13, %c0_14, %c0_15, %c0_16], %15 {strides = array<i32>} : memref<1x10x10x128xbf16, #tpu.memory_space<vmem>>, vector<1x1x10x128xbf16>,
    %c0_17 = arith.constant 0 : index
    %c9 = arith.constant 9 : index
    %c0_18 = arith.constant 0 : index
    %c0_19 = arith.constant 0 : index
    %18 = vector.load %arg11[%c0_17, %c9, %c0_18, %c0_19] : memref<1x10x10x128xbf16, #tpu.memory_space<vmem>>, vector<1x1x10x128xbf16>
    tpu.vector_store %arg11[%c0_17, %c9, %c0_18, %c0_19], %15 {strides = array<i32>} : memref<1x10x10x128xbf16, #tpu.memory_space<vmem>>, vector<1x1x10x128xbf16>,
    %c0_20 = arith.constant 0 : index
    %c1 = arith.constant 1 : index
    %c0_21 = arith.constant 0 : index
    %c0_22 = arith.constant 0 : index
    %19 = vector.load %arg11[%c0_20, %c1, %c0_21, %c0_22] : memref<1x10x10x128xbf16, #tpu.memory_space<vmem>>, vector<1x8x1x128xbf16>
    tpu.vector_store %arg11[%c0_20, %c1, %c0_21, %c0_22], %16 {strides = array<i32>} : memref<1x10x10x128xbf16, #tpu.memory_space<vmem>>, vector<1x8x1x128xbf16>,
    %c0_23 = arith.constant 0 : index
    %c1_24 = arith.constant 1 : index
    %c9_25 = arith.constant 9 : index
    %c0_26 = arith.constant 0 : index
    %20 = vector.load %arg11[%c0_23, %c1_24, %c9_25, %c0_26] : memref<1x10x10x128xbf16, #tpu.memory_space<vmem>>, vector<1x8x1x128xbf16>
    tpu.vector_store %arg11[%c0_23, %c1_24, %c9_25, %c0_26], %16 {strides = array<i32>} : memref<1x10x10x128xbf16, #tpu.memory_space<vmem>>, vector<1x8x1x128xbf16>,
    %21 = vector.shape_cast %14 : vector<1x64x128xf32> to vector<1x8x8x128xf32>
    %22 = arith.truncf %21 : vector<1x8x8x128xf32> to vector<1x8x8x128xbf16>
    %c0_27 = arith.constant 0 : index
    %c1_28 = arith.constant 1 : index
    %c1_29 = arith.constant 1 : index
    %c0_30 = arith.constant 0 : index
    %23 = vector.load %arg11[%c0_27, %c1_28, %c1_29, %c0_30] : memref<1x10x10x128xbf16, #tpu.memory_space<vmem>>, vector<1x8x8x128xbf16>
    tpu.vector_store %arg11[%c0_27, %c1_28, %c1_29, %c0_30], %22 {strides = array<i32>} : memref<1x10x10x128xbf16, #tpu.memory_space<vmem>>, vector<1x8x8x128xbf16>,
    %cst_31 = arith.constant 0.000000e+00 : f32
    %24 = vector.broadcast %cst_31 : f32 to vector<64x128xf32>
    %c0_32 = arith.constant 0 : index
    %c0_33 = arith.constant 0 : index
    %c0_34 = arith.constant 0 : index
    %c0_35 = arith.constant 0 : index
    %25 = vector.load %arg11[%c0_32, %c0_33, %c0_34, %c0_35] : memref<1x10x10x128xbf16, #tpu.memory_space<vmem>>, vector<1x8x8x128xbf16>
    %c0_36 = arith.constant 0 : index
    %c0_37 = arith.constant 0 : index
    %c1_38 = arith.constant 1 : index
    %c0_39 = arith.constant 0 : index
    %26 = vector.load %arg11[%c0_36, %c0_37, %c1_38, %c0_39] : memref<1x10x10x128xbf16, #tpu.memory_space<vmem>>, vector<1x8x8x128xbf16>
    %c0_40 = arith.constant 0 : index
    %c0_41 = arith.constant 0 : index
    %c2 = arith.constant 2 : index
    %c0_42 = arith.constant 0 : index
    %27 = vector.load %arg11[%c0_40, %c0_41, %c2, %c0_42] : memref<1x10x10x128xbf16, #tpu.memory_space<vmem>>, vector<1x8x8x128xbf16>
    %28 = tpu.concatenate %25, %26, %27 in 3 : vector<1x8x8x128xbf16>, vector<1x8x8x128xbf16>, vector<1x8x8x128xbf16> -> vector<1x8x8x384xbf16>
    %29 = vector.shape_cast %28 : vector<1x8x8x384xbf16> to vector<64x384xbf16>
    %c0_43 = arith.constant 0 : index
    %c0_44 = arith.constant 0 : index
    %c0_45 = arith.constant 0 : index
    %30 = vector.load %arg5[%c0_43, %c0_44, %c0_45] : memref<3x384x128xbf16, #tpu.memory_space<vmem>>, vector<1x384x128xbf16>
    %31 = vector.shape_cast %30 : vector<1x384x128xbf16> to vector<384x128xbf16>
    %cst_46 = arith.constant dense<0.000000e+00> : vector<64x128xf32>
    %32 = tpu.matmul %29, %31, %cst_46 {dimension_numbers = #tpu.dot_dimension_numbers<[1], [0], [0], [1], [0, 0, 1, 1], [], []>} : vector<64x384xbf16>, vector<384x128xbf16>, vector<64x128xf32> -> vector<64x128xf32>
    %33 = arith.addf %24, %32 : vector<64x128xf32>
    %c0_47 = arith.constant 0 : index
    %c1_48 = arith.constant 1 : index
    %c0_49 = arith.constant 0 : index
    %c0_50 = arith.constant 0 : index
    %34 = vector.load %arg11[%c0_47, %c1_48, %c0_49, %c0_50] : memref<1x10x10x128xbf16, #tpu.memory_space<vmem>>, vector<1x8x8x128xbf16>
    %c0_51 = arith.constant 0 : index
    %c1_52 = arith.constant 1 : index
    %c1_53 = arith.constant 1 : index
    %c0_54 = arith.constant 0 : index
    %35 = vector.load %arg11[%c0_51, %c1_52, %c1_53, %c0_54] : memref<1x10x10x128xbf16, #tpu.memory_space<vmem>>, vector<1x8x8x128xbf16>
    %c0_55 = arith.constant 0 : index
    %c1_56 = arith.constant 1 : index
    %c2_57 = arith.constant 2 : index
    %c0_58 = arith.constant 0 : index
    %36 = vector.load %arg11[%c0_55, %c1_56, %c2_57, %c0_58] : memref<1x10x10x128xbf16, #tpu.memory_space<vmem>>, vector<1x8x8x128xbf16>
    %37 = tpu.concatenate %34, %35, %36 in 3 : vector<1x8x8x128xbf16>, vector<1x8x8x128xbf16>, vector<1x8x8x128xbf16> -> vector<1x8x8x384xbf16>
    %38 = vector.shape_cast %37 : vector<1x8x8x384xbf16> to vector<64x384xbf16>
    %c1_59 = arith.constant 1 : index
    %c0_60 = arith.constant 0 : index
    %c0_61 = arith.constant 0 : index
    %39 = vector.load %arg5[%c1_59, %c0_60, %c0_61] : memref<3x384x128xbf16, #tpu.memory_space<vmem>>, vector<1x384x128xbf16>
    %40 = vector.shape_cast %39 : vector<1x384x128xbf16> to vector<384x128xbf16>
    %cst_62 = arith.constant dense<0.000000e+00> : vector<64x128xf32>
    %41 = tpu.matmul %38, %40, %cst_62 {dimension_numbers = #tpu.dot_dimension_numbers<[1], [0], [0], [1], [0, 0, 1, 1], [], []>} : vector<64x384xbf16>, vector<384x128xbf16>, vector<64x128xf32> -> vector<64x128xf32>
    %42 = arith.addf %33, %41 : vector<64x128xf32>
    %c0_63 = arith.constant 0 : index
    %c2_64 = arith.constant 2 : index
    %c0_65 = arith.constant 0 : index
    %c0_66 = arith.constant 0 : index
    %43 = vector.load %arg11[%c0_63, %c2_64, %c0_65, %c0_66] : memref<1x10x10x128xbf16, #tpu.memory_space<vmem>>, vector<1x8x8x128xbf16>
    %c0_67 = arith.constant 0 : index
    %c2_68 = arith.constant 2 : index
    %c1_69 = arith.constant 1 : index
    %c0_70 = arith.constant 0 : index
    %44 = vector.load %arg11[%c0_67, %c2_68, %c1_69, %c0_70] : memref<1x10x10x128xbf16, #tpu.memory_space<vmem>>, vector<1x8x8x128xbf16>
    %c0_71 = arith.constant 0 : index
    %c2_72 = arith.constant 2 : index
    %c2_73 = arith.constant 2 : index
    %c0_74 = arith.constant 0 : index
    %45 = vector.load %arg11[%c0_71, %c2_72, %c2_73, %c0_74] : memref<1x10x10x128xbf16, #tpu.memory_space<vmem>>, vector<1x8x8x128xbf16>
    %46 = tpu.concatenate %43, %44, %45 in 3 : vector<1x8x8x128xbf16>, vector<1x8x8x128xbf16>, vector<1x8x8x128xbf16> -> vector<1x8x8x384xbf16>
    %47 = vector.shape_cast %46 : vector<1x8x8x384xbf16> to vector<64x384xbf16>
    %c2_75 = arith.constant 2 : index
    %c0_76 = arith.constant 0 : index
    %c0_77 = arith.constant 0 : index
    %48 = vector.load %arg5[%c2_75, %c0_76, %c0_77] : memref<3x384x128xbf16, #tpu.memory_space<vmem>>, vector<1x384x128xbf16>
    %49 = vector.shape_cast %48 : vector<1x384x128xbf16> to vector<384x128xbf16>
    %cst_78 = arith.constant dense<0.000000e+00> : vector<64x128xf32>
    %50 = tpu.matmul %47, %49, %cst_78 {dimension_numbers = #tpu.dot_dimension_numbers<[1], [0], [0], [1], [0, 0, 1, 1], [], []>} : vector<64x384xbf16>, vector<384x128xbf16>, vector<64x128xf32> -> vector<64x128xf32>
    %51 = arith.addf %42, %50 : vector<64x128xf32>
    %52 = vector.shape_cast %51 : vector<64x128xf32> to vector<1x64x128xf32>
    %c0_79 = arith.constant 0 : index
    %c0_80 = arith.constant 0 : index
    %c0_81 = arith.constant 0 : index
    %53 = vector.load %arg3[%c0_79, %c0_80, %c0_81] : memref<1x1x128xf32, #tpu.memory_space<vmem>>, vector<1x1x128xf32>
    %54 = vector.broadcast %53 : vector<1x1x128xf32> to vector<1x64x128xf32>
    %55 = arith.mulf %52, %54 : vector<1x64x128xf32>
    %c0_82 = arith.constant 0 : index
    %c0_83 = arith.constant 0 : index
    %56 = vector.load %arg8[%c0_82, %c0_83] : memref<1x128xf32, #tpu.memory_space<vmem>>, vector<1x128xf32>
    %57 = vector.shape_cast %56 : vector<1x128xf32> to vector<1x1x128xf32>
    %58 = vector.broadcast %57 : vector<1x1x128xf32> to vector<1x64x128xf32>
    %59 = arith.addf %55, %58 : vector<1x64x128xf32>
    %cst_84 = arith.constant 0.000000e+00 : f32
    %60 = vector.broadcast %cst_84 : f32 to vector<1x64x128xf32>
    %61 = arith.maximumf %59, %60 : vector<1x64x128xf32>
    %62 = vector.shape_cast %61 : vector<1x64x128xf32> to vector<64x128xf32>
    %63 = arith.truncf %62 : vector<64x128xf32> to vector<64x128xbf16>
    %c0_85 = arith.constant 0 : index
    %c0_86 = arith.constant 0 : index
    %64 = vector.load %arg6[%c0_85, %c0_86] : memref<128x128xbf16, #tpu.memory_space<vmem>>, vector<128x128xbf16>
    %cst_87 = arith.constant dense<0.000000e+00> : vector<64x128xf32>
    %65 = tpu.matmul %63, %64, %cst_87 {dimension_numbers = #tpu.dot_dimension_numbers<[1], [0], [0], [1], [0, 0, 1, 1], [], []>} : vector<64x128xbf16>, vector<128x128xbf16>, vector<64x128xf32> -> vector<64x128xf32>
    %c0_88 = arith.constant 0 : index
    %c0_89 = arith.constant 0 : index
    %66 = vector.load %arg9[%c0_88, %c0_89] : memref<1x128xf32, #tpu.memory_space<vmem>>, vector<1x128xf32>
    %67 = vector.broadcast %66 : vector<1x128xf32> to vector<64x128xf32>
    %68 = arith.addf %65, %67 : vector<64x128xf32>
    %69 = arith.addf %68, %1 : vector<64x128xf32>
    %cst_90 = arith.constant 0.000000e+00 : f32
    %70 = vector.broadcast %cst_90 : f32 to vector<64x128xf32>
    %71 = arith.maximumf %69, %70 : vector<64x128xf32>
    %72 = vector.shape_cast %71 : vector<64x128xf32> to vector<1x8x8x128xf32>
    %c0_91 = arith.constant 0 : index
    %c0_92 = arith.constant 0 : index
    %c0_93 = arith.constant 0 : index
    %c0_94 = arith.constant 0 : index
    %73 = vector.load %arg10[%c0_91, %c0_92, %c0_93, %c0_94] : memref<1x8x8x128xf32, #tpu.memory_space<vmem>>, vector<1x8x8x128xf32>
    tpu.vector_store %arg10[%c0_91, %c0_92, %c0_93, %c0_94], %72 {strides = array<i32>} : memref<1x8x8x128xf32, #tpu.memory_space<vmem>>, vector<1x8x8x128xf32>,
    return
  }
  func.func @transform_0(%arg0: i32) -> (i32, i32, i32, i32) {
    %c0_i32 = arith.constant 0 : i32
    %c0_i32_0 = arith.constant 0 : i32
    %c0_i32_1 = arith.constant 0 : i32
    %c0_i32_2 = arith.constant 0 : i32
    return %arg0, %c0_i32, %c0_i32_0, %c0_i32_1 : i32, i32, i32, i32
  }
  func.func @transform_1(%arg0: i32) -> (i32, i32, i32) {
    %c0_i32 = arith.constant 0 : i32
    %c0_i32_0 = arith.constant 0 : i32
    %c0_i32_1 = arith.constant 0 : i32
    return %arg0, %c0_i32, %c0_i32_0 : i32, i32, i32
  }
  func.func @transform_2(%arg0: i32) -> (i32, i32, i32) {
    %c0_i32 = arith.constant 0 : i32
    %c0_i32_0 = arith.constant 0 : i32
    %c0_i32_1 = arith.constant 0 : i32
    return %arg0, %c0_i32, %c0_i32_0 : i32, i32, i32
  }
  func.func @transform_3(%arg0: i32) -> (i32, i32) {
    %c0_i32 = arith.constant 0 : i32
    %c0_i32_0 = arith.constant 0 : i32
    %c0_i32_1 = arith.constant 0 : i32
    return %c0_i32, %c0_i32_0 : i32, i32
  }
  func.func @transform_4(%arg0: i32) -> (i32, i32, i32) {
    %c0_i32 = arith.constant 0 : i32
    %c0_i32_0 = arith.constant 0 : i32
    %c0_i32_1 = arith.constant 0 : i32
    %c0_i32_2 = arith.constant 0 : i32
    return %c0_i32, %c0_i32_0, %c0_i32_1 : i32, i32, i32
  }
  func.func @transform_5(%arg0: i32) -> (i32, i32) {
    %c0_i32 = arith.constant 0 : i32
    %c0_i32_0 = arith.constant 0 : i32
    %c0_i32_1 = arith.constant 0 : i32
    return %c0_i32, %c0_i32_0 : i32, i32
  }
  func.func @transform_6(%arg0: i32) -> (i32, i32) {
    %c0_i32 = arith.constant 0 : i32
    %c0_i32_0 = arith.constant 0 : i32
    %c0_i32_1 = arith.constant 0 : i32
    return %c0_i32, %c0_i32_0 : i32, i32
  }
  func.func @transform_7(%arg0: i32) -> (i32, i32) {
    %c0_i32 = arith.constant 0 : i32
    %c0_i32_0 = arith.constant 0 : i32
    %c0_i32_1 = arith.constant 0 : i32
    return %c0_i32, %c0_i32_0 : i32, i32
  }
  func.func @transform_8(%arg0: i32) -> (i32, i32) {
    %c0_i32 = arith.constant 0 : i32
    %c0_i32_0 = arith.constant 0 : i32
    %c0_i32_1 = arith.constant 0 : i32
    return %c0_i32, %c0_i32_0 : i32, i32
  }
  func.func @transform_9(%arg0: i32) -> (i32, i32, i32, i32) {
    %c0_i32 = arith.constant 0 : i32
    %c0_i32_0 = arith.constant 0 : i32
    %c0_i32_1 = arith.constant 0 : i32
    %c0_i32_2 = arith.constant 0 : i32
    return %arg0, %c0_i32, %c0_i32_0, %c0_i32_1 : i32, i32, i32, i32
  }
}

module attributes {stable_mosaic.version = 11 : i64} {
  func.func @_bottleneck_kernel(%arg0: i32, %arg1: memref<1x8x8x128xf32, #tpu.memory_space<vmem>>, %arg2: memref<1x1x128xf32, #tpu.memory_space<vmem>>, %arg3: memref<1x1x128xf32, #tpu.memory_space<vmem>>, %arg4: memref<128x128xbf16, #tpu.memory_space<vmem>>, %arg5: memref<3x384x128xbf16, #tpu.memory_space<vmem>>, %arg6: memref<128x128xbf16, #tpu.memory_space<vmem>>, %arg7: memref<1x128xf32, #tpu.memory_space<vmem>>, %arg8: memref<1x128xf32, #tpu.memory_space<vmem>>, %arg9: memref<1x128xf32, #tpu.memory_space<vmem>>, %arg10: memref<1x8x8x128xf32, #tpu.memory_space<vmem>>, %arg11: memref<1x10x10x128xbf16, #tpu.memory_space<vmem>>) attributes {dimension_semantics = [#tpu.dimension_semantics<parallel>], iteration_bounds = array<i64: 2>, scalar_prefetch = 0 : i64, scratch_operands = 1 : i64, tpu.core_type = #tpu.core_type<tc>, window_params = [{transform_indices = @transform_0, window_bounds = array<i64: 1, 8, 8, 128>}, {transform_indices = @transform_1, window_bounds = array<i64: 1, 1, 128>}, {transform_indices = @transform_2, window_bounds = array<i64: 1, 1, 128>}, {pipeline_mode = #tpu.pipeline_mode<synchronous>, transform_indices = @transform_3, window_bounds = array<i64: 128, 128>}, {pipeline_mode = #tpu.pipeline_mode<synchronous>, transform_indices = @transform_4, window_bounds = array<i64: 3, 384, 128>}, {pipeline_mode = #tpu.pipeline_mode<synchronous>, transform_indices = @transform_5, window_bounds = array<i64: 128, 128>}, {pipeline_mode = #tpu.pipeline_mode<synchronous>, transform_indices = @transform_6, window_bounds = array<i64: 1, 128>}, {pipeline_mode = #tpu.pipeline_mode<synchronous>, transform_indices = @transform_7, window_bounds = array<i64: 1, 128>}, {pipeline_mode = #tpu.pipeline_mode<synchronous>, transform_indices = @transform_8, window_bounds = array<i64: 1, 128>}, {transform_indices = @transform_9, window_bounds = array<i64: 1, 8, 8, 128>}]} {
    %c0 = arith.constant 0 : index
    %c0_0 = arith.constant 0 : index
    %c0_1 = arith.constant 0 : index
    %c0_2 = arith.constant 0 : index
    %0 = vector.load %arg1[%c0, %c0_0, %c0_1, %c0_2] : memref<1x8x8x128xf32, #tpu.memory_space<vmem>>, vector<1x8x8x128xf32>
    %1 = vector.shape_cast %0 : vector<1x8x8x128xf32> to vector<64x128xf32>
    %2 = arith.truncf %1 : vector<64x128xf32> to vector<64x128xbf16>
    %c0_3 = arith.constant 0 : index
    %c0_4 = arith.constant 0 : index
    %3 = vector.load %arg4[%c0_3, %c0_4] : memref<128x128xbf16, #tpu.memory_space<vmem>>, vector<128x128xbf16>
    %cst = arith.constant dense<0.000000e+00> : vector<64x128xf32>
    %4 = tpu.matmul %2, %3, %cst {dimension_numbers = #tpu.dot_dimension_numbers<[1], [0], [0], [1], [0, 0, 1, 1], [], []>} : vector<64x128xbf16>, vector<128x128xbf16>, vector<64x128xf32> -> vector<64x128xf32>
    %5 = vector.shape_cast %4 : vector<64x128xf32> to vector<1x64x128xf32>
    %c0_5 = arith.constant 0 : index
    %c0_6 = arith.constant 0 : index
    %c0_7 = arith.constant 0 : index
    %6 = vector.load %arg2[%c0_5, %c0_6, %c0_7] : memref<1x1x128xf32, #tpu.memory_space<vmem>>, vector<1x1x128xf32>
    %7 = vector.broadcast %6 : vector<1x1x128xf32> to vector<1x64x128xf32>
    %8 = arith.mulf %5, %7 : vector<1x64x128xf32>
    %c0_8 = arith.constant 0 : index
    %c0_9 = arith.constant 0 : index
    %9 = vector.load %arg7[%c0_8, %c0_9] : memref<1x128xf32, #tpu.memory_space<vmem>>, vector<1x128xf32>
    %10 = vector.shape_cast %9 : vector<1x128xf32> to vector<1x1x128xf32>
    %11 = vector.broadcast %10 : vector<1x1x128xf32> to vector<1x64x128xf32>
    %12 = arith.addf %8, %11 : vector<1x64x128xf32>
    %cst_10 = arith.constant 0.000000e+00 : f32
    %13 = vector.broadcast %cst_10 : f32 to vector<1x64x128xf32>
    %14 = arith.maximumf %12, %13 : vector<1x64x128xf32>
    %cst_11 = arith.constant 0.000000e+00 : bf16
    %15 = vector.broadcast %cst_11 : bf16 to vector<1x1x10x128xbf16>
    %cst_12 = arith.constant 0.000000e+00 : bf16
    %16 = vector.broadcast %cst_12 : bf16 to vector<1x8x1x128xbf16>
    %c0_13 = arith.constant 0 : index
    %c0_14 = arith.constant 0 : index
    %c0_15 = arith.constant 0 : index
    %c0_16 = arith.constant 0 : index
    %17 = vector.load %arg11[%c0_13, %c0_14, %c0_15, %c0_16] : memref<1x10x10x128xbf16, #tpu.memory_space<vmem>>, vector<1x1x10x128xbf16>
    tpu.vector_store %arg11[%c0_13, %c0_14, %c0_15, %c0_16], %15 {strides = array<i32>} : memref<1x10x10x128xbf16, #tpu.memory_space<vmem>>, vector<1x1x10x128xbf16>,
    %c0_17 = arith.constant 0 : index
    %c9 = arith.constant 9 : index
    %c0_18 = arith.constant 0 : index
    %c0_19 = arith.constant 0 : index
    %18 = vector.load %arg11[%c0_17, %c9, %c0_18, %c0_19] : memref<1x10x10x128xbf16, #tpu.memory_space<vmem>>, vector<1x1x10x128xbf16>
    tpu.vector_store %arg11[%c0_17, %c9, %c0_18, %c0_19], %15 {strides = array<i32>} : memref<1x10x10x128xbf16, #tpu.memory_space<vmem>>, vector<1x1x10x128xbf16>,
    %c0_20 = arith.constant 0 : index
    %c1 = arith.constant 1 : index
    %c0_21 = arith.constant 0 : index
    %c0_22 = arith.constant 0 : index
    %19 = vector.load %arg11[%c0_20, %c1, %c0_21, %c0_22] : memref<1x10x10x128xbf16, #tpu.memory_space<vmem>>, vector<1x8x1x128xbf16>
    tpu.vector_store %arg11[%c0_20, %c1, %c0_21, %c0_22], %16 {strides = array<i32>} : memref<1x10x10x128xbf16, #tpu.memory_space<vmem>>, vector<1x8x1x128xbf16>,
    %c0_23 = arith.constant 0 : index
    %c1_24 = arith.constant 1 : index
    %c9_25 = arith.constant 9 : index
    %c0_26 = arith.constant 0 : index
    %20 = vector.load %arg11[%c0_23, %c1_24, %c9_25, %c0_26] : memref<1x10x10x128xbf16, #tpu.memory_space<vmem>>, vector<1x8x1x128xbf16>
    tpu.vector_store %arg11[%c0_23, %c1_24, %c9_25, %c0_26], %16 {strides = array<i32>} : memref<1x10x10x128xbf16, #tpu.memory_space<vmem>>, vector<1x8x1x128xbf16>,
    %21 = vector.shape_cast %14 : vector<1x64x128xf32> to vector<1x8x8x128xf32>
    %22 = arith.truncf %21 : vector<1x8x8x128xf32> to vector<1x8x8x128xbf16>
    %c0_27 = arith.constant 0 : index
    %c1_28 = arith.constant 1 : index
    %c1_29 = arith.constant 1 : index
    %c0_30 = arith.constant 0 : index
    %23 = vector.load %arg11[%c0_27, %c1_28, %c1_29, %c0_30] : memref<1x10x10x128xbf16, #tpu.memory_space<vmem>>, vector<1x8x8x128xbf16>
    tpu.vector_store %arg11[%c0_27, %c1_28, %c1_29, %c0_30], %22 {strides = array<i32>} : memref<1x10x10x128xbf16, #tpu.memory_space<vmem>>, vector<1x8x8x128xbf16>,
    %cst_31 = arith.constant 0.000000e+00 : f32
    %24 = vector.broadcast %cst_31 : f32 to vector<64x128xf32>
    %c0_32 = arith.constant 0 : index
    %c0_33 = arith.constant 0 : index
    %c0_34 = arith.constant 0 : index
    %c0_35 = arith.constant 0 : index
    %25 = vector.load %arg11[%c0_32, %c0_33, %c0_34, %c0_35] : memref<1x10x10x128xbf16, #tpu.memory_space<vmem>>, vector<1x8x8x128xbf16>
    %c0_36 = arith.constant 0 : index
    %c0_37 = arith.constant 0 : index
    %c1_38 = arith.constant 1 : index
    %c0_39 = arith.constant 0 : index
    %26 = vector.load %arg11[%c0_36, %c0_37, %c1_38, %c0_39] : memref<1x10x10x128xbf16, #tpu.memory_space<vmem>>, vector<1x8x8x128xbf16>
    %c0_40 = arith.constant 0 : index
    %c0_41 = arith.constant 0 : index
    %c2 = arith.constant 2 : index
    %c0_42 = arith.constant 0 : index
    %27 = vector.load %arg11[%c0_40, %c0_41, %c2, %c0_42] : memref<1x10x10x128xbf16, #tpu.memory_space<vmem>>, vector<1x8x8x128xbf16>
    %28 = tpu.concatenate %25, %26, %27 in 3 : vector<1x8x8x128xbf16>, vector<1x8x8x128xbf16>, vector<1x8x8x128xbf16> -> vector<1x8x8x384xbf16>
    %29 = vector.shape_cast %28 : vector<1x8x8x384xbf16> to vector<64x384xbf16>
    %c0_43 = arith.constant 0 : index
    %c0_44 = arith.constant 0 : index
    %c0_45 = arith.constant 0 : index
    %30 = vector.load %arg5[%c0_43, %c0_44, %c0_45] : memref<3x384x128xbf16, #tpu.memory_space<vmem>>, vector<1x384x128xbf16>
    %31 = vector.shape_cast %30 : vector<1x384x128xbf16> to vector<384x128xbf16>
    %cst_46 = arith.constant dense<0.000000e+00> : vector<64x128xf32>
    %32 = tpu.matmul %29, %31, %cst_46 {dimension_numbers = #tpu.dot_dimension_numbers<[1], [0], [0], [1], [0, 0, 1, 1], [], []>} : vector<64x384xbf16>, vector<384x128xbf16>, vector<64x128xf32> -> vector<64x128xf32>
    %33 = arith.addf %24, %32 : vector<64x128xf32>
    %c0_47 = arith.constant 0 : index
    %c1_48 = arith.constant 1 : index
    %c0_49 = arith.constant 0 : index
    %c0_50 = arith.constant 0 : index
    %34 = vector.load %arg11[%c0_47, %c1_48, %c0_49, %c0_50] : memref<1x10x10x128xbf16, #tpu.memory_space<vmem>>, vector<1x8x8x128xbf16>
    %c0_51 = arith.constant 0 : index
    %c1_52 = arith.constant 1 : index
    %c1_53 = arith.constant 1 : index
    %c0_54 = arith.constant 0 : index
    %35 = vector.load %arg11[%c0_51, %c1_52, %c1_53, %c0_54] : memref<1x10x10x128xbf16, #tpu.memory_space<vmem>>, vector<1x8x8x128xbf16>
    %c0_55 = arith.constant 0 : index
    %c1_56 = arith.constant 1 : index
    %c2_57 = arith.constant 2 : index
    %c0_58 = arith.constant 0 : index
    %36 = vector.load %arg11[%c0_55, %c1_56, %c2_57, %c0_58] : memref<1x10x10x128xbf16, #tpu.memory_space<vmem>>, vector<1x8x8x128xbf16>
    %37 = tpu.concatenate %34, %35, %36 in 3 : vector<1x8x8x128xbf16>, vector<1x8x8x128xbf16>, vector<1x8x8x128xbf16> -> vector<1x8x8x384xbf16>
    %38 = vector.shape_cast %37 : vector<1x8x8x384xbf16> to vector<64x384xbf16>
    %c1_59 = arith.constant 1 : index
    %c0_60 = arith.constant 0 : index
    %c0_61 = arith.constant 0 : index
    %39 = vector.load %arg5[%c1_59, %c0_60, %c0_61] : memref<3x384x128xbf16, #tpu.memory_space<vmem>>, vector<1x384x128xbf16>
    %40 = vector.shape_cast %39 : vector<1x384x128xbf16> to vector<384x128xbf16>
    %cst_62 = arith.constant dense<0.000000e+00> : vector<64x128xf32>
    %41 = tpu.matmul %38, %40, %cst_62 {dimension_numbers = #tpu.dot_dimension_numbers<[1], [0], [0], [1], [0, 0, 1, 1], [], []>} : vector<64x384xbf16>, vector<384x128xbf16>, vector<64x128xf32> -> vector<64x128xf32>
    %42 = arith.addf %33, %41 : vector<64x128xf32>
    %c0_63 = arith.constant 0 : index
    %c2_64 = arith.constant 2 : index
    %c0_65 = arith.constant 0 : index
    %c0_66 = arith.constant 0 : index
    %43 = vector.load %arg11[%c0_63, %c2_64, %c0_65, %c0_66] : memref<1x10x10x128xbf16, #tpu.memory_space<vmem>>, vector<1x8x8x128xbf16>
    %c0_67 = arith.constant 0 : index
    %c2_68 = arith.constant 2 : index
    %c1_69 = arith.constant 1 : index
    %c0_70 = arith.constant 0 : index
    %44 = vector.load %arg11[%c0_67, %c2_68, %c1_69, %c0_70] : memref<1x10x10x128xbf16, #tpu.memory_space<vmem>>, vector<1x8x8x128xbf16>
    %c0_71 = arith.constant 0 : index
    %c2_72 = arith.constant 2 : index
    %c2_73 = arith.constant 2 : index
    %c0_74 = arith.constant 0 : index
    %45 = vector.load %arg11[%c0_71, %c2_72, %c2_73, %c0_74] : memref<1x10x10x128xbf16, #tpu.memory_space<vmem>>, vector<1x8x8x128xbf16>
    %46 = tpu.concatenate %43, %44, %45 in 3 : vector<1x8x8x128xbf16>, vector<1x8x8x128xbf16>, vector<1x8x8x128xbf16> -> vector<1x8x8x384xbf16>
    %47 = vector.shape_cast %46 : vector<1x8x8x384xbf16> to vector<64x384xbf16>
    %c2_75 = arith.constant 2 : index
    %c0_76 = arith.constant 0 : index
    %c0_77 = arith.constant 0 : index
    %48 = vector.load %arg5[%c2_75, %c0_76, %c0_77] : memref<3x384x128xbf16, #tpu.memory_space<vmem>>, vector<1x384x128xbf16>
    %49 = vector.shape_cast %48 : vector<1x384x128xbf16> to vector<384x128xbf16>
    %cst_78 = arith.constant dense<0.000000e+00> : vector<64x128xf32>
    %50 = tpu.matmul %47, %49, %cst_78 {dimension_numbers = #tpu.dot_dimension_numbers<[1], [0], [0], [1], [0, 0, 1, 1], [], []>} : vector<64x384xbf16>, vector<384x128xbf16>, vector<64x128xf32> -> vector<64x128xf32>
    %51 = arith.addf %42, %50 : vector<64x128xf32>
    %52 = vector.shape_cast %51 : vector<64x128xf32> to vector<1x64x128xf32>
    %c0_79 = arith.constant 0 : index
    %c0_80 = arith.constant 0 : index
    %c0_81 = arith.constant 0 : index
    %53 = vector.load %arg3[%c0_79, %c0_80, %c0_81] : memref<1x1x128xf32, #tpu.memory_space<vmem>>, vector<1x1x128xf32>
    %54 = vector.broadcast %53 : vector<1x1x128xf32> to vector<1x64x128xf32>
    %55 = arith.mulf %52, %54 : vector<1x64x128xf32>
    %c0_82 = arith.constant 0 : index
    %c0_83 = arith.constant 0 : index
    %56 = vector.load %arg8[%c0_82, %c0_83] : memref<1x128xf32, #tpu.memory_space<vmem>>, vector<1x128xf32>
    %57 = vector.shape_cast %56 : vector<1x128xf32> to vector<1x1x128xf32>
    %58 = vector.broadcast %57 : vector<1x1x128xf32> to vector<1x64x128xf32>
    %59 = arith.addf %55, %58 : vector<1x64x128xf32>
    %cst_84 = arith.constant 0.000000e+00 : f32
    %60 = vector.broadcast %cst_84 : f32 to vector<1x64x128xf32>
    %61 = arith.maximumf %59, %60 : vector<1x64x128xf32>
    %62 = vector.shape_cast %61 : vector<1x64x128xf32> to vector<64x128xf32>
    %63 = arith.truncf %62 : vector<64x128xf32> to vector<64x128xbf16>
    %c0_85 = arith.constant 0 : index
    %c0_86 = arith.constant 0 : index
    %64 = vector.load %arg6[%c0_85, %c0_86] : memref<128x128xbf16, #tpu.memory_space<vmem>>, vector<128x128xbf16>
    %cst_87 = arith.constant dense<0.000000e+00> : vector<64x128xf32>
    %65 = tpu.matmul %63, %64, %cst_87 {dimension_numbers = #tpu.dot_dimension_numbers<[1], [0], [0], [1], [0, 0, 1, 1], [], []>} : vector<64x128xbf16>, vector<128x128xbf16>, vector<64x128xf32> -> vector<64x128xf32>
    %c0_88 = arith.constant 0 : index
    %c0_89 = arith.constant 0 : index
    %66 = vector.load %arg9[%c0_88, %c0_89] : memref<1x128xf32, #tpu.memory_space<vmem>>, vector<1x128xf32>
    %67 = vector.broadcast %66 : vector<1x128xf32> to vector<64x128xf32>
    %68 = arith.addf %65, %67 : vector<64x128xf32>
    %69 = arith.addf %68, %1 : vector<64x128xf32>
    %cst_90 = arith.constant 0.000000e+00 : f32
    %70 = vector.broadcast %cst_90 : f32 to vector<64x128xf32>
    %71 = arith.maximumf %69, %70 : vector<64x128xf32>
    %72 = vector.shape_cast %71 : vector<64x128xf32> to vector<1x8x8x128xf32>
    %c0_91 = arith.constant 0 : index
    %c0_92 = arith.constant 0 : index
    %c0_93 = arith.constant 0 : index
    %c0_94 = arith.constant 0 : index
    %73 = vector.load %arg10[%c0_91, %c0_92, %c0_93, %c0_94] : memref<1x8x8x128xf32, #tpu.memory_space<vmem>>, vector<1x8x8x128xf32>
    tpu.vector_store %arg10[%c0_91, %c0_92, %c0_93, %c0_94], %72 {strides = array<i32>} : memref<1x8x8x128xf32, #tpu.memory_space<vmem>>, vector<1x8x8x128xf32>,
    return
  }
  func.func @transform_0(%arg0: i32) -> (i32, i32, i32, i32) {
    %c0_i32 = arith.constant 0 : i32
    %c0_i32_0 = arith.constant 0 : i32
    %c0_i32_1 = arith.constant 0 : i32
    %c0_i32_2 = arith.constant 0 : i32
    return %arg0, %c0_i32, %c0_i32_0, %c0_i32_1 : i32, i32, i32, i32
  }
  func.func @transform_1(%arg0: i32) -> (i32, i32, i32) {
    %c0_i32 = arith.constant 0 : i32
    %c0_i32_0 = arith.constant 0 : i32
    %c0_i32_1 = arith.constant 0 : i32
    return %arg0, %c0_i32, %c0_i32_0 : i32, i32, i32
  }
  func.func @transform_2(%arg0: i32) -> (i32, i32, i32) {
    %c0_i32 = arith.constant 0 : i32
    %c0_i32_0 = arith.constant 0 : i32
    %c0_i32_1 = arith.constant 0 : i32
    return %arg0, %c0_i32, %c0_i32_0 : i32, i32, i32
  }
  func.func @transform_3(%arg0: i32) -> (i32, i32) {
    %c0_i32 = arith.constant 0 : i32
    %c0_i32_0 = arith.constant 0 : i32
    %c0_i32_1 = arith.constant 0 : i32
    return %c0_i32, %c0_i32_0 : i32, i32
  }
  func.func @transform_4(%arg0: i32) -> (i32, i32, i32) {
    %c0_i32 = arith.constant 0 : i32
    %c0_i32_0 = arith.constant 0 : i32
    %c0_i32_1 = arith.constant 0 : i32
    %c0_i32_2 = arith.constant 0 : i32
    return %c0_i32, %c0_i32_0, %c0_i32_1 : i32, i32, i32
  }
  func.func @transform_5(%arg0: i32) -> (i32, i32) {
    %c0_i32 = arith.constant 0 : i32
    %c0_i32_0 = arith.constant 0 : i32
    %c0_i32_1 = arith.constant 0 : i32
    return %c0_i32, %c0_i32_0 : i32, i32
  }
  func.func @transform_6(%arg0: i32) -> (i32, i32) {
    %c0_i32 = arith.constant 0 : i32
    %c0_i32_0 = arith.constant 0 : i32
    %c0_i32_1 = arith.constant 0 : i32
    return %c0_i32, %c0_i32_0 : i32, i32
  }
  func.func @transform_7(%arg0: i32) -> (i32, i32) {
    %c0_i32 = arith.constant 0 : i32
    %c0_i32_0 = arith.constant 0 : i32
    %c0_i32_1 = arith.constant 0 : i32
    return %c0_i32, %c0_i32_0 : i32, i32
  }
  func.func @transform_8(%arg0: i32) -> (i32, i32) {
    %c0_i32 = arith.constant 0 : i32
    %c0_i32_0 = arith.constant 0 : i32
    %c0_i32_1 = arith.constant 0 : i32
    return %c0_i32, %c0_i32_0 : i32, i32
  }
  func.func @transform_9(%arg0: i32) -> (i32, i32, i32, i32) {
    %c0_i32 = arith.constant 0 : i32
    %c0_i32_0 = arith.constant 0 : i32
    %c0_i32_1 = arith.constant 0 : i32
    %c0_i32_2 = arith.constant 0 : i32
    return %arg0, %c0_i32, %c0_i32_0, %c0_i32_1 : i32, i32, i32, i32
  }
}

</mosaic_0001>

<bundles_post_ra>
// kernel: tpu_custom_call.1
= control target key start
LH: loop header
LB: loop body
LE: loop exit
PB: predicated region body
PF: predicated region fallthrough
CT: control target
= control target key end

     0   :  { %s4395_s0 = inlined_call_operand.hbm [shape: f32[2,8,8,128], index: 0, kind: input, shape index: {}]   ;;  %s4396_s1 = inlined_call_operand.hbm [shape: f32[2,1,128], index: 1, kind: input, shape index: {}]   ;;  %s4397_s2 = inlined_call_operand.vmem [shape: f32[2,1,128], index: 2, kind: input, shape index: {}]   ;;  %s4398_s3 = inlined_call_operand.hbm [shape: bf16[128,128], index: 3, kind: input, shape index: {}]   ;;  %s4399_s4 = inlined_call_operand.hbm [shape: bf16[3,384,128], index: 4, kind: input, shape index: {}]   ;;  %s4400_s5 = inlined_call_operand.hbm [shape: bf16[128,128], index: 5, kind: input, shape index: {}]   ;;  %s4401_s6 = inlined_call_operand.vmem [shape: f32[1,128], index: 6, kind: input, shape index: {}]   ;;  %s4402_s7 = inlined_call_operand.vmem [shape: f32[1,128], index: 7, kind: input, shape index: {}]   ;;  %s4403_s8 = inlined_call_operand.vmem [shape: f32[1,128], index: 8, kind: input, shape index: {}]   ;;  %s4404_s9 = inlined_call_operand.hbm [shape: f32[2,8,8,128], index: 9, kind: output, shape index: {}]  }
   0x1   :  { %4410 = sst [smem:[#allocation20_spill]] %s4395_s0 }
   0x2   :  { %4411 = sst [smem:[#allocation21_spill]] %s4398_s3 }
   0x3   :  { %4412 = sst [smem:[#allocation22_spill]] %s4399_s4 }
   0x4   :  { %4413 = sst [smem:[#allocation23_spill]] %s4400_s5 }
   0x5   :  { %14 = vsyncpa [#allocation4], 0 }
   0x6   :  { %16 = vsyncpa [#allocation4 + $0x1], 0 }
   0x7   :  { %17 = vsyncpa [#allocation7], 0 }
   0x8   :  { %19 = vsyncpa [#allocation7 + $0x1], 0 }
   0x9   :  { %20 = vsyncpa [#allocation10], 0 }
   0xa   :  { %21 = vsyncpa [#allocation5], 0 }
   0xb   :  { %23 = vsyncpa [#allocation5 + $0x1], 0  ;;  %s3778_s30 = smov 0   ;;  %s3780_s10 = smov 0  }
   0xc   :  { %s3782_s11 = smov 0   ;;  %s3784_s12 = smov 0  }
   0xd LB: > { %4414 = sst [smem:[#allocation18_spill]] %s3709_s11  ;;  %s3799_s13 = sadd.s32 4294967295, %s3713_s12   ;;  %s3713_s12 = sphi %s3784_s12, %s4447_s12   ;;  %s3709_s11 = sphi %s3782_s11, %s4444_s11   ;;  %s3705_s10 = sphi %s3780_s10, %s4446_s10   ;;  %s3701_s30 = sphi %s3778_s30, %s4445_s30  }
   0xe   : > { %s2742_s14 = sadd.s32 4294967294, %s3713_s12   ;;  %p49_p0 = scmp.ne.s32.totalorder %s3705_s10, %s3701_s30 }
   0xf   : > { %p4405_p1 = scmp.eq.s32.totalorder %s3799_s13, 0  ;;  %p257_p3 = scmp.eq.s32.totalorder %s2742_s14, 1 }
  0x10   : > { %p2743_p5 = scmp.ge.s32.totalorder %s3713_s12, 1  ;;  %p264_p7 = scmp.lt.s32.totalorder %s3713_s12, 3 }
  0x11   : > { %p3808_p4 = por %p4405_p1, %p49_p0  ;;  %p3813_p6 = por %p257_p3, %p49_p0 }
  0x12   : > { %p3818_p8 = pnand %p2743_p5, %p264_p7  ;;  %s3715_s18 = smov [#allocation8]  }
  0x13   : > { %s4415_s15 = scalar_select %p3808_p4, 1, 0 }
  0x14   : > { %s4416_s16 = scalar_select %p3813_p6, 1, 0 }
  0x15   : > { %s4417_s17 = scalar_select %p3818_p8, 1, 0 }
  0x16   : > { %s276_s19 = sshll.u32 %s3715_s18, 4  ;;  %p3276_p9 = pneg %p3818_p8  ;;  %s277_s19 = int_to_ptr.vmem [resolvable:$true] %s276_s19 }
  0x17   : > { %s3716_s21 = smov [#allocation9]   ;;  %s3717_s23 = smov [#allocation11]  }
  0x18   : > { %p3827_p11 = pnand %p3276_p9, %p4405_p1  ;;  %s289_s22 = sshll.u32 %s3716_s21, 4  ;;  %s290_s22 = int_to_ptr.vmem [resolvable:$true] %s289_s22 }
  0x19   : > { %s302_s24 = sshll.u32 %s3717_s23, 4  ;;  %s3514_s25 = scalar_lea.vmem %s277_s19, 1024  ;;  %s303_s24 = int_to_ptr.vmem [resolvable:$true] %s302_s24 }
  0x1a   : > { %p3505_p12 = pneg %p3827_p11  ;;  %p3515_p13 = scmp.ne.s32.totalorder %s277_s19, %s3514_s25 }
  0x1b   : > { %p3522_p5 = scmp.lt.s32.totalorder %s277_s19, %s277_s19  ;;  %p3523_p7 = scmp.lt.s32.totalorder %s3514_s25, %s3514_s25 }
  0x1c   : > { %p3517_p0 = pnand %p3515_p13, %p3505_p12 }
  0x1d   : > { %p3524_p9 = por %p3523_p7, %p3522_p5 }
  0x1e   : > { %p3518_p3 = pneg %p3517_p0 }
  0x20   : > { %p3525_p10 = pnand %p3524_p9, %p3518_p3 }
  0x22   : > { %3528 = shalt.err (!%p3525_p10)
}
  0x23   : > { %s3718_s26 = smov 64   ;;  %s3719_s27 = smov 4  }
  0x24   : > { %s4419_s3 = sld [smem:[#allocation21_spill]]  ;;  %s3540_s14 = scalar_lea.vmem %s290_s22, 9216 }
  0x25   : > { %p3541_p1 = scmp.ne.s32.totalorder %s290_s22, %s3540_s14  ;;  %p3548_p2 = scmp.lt.s32.totalorder %s290_s22, %s290_s22 }
  0x26   : > { %p3549_p6 = scmp.lt.s32.totalorder %s3540_s14, %s3540_s14 }
  0x27   : > { %p3543_p13 = pnand %p3541_p1, %p3505_p12 }
  0x28   : > { %p3550_p5 = por %p3549_p6, %p3548_p2 }
  0x29   : > { %p3544_p0 = pneg %p3543_p13 }
  0x2a   : > { %3279 = dma.hbm_to_vmem [thread:$0]  (!%p3827_p11), %s4419_s3, 1024, %s277_s19, [#allocation7], %s3718_s26, %s3718_s26, %s3719_s27  }
  0x2b   : > { %p3551_p3 = pnand %p3550_p5, %p3544_p0 }
  0x2d   : > { %3554 = shalt.err (!%p3551_p3)
}
  0x2e   : > { %s4420_s4 = sld [smem:[#allocation22_spill]]  ;;  %s3566_s19 = scalar_lea.vmem %s303_s24, 1024 }
  0x2f   : > { %p3567_p10 = scmp.ne.s32.totalorder %s303_s24, %s3566_s19  ;;  %p3574_p9 = scmp.lt.s32.totalorder %s303_s24, %s303_s24 }
  0x30   : > { %p3575_p13 = scmp.lt.s32.totalorder %s3566_s19, %s3566_s19 }
  0x31   : > { %p3569_p7 = pnand %p3567_p10, %p3505_p12 }
  0x32   : > { %p3576_p4 = por %p3575_p13, %p3574_p9 }
  0x33   : > { %p3570_p1 = pneg %p3569_p7 }
  0x34   : > { %3282 = dma.hbm_to_vmem [thread:$0]  (!%p3827_p11), %s4420_s4, 9216, %s290_s22, [#allocation10], %s3718_s26, %s3718_s26, %s3719_s27  }
  0x35   : > { %p3577_p2 = pnand %p3576_p4, %p3570_p1 }
  0x37   : > { %3580 = shalt.err (!%p3577_p2)
}
  0x38   : > { %s4421_s5 = sld [smem:[#allocation23_spill]]  ;;  %s3858_s22 = sadd.s32 1, %s3713_s12  }
  0x39   : > { %s33_s28 = ssub.s32 %s3713_s12, %s3858_s22  ;;  %s36_s20 = sadd.s32 1, %s3709_s11 }
  0x3a   : > { %p34_p4 = scmp.eq.s32.totalorder %s33_s28, 0  ;;  %p43_p6 = scmp.ne.s32.totalorder %s3709_s11, %s3705_s10 }
  0x3b   : > { %p44_p12 = scmp.eq.s32.totalorder %s3713_s12, 0  ;;  %p3300_p0 = scmp.lt.s32.totalorder %s3713_s12, 2 }
  0x3c   : > { %s3868_s29 = scalar_select %p34_p4, %s3709_s11, %s36_s20  }
  0x3d   : > { %p45_p5 = por %p44_p12, %p43_p6  ;;  %p4423_p3 = scmp.eq.s32.totalorder %s3799_s13, 1 }
  0x3e   : > { %3285 = dma.hbm_to_vmem [thread:$0]  (!%p3827_p11), %s4421_s5, 1024, %s303_s24, [#allocation10], %s3718_s26, %s3718_s26, %s3719_s27  }
  0x3f   : > { %4422 = sst [smem:[#allocation19_spill]] %s3868_s29  ;;  %p3872_p10 = por %p4423_p3, %p43_p6 }
  0x40   : > { %s3877_s18 = sand.u32 1, %s3709_s11   ;;  %s2948_s24 = sshll.u32 %s3713_s12, 10 }
  0x41   : > { %s4424_s14 = scalar_select %p3872_p10, 1, 0 }
  0x42   : > { %s2748_s26 = sshll.u32 %s3877_s18, 6  ;;  %s4425_s0 = sld [smem:[#allocation20_spill]] }
  0x43   : > { %s329_s23 = scalar_lea.vmem [#allocation3], %s2748_s26  ;;  %p3886_p11 = pnand %p3300_p0, %p45_p5 }
  0x44   : > { %s336_s25 = sshll.u32 %s329_s23, 4  ;;  %s3890_s25 = int_to_ptr.vmem [resolvable:$true] %s336_s25 }
  0x45   : > { %p3583_p1 = pneg %p3886_p11 }
  0x48   : > { %s3884_s19 = scalar_lea.hbm %s4425_s0, %s2948_s24  ;;  %s3586_s27 = scalar_lea.hbm %s4425_s0, 2048 }
  0x49   : > { %s3581_s3 = scalar_lea.hbm %s3884_s19, 1024  ;;  %p3587_p2 = scmp.lt.s32.totalorder %s3884_s19, %s4425_s0 }
  0x4a   : > { %p3582_p7 = scmp.ne.s32.totalorder %s3884_s19, %s3581_s3  ;;  %p3588_p4 = scmp.lt.s32.totalorder %s3586_s27, %s3581_s3 }
  0x4c   : > { %p3584_p9 = pnand %p3583_p1, %p3582_p7  ;;  %p3589_p6 = por %p3588_p4, %p3587_p2 }
  0x4e   : > { %p3585_p13 = pneg %p3584_p9 }
  0x50   : > { %p3590_p12 = pnand %p3589_p6, %p3585_p13 }
  0x52   : > { %3593 = shalt.err (!%p3590_p12)
}
  0x53   : > { %s3594_s20 = scalar_lea.vmem %s3890_s25, 1024  ;;  %s3720_s24 = smov [#allocation3]  }
  0x54   : > { %p3595_p0 = scmp.ne.s32.totalorder %s3890_s25, %s3594_s20  ;;  %s3599_s26 = sshll.u32 %s3720_s24, 4  ;;  %s3600_s26 = int_to_ptr.vmem [resolvable:$false] %s3599_s26 }
  0x55   : > { %s3601_s4 = scalar_lea.vmem %s3600_s26, 2048  ;;  %p3602_p7 = scmp.lt.s32.totalorder %s3890_s25, %s3600_s26 }
  0x56   : > { %p3597_p5 = pnand %p3595_p0, %p3583_p1  ;;  %p3603_p9 = scmp.lt.s32.totalorder %s3601_s4, %s3594_s20 }
  0x58   : > { %p3598_p3 = pneg %p3597_p5  ;;  %p3604_p10 = por %p3603_p9, %p3602_p7 }
  0x5a   : > { %p3605_p2 = pnand %p3604_p10, %p3598_p3 }
  0x5c   : > { %3608 = shalt.err (!%p3605_p2)
}
  0x5d   : > { %s3721_s3 = smov 128   ;;  %s3722_s27 = smov 8  }
  0x5e   : > { %s4427_s21 = scalar_lea.sflag [#allocation4], %s3877_s18  ;;  %s346_s23 = sand.u32 1, %s3713_s12  }
  0x5f   : > { %3289 = dma.hbm_to_vmem [thread:$0]  (!%p3886_p11), %s3884_s19, 1024, %s3890_s25, %s4427_s21, %s3721_s3, %s3721_s3, %s3722_s27  }
  0x60   : > { %s2751_s24 = sshll.u32 %s3713_s12, 4  ;;  %s349_s0 = scalar_lea.vmem [#allocation6], %s3877_s18 }
  0x61   : > { %s3924_s20 = scalar_lea.hbm %s4396_s1, %s2751_s24  ;;  %s356_s5 = sshll.u32 %s349_s0, 4  ;;  %s357_s5 = int_to_ptr.vmem [resolvable:$true] %s356_s5 }
  0x62   : > { %s347_s29 = scalar_lea.sflag [#allocation7], %s346_s23  ;;  %s3609_s11 = scalar_lea.hbm %s3924_s20, 16 }
  0x63   : > { %p3610_p10 = scmp.ne.s32.totalorder %s3924_s20, %s3609_s11  ;;  %s3614_s3 = scalar_lea.hbm %s4396_s1, 32 }
  0x64   : > { %p3615_p6 = scmp.lt.s32.totalorder %s3924_s20, %s4396_s1  ;;  %p3616_p12 = scmp.lt.s32.totalorder %s3614_s3, %s3609_s11 }
  0x65   : > { %p3612_p13 = pnand %p3610_p10, %p3583_p1 }
  0x66   : > { %p3617_p0 = por %p3616_p12, %p3615_p6 }
  0x67   : > { %p3613_p4 = pneg %p3612_p13 }
  0x69   : > { %p3618_p5 = pnand %p3617_p0, %p3613_p4 }
  0x6b   : > { %3621 = shalt.err (!%p3618_p5)
}
  0x6c   : > { %s3622_s0 = scalar_lea.vmem %s357_s5, 16  ;;  %s3723_s18 = smov [#allocation6]  }
  0x6d   : > { %p3623_p3 = scmp.ne.s32.totalorder %s357_s5, %s3622_s0  ;;  %s3627_s23 = sshll.u32 %s3723_s18, 4  ;;  %s3628_s23 = int_to_ptr.vmem [resolvable:$false] %s3627_s23 }
  0x6e   : > { %s3629_s24 = scalar_lea.vmem %s3628_s23, 32  ;;  %p3630_p2 = scmp.lt.s32.totalorder %s357_s5, %s3628_s23 }
  0x6f   : > { %p3625_p7 = pnand %p3623_p3, %p3583_p1  ;;  %p3631_p10 = scmp.lt.s32.totalorder %s3629_s24, %s3622_s0 }
  0x71   : > { %p3626_p9 = pneg %p3625_p7  ;;  %p3632_p13 = por %p3631_p10, %p3630_p2 }
  0x73   : > { %p3633_p8 = pnand %p3632_p13, %p3626_p9 }
  0x75   : > { %3636 = shalt.err (!%p3633_p8)
}
  0x76   : > { %3292 = dma.hbm_to_vmem [thread:$0]  (!%p3886_p11), %s3924_s20, 16, %s357_s5, %s347_s29  }
  0x77   : > { %p4428_p4 = scmp.ne.s32.totalorder %s4417_s17, 0 }
  0x78   : > { %s3948_s11 = sand.u32 (!%p4428_p4), 1, %s3705_s10   ;;  %p4429_p8 = scmp.ne.s32.totalorder (!%p4428_p4), %s4415_s15, 0 }
  0x79   : > { %371 = sbr.rel (%p4428_p4) target bundleno = 928 (0x3a0), region = 56  ;;  %s2753_s26 = sshll.u32 (!%p4428_p4), %s3948_s11, 6 }
  0x7a   : > { %s374_s4 = scalar_lea.sflag (!%p4428_p4), [#allocation4], %s3948_s11  ;;  %s3954_s19 = scalar_lea.vmem (!%p4428_p4), [#allocation3], %s2753_s26 }
  0x7e   : > { %3680 = dma.done.wait (%p4429_p8), %s374_s4, 1024  }
  0x7f   : > { %3682 = vsyncadd (%p4429_p8), %s374_s4, 4294966272  ;;  %s382_s5 = sand.u32 1, %s3799_s13   ;;  %s385_s29 = scalar_lea.vmem [#allocation6], %s3948_s11 }
  0x80   : > { %s383_s17 = scalar_lea.sflag [#allocation7], %s382_s5 }
  0x81   : > { %3684 = dma.done.wait (%p4429_p8), %s383_s17, 16  }
  0x82   : > { %3686 = vsyncadd (%p4429_p8), %s383_s17, 4294967280  ;;  %p4430_p11 = scmp.eq.s32.totalorder %s3799_s13, 0 }
  0x84   : > { %3688 = dma.done.wait (%p4430_p11), [#allocation7], 1024   ;;  %p4431_p1 = pmov %p4430_p11 }
  0x86   : > { %3690 = vsyncadd (%p4431_p1), [#allocation7], 4294966272  ;;  %p4432_p6 = pmov %p4431_p1 }
  0x87   : > { %p4433_p12 = pmov %p4431_p1 }
  0x88   : > { %3692 = dma.done.wait (%p4432_p6), [#allocation10], 10240  }
  0x89   : > { %3694 = vsyncadd (%p4433_p12), [#allocation10], 4294957056  ;;  %v3347_v0 = vld [vmem:[#allocation8 + $0x38] sm:$0xff]   ;;  %v3348_v1 = vld [vmem:[#allocation8 + $0x30] sm:$0xff]   ;;  %vm628_vm0 = vcmask 1040384   ;;  %vm793_vm5 = vcmask 1043456  }
  0x8a   : > { %3138 = vmatprep.subr.bf16.mxu0 %v3347_v0  ;;  %v3349_v2 = vld [vmem:[#allocation8 + $0x28] sm:$0xff]   ;;  %v3350_v3 = vld [vmem:[#allocation8 + $0x20] sm:$0xff]   ;;  %v3351_v7 = vld [vmem:[#allocation8 + $0x18] sm:$0xff]   ;;  %vm629_vm1 = vsmask.f32 256  ;;  %p439_p0 = scmp.lt.s32.totalorder %s3799_s13, 1 }
  0x8b   : > { %3139 = vmatpush3.bf16.msra.mxu0 %v3347_v0  ;;  %v443_v4 = vld [vmem:[%s3954_s19] sm:$0xff]  ;;  %v444_v5 = vld [vmem:[%s3954_s19 + $0x8] sm:$0xff]  ;;  %v3352_v8 = vld [vmem:[#allocation8 + $0x10] sm:$0xff]   ;;  %vm655_vm2 = vsmask.f32 7938  ;;  %s4329_s24 = scalar_lea.vmem [#allocation12], %s2753_s26 }
  0x8c   : > { %3140 = vmatprep.subr.bf16.mxu0 %v3348_v1  ;;  %v451_v6 = vpack.c.bf16 %v444_v5, %v443_v4  ;;  %v3353_v9 = vld [vmem:[#allocation8 + $0x8] sm:$0xff]   ;;  %v3354_v10 = vld [vmem:[#allocation8] sm:$0xff]   ;;  %v446_v12 = vld [vmem:[%s3954_s19 + $0x18] sm:$0xff]  ;;  %s440_s20 = scalar_select %p439_p0, %s3799_s13, 1 }
  0x8d   : > { %v445_v11 = vld [vmem:[%s3954_s19 + $0x10] sm:$0xff]  ;;  %v447_v13 = vld [vmem:[%s3954_s19 + $0x20] sm:$0xff]  ;;  %v448_v14 = vld [vmem:[%s3954_s19 + $0x28] sm:$0xff]  ;;  %s2612_s26 = sshll.u32 %s4329_s24, 4  ;;  %s2957_s4 = sshll.u32 %s3799_s13, 10  ;;  %s4343_s26 = int_to_ptr.vmem [resolvable:$true] %s2612_s26 }
  0x8e   : > { %3154 = vmatprep.mubr.bf16.mxu0 %v451_v6  ;;  %v452_v15 = vpack.c.bf16 %v446_v12, %v445_v11  ;;  %v453_v16 = vpack.c.bf16 %v448_v14, %v447_v13  ;;  %v449_v17 = vld [vmem:[%s3954_s19 + $0x30] sm:$0xff]  ;;  %v450_v18 = vld [vmem:[%s3954_s19 + $0x38] sm:$0xff]  ;;  %vm3982_vm3 = vmand %vm628_vm0, %vm629_vm1  ;;  %s441_s27 = scalar_lea.vmem %s4397_s2, %s440_s20  ;;  %s2599_s15 = scalar_lea.sflag [#allocation5], %s3948_s11 }
  0x8f   : > { %3141 = vmatpush3.bf16.msra.mxu0 %v3348_v1  ;;  %v454_v19 = vpack.c.bf16 %v450_v18, %v449_v17  ;;  %v3355_v20 = vld [vmem:[#allocation9 + $0x178] sm:$0xff]   ;;  %v637_v22 = vld [vmem:[#allocation2 + $0x18] sm:$0x1]  ;;  %v663_v23 = vld [vmem:[#allocation2 + $0x1c] sm:$0x1]  ;;  %s3637_s28 = scalar_lea.vmem %s4343_s26, 1024 }
  0x90   : > { %3142 = vmatprep.subr.bf16.mxu0 %v3349_v2  ;;  %v638_v24 = vsel %vm3982_vm3, 0, %v637_v22  ;;  %vm3989_vm4 = vmand %vm628_vm0, %vm655_vm2  ;;  %v631_v27 = vld [vmem:[#allocation2 + $0x8] sm:$0x1]  ;;  %v657_v28 = vld [vmem:[#allocation2 + $0xc] sm:$0x1]  ;;  %p3638_p5 = scmp.ne.s32.totalorder %s4343_s26, %s3637_s28  ;;  %p4440_p3 = scmp.ne.s32.totalorder %s4424_s14, 0 }
  0x91   : > { %639 = vst [vmem:[#allocation2 + $0x18] sm:$0x1] %v638_v24  ;;  %v664_v26 = vsel %vm3989_vm4, 0, %v663_v23  ;;  %v3357_v29 = vld [vmem:[#allocation9 + $0x170] sm:$0xff]   ;;  %v632_v30 = vsel %vm3982_vm3, 0, %v631_v27  ;;  %v658_v31 = vsel %vm3989_vm4, 0, %v657_v28  ;;  %vm4045_vm6 = vmand %vm793_vm5, %vm655_vm2 }
  0x92   : > { %665 = vst [vmem:[#allocation2 + $0x1c] sm:$0x1] %v664_v26  ;;  %v3356_v32 = vld [vmem:[#allocation9 + $0x138] sm:$0xff]   ;;  %633 = vst [vmem:[#allocation2 + $0x8] sm:$0x1] %v632_v30  ;;  %v3360_v42 = vld [vmem:[#allocation9 + $0x168] sm:$0xff]   ;;  %p3639_p7 = pnand %p3638_p5, %p4440_p3 }
  0x93   : > { %3143 = vmatpush3.bf16.msra.mxu0 %v3349_v2  ;;  %659 = vst [vmem:[#allocation2 + $0xc] sm:$0x1] %v658_v31  ;;  %v640_v33 = vld [vmem:[#allocation2 + $0x20] sm:$0x1]  ;;  %v666_v34 = vld [vmem:[#allocation2 + $0x24] sm:$0x1]  ;;  %2970 = vmatprep.subr.bf16.mxu1 %v3356_v32 }
  0x94   : > { %3144 = vmatprep.subr.bf16.mxu0 %v3350_v3  ;;  %v3358_v35 = vld [vmem:[#allocation9 + $0xf8] sm:$0xff]   ;;  %v641_v36 = vsel %vm3982_vm3, 0, %v640_v33  ;;  %v667_v37 = vsel %vm3989_vm4, 0, %v666_v34  ;;  %v660_v39 = vld [vmem:[#allocation2 + $0x14] sm:$0x1]  ;;  %v3359_v43 = vld [vmem:[#allocation9 + $0x130] sm:$0xff]   ;;  %p3640_p9 = pneg %p3639_p7 }
  0x95   : > { %642 = vst [vmem:[#allocation2 + $0x20] sm:$0x1] %v641_v36  ;;  %668 = vst [vmem:[#allocation2 + $0x24] sm:$0x1] %v667_v37  ;;  %2971 = vmatpush3.bf16.msra.mxu1 %v3358_v35  ;;  %v634_v38 = vld [vmem:[#allocation2 + $0x10] sm:$0x1] }
  0x96   : > { %v635_v40 = vsel %vm3982_vm3, 0, %v634_v38  ;;  %v661_v41 = vsel %vm3989_vm4, 0, %v660_v39  ;;  %v643_v44 = vld [vmem:[#allocation2 + $0x28] sm:$0x1]  ;;  %v669_v45 = vld [vmem:[#allocation2 + $0x2c] sm:$0x1]  ;;  %2972 = vmatprep.subr.bf16.mxu1 %v3359_v43 }
  0x97   : > { %3145 = vmatpush3.bf16.msra.mxu0 %v3350_v3  ;;  %636 = vst [vmem:[#allocation2 + $0x10] sm:$0x1] %v635_v40  ;;  %662 = vst [vmem:[#allocation2 + $0x14] sm:$0x1] %v661_v41  ;;  %v3361_v46 = vld [vmem:[#allocation9 + $0xf0] sm:$0xff]   ;;  %v644_v51 = vsel %vm3982_vm3, 0, %v643_v44 }
  0x98   : > { %3146 = vmatprep.subr.bf16.mxu0 %v3351_v7  ;;  %v649_v47 = vld [vmem:[#allocation2 + $0x38] sm:$0x1]  ;;  %v675_v48 = vld [vmem:[#allocation2 + $0x3c] sm:$0x1]  ;;  %v670_v52 = vsel %vm3989_vm4, 0, %v669_v45  ;;  %v3366_v60 = vld [vmem:[#allocation9 + $0x158] sm:$0xff]  }
  0x99   : > { %v650_v49 = vsel %vm3982_vm3, 0, %v649_v47  ;;  %v676_v50 = vsel %vm3989_vm4, 0, %v675_v48  ;;  %2973 = vmatpush3.bf16.msra.mxu1 %v3361_v46  ;;  %645 = vst [vmem:[#allocation2 + $0x28] sm:$0x1] %v644_v51  ;;  %671 = vst [vmem:[#allocation2 + $0x2c] sm:$0x1] %v670_v52 }
  0x9a   : > { %651 = vst [vmem:[#allocation2 + $0x38] sm:$0x1] %v650_v49  ;;  %677 = vst [vmem:[#allocation2 + $0x3c] sm:$0x1] %v676_v50  ;;  %v3362_v53 = vld [vmem:[#allocation9 + $0x128] sm:$0xff]   ;;  %v3363_v54 = vld [vmem:[#allocation9 + $0x160] sm:$0xff]  }
  0x9b   : > { %3147 = vmatpush3.bf16.msra.mxu0 %v3351_v7  ;;  %v652_v55 = vld [vmem:[#allocation2 + $0x40] sm:$0x1]  ;;  %v678_v57 = vld [vmem:[#allocation2 + $0x44] sm:$0x1]  ;;  %2974 = vmatprep.subr.bf16.mxu1 %v3362_v53  ;;  %v646_v61 = vld [vmem:[#allocation2 + $0x30] sm:$0x1] }
  0x9c   : > { %3148 = vmatprep.subr.bf16.mxu0 %v3352_v8  ;;  %v653_v56 = vsel %vm3982_vm3, 0, %v652_v55  ;;  %v3364_v58 = vld [vmem:[#allocation9 + $0xe8] sm:$0xff]   ;;  %v679_v59 = vsel %vm3989_vm4, 0, %v678_v57  ;;  %v672_v62 = vld [vmem:[#allocation2 + $0x34] sm:$0x1]  ;;  %v647_v0 = vsel %vm3982_vm3, 0, %v646_v61 }
  0x9d   : > { %654 = vst [vmem:[#allocation2 + $0x40] sm:$0x1] %v653_v56  ;;  %680 = vst [vmem:[#allocation2 + $0x44] sm:$0x1] %v679_v59  ;;  %2975 = vmatpush3.bf16.msra.mxu1 %v3364_v58  ;;  %v3365_v63 = vld [vmem:[#allocation9 + $0x120] sm:$0xff]   ;;  %v673_v1 = vsel %vm3989_vm4, 0, %v672_v62 }
  0x9e   : > { %v3367_v2 = vld [vmem:[#allocation9 + $0xe0] sm:$0xff]   ;;  %648 = vst [vmem:[#allocation2 + $0x30] sm:$0x1] %v647_v0  ;;  %674 = vst [vmem:[#allocation2 + $0x34] sm:$0x1] %v673_v1  ;;  %2976 = vmatprep.subr.bf16.mxu1 %v3365_v63  ;;  %v3724_v3 = vmov 0  }
  0x9f   : > { %3149 = vmatpush3.bf16.msra.mxu0 %v3352_v8  ;;  %622 = vst [vmem:[#allocation2] sm:$0xf] %v3724_v3  ;;  %623 = vst [vmem:[#allocation2 + $0x4] sm:$0x1] %v3724_v3  ;;  %v3368_v4 = vld [vmem:[#allocation9 + $0x118] sm:$0xff]   ;;  %v3369_v5 = vld [vmem:[#allocation9 + $0x150] sm:$0xff]  }
  0xa0   : > { %3150 = vmatprep.subr.bf16.mxu0 %v3353_v9  ;;  %625 = vst [vmem:[#allocation2 + $0x48] sm:$0xf] %v3724_v3  ;;  %626 = vst [vmem:[#allocation2 + $0x4c] sm:$0x1] %v3724_v3  ;;  %v3370_v6 = vld [vmem:[#allocation9 + $0xd8] sm:$0xff]   ;;  %v3372_v7 = vld [vmem:[#allocation9 + $0x148] sm:$0xff]  }
  0xa1   : > { %2977 = vmatpush3.bf16.msra.mxu1 %v3367_v2  ;;  %v3371_v8 = vld [vmem:[#allocation9 + $0x110] sm:$0xff]   ;;  %v3375_v11 = vld [vmem:[#allocation9 + $0x140] sm:$0xff]   ;;  %v3376_v12 = vld [vmem:[#allocation9 + $0xc8] sm:$0xff]   ;;  %s3725_s13 = smov [#allocation12]  }
  0xa2   : > { %2978 = vmatprep.subr.bf16.mxu1 %v3368_v4  ;;  %v3377_v13 = vld [vmem:[#allocation9 + $0x100] sm:$0xff]   ;;  %v4023_v14 = vld [vmem:[#allocation9 + $0xb8] sm:$0xff]   ;;  %v4028_v17 = vld [vmem:[%s385_s29] ss:$0 sm:$0xff]  ;;  %s4350_s29 = scalar_lea.hbm %s4404_s9, %s2957_s4  ;;  %s3641_s20 = sshll.u32 %s3725_s13, 4  ;;  %s3642_s20 = int_to_ptr.vmem [resolvable:$false] %s3641_s20 }
  0xa3   : > { %3151 = vmatpush3.bf16.msra.mxu0 %v3353_v9  ;;  %v3373_v9 = vld [vmem:[#allocation9 + $0xd0] sm:$0xff]   ;;  %v807_v46 = vld [vmem:[#allocation2 + $0x18] sm:$0xf]  ;;  %v810_v47 = vld [vmem:[#allocation2 + $0x1c] sm:$0x1]  ;;  %s3643_s25 = scalar_lea.vmem %s3642_s20, 2048  ;;  %p3644_p2 = scmp.lt.s32.totalorder %s4343_s26, %s3642_s20 }
  0xa4   : > { %3152 = vmatprep.subr.bf16.mxu0 %v3354_v10  ;;  %v795_v57 = vld [vmem:[#allocation2 + $0x8] sm:$0xf]  ;;  %v798_v58 = vld [vmem:[#allocation2 + $0xc] sm:$0x1]  ;;  %p3645_p10 = scmp.lt.s32.totalorder %s3643_s25, %s3637_s28 }
  0xa5   : > { %2979 = vmatpush3.bf16.msra.mxu1 %v3370_v6 }
  0xa6   : > { %2980 = vmatprep.subr.bf16.mxu1 %v3371_v8  ;;  %p3646_p13 = por %p3645_p10, %p3644_p2 }
  0xa7   : > { %3153 = vmatpush3.bf16.msra.mxu0 %v3354_v10  ;;  %v3374_v10 = vld [vmem:[#allocation9 + $0x108] sm:$0xff]  }
  0xa8   : > { %3162 = vmatprep.subr.bf16.mxu0 %v3355_v20  ;;  %p3647_p4 = pnand %p3646_p13, %p3640_p9 }
  0xa9   : > { %2981 = vmatpush3.bf16.msra.mxu1 %v3373_v9 }
  0xaa   : > { %3155 = vmatmul.mubr.bf16.vlgmr.msra.gmra.mxu0 %v452_v15  ;;  %2982 = vmatprep.subr.bf16.mxu1 %v3374_v10  ;;  %v3381_v15 = vld [vmem:[#allocation9 + $0xc0] sm:$0xff]   ;;  %v813_v10 = vld [vmem:[#allocation2 + $0x20] sm:$0xf] }
  0xab   : > { %3158 = vmatprep.mubr.bf16.mxu0 %v453_v16  ;;  %3163 = vmatpush3.bf16.msra.mxu0 %v3355_v20  ;;  %v3386_v16 = vld [vmem:[#allocation9 + $0x78] sm:$0xff]  }
  0xac   : > { %3164 = vmatprep.subr.bf16.mxu0 %v3357_v29 }
  0xad   : > { %2983 = vmatpush3.bf16.msra.mxu1 %v3376_v12 }
  0xae   : > { %2984 = vmatprep.subr.bf16.mxu1 %v3377_v13 }
  0xaf   : > { %3165 = vmatpush3.bf16.msra.mxu0 %v3357_v29 }
  0xb0   : > { %3166 = vmatprep.subr.bf16.mxu0 %v3360_v42 }
  0xb1   : > { %2985 = vmatpush3.bf16.msra.mxu1 %v3381_v15 }
  0xb2   : > { %3159 = vmatmul.mubr.bf16.gmra.mxu0 %v454_v19  ;;  %3022 = vmatprep.subr.bf16.mxu1 %v3386_v16  ;;  %v4033_v19 = vld [vmem:[%s4401_s6] ss:$0 sm:$0xff] }
  0xb3   : > { %3167 = vmatpush3.bf16.msra.mxu0 %v3360_v42 }
  0xb4   : > { %3168 = vmatprep.subr.bf16.mxu0 %v3363_v54 }
  0xb7   : > { %3169 = vmatpush3.bf16.msra.mxu0 %v3363_v54 }
  0xb8   : > { %3170 = vmatprep.subr.bf16.mxu0 %v3366_v60 }
  0xbb   : > { %3171 = vmatpush3.bf16.msra.mxu0 %v3366_v60 }
  0xbc   : > { %3172 = vmatprep.subr.bf16.mxu0 %v3369_v5 }
  0xbf   : > { %3173 = vmatpush3.bf16.msra.mxu0 %v3369_v5 }
  0xc0   : > { %3174 = vmatprep.subr.bf16.mxu0 %v3372_v7 }
  0xc3   : > { %3175 = vmatpush3.bf16.msra.mxu0 %v3372_v7 }
  0xc4   : > { %3176 = vmatprep.subr.bf16.mxu0 %v3375_v11 }
  0xc7   : > { %3177 = vmatpush3.bf16.msra.mxu0 %v3375_v11  ;;  %v816_v11 = vld [vmem:[#allocation2 + $0x24] sm:$0x1] }
  0xc8   : > { %3186 = vmatprep.subr.bf16.mxu0 %v4023_v14 }
 0x16a   : > { %v3156_v18 = vpop.f32.mrf.mxu0 }
 0x16b   : > { %v593_v20 = vmul.f32 %v3156_v18, %v4028_v17 }
 0x16c   : > { %v553_v22 = vpop.f32.mrf.mxu0 }
 0x16d   : > { %v608_v23 = vadd.f32 %v4033_v19, %v593_v20  ;;  %v591_v24 = vmul.f32 %v4028_v17, %v553_v22  ;;  %v801_v22 = vld [vmem:[#allocation2 + $0x10] sm:$0xf] }
 0x16e   : > { %v3157_v25 = vpop.f32.mrf.mxu0 }
 0x16f   : > { %v616_v26 = vmax.f32 %v608_v23, 0.0  ;;  %v606_v27 = vadd.f32 %v4033_v19, %v591_v24  ;;  %v594_v28 = vmul.f32 %v3157_v25, %v4028_v17  ;;  %v804_v23 = vld [vmem:[#allocation2 + $0x14] sm:$0x1] }
 0x170   : > { %v556_v29 = vpop.f32.mrf.mxu0 }
 0x171   : > { %v2951_v30 = vpack.c.bf16 %v616_v26, %v616_v26  ;;  %v614_v31 = vmax.f32 %v606_v27, 0.0  ;;  %v609_v32 = vadd.f32 %v4033_v19, %v594_v28  ;;  %v592_v33 = vmul.f32 %v4028_v17, %v556_v29 }
 0x172   : > { %v3160_v34 = vpop.f32.mrf.mxu0 }
 0x173   : > { %v730_v35 = vshrl.u32 %v2951_v30, 16  ;;  %v2949_v36 = vpack.c.bf16 %v614_v31, %v614_v31  ;;  %v617_v37 = vmax.f32 %v609_v32, 0.0  ;;  %v607_v38 = vadd.f32 %v4033_v19, %v592_v33 }
 0x174   : > { %v597_v39 = vmul.f32 %v3160_v34, %v4028_v17  ;;  %v569_v40 = vpop.f32.mrf.mxu0  ;;  %v733_v42 = vshll.u32 %v2951_v30, 16 }
 0x175   : > { %v732_v41 = vrot.slane %v730_v35, 7  ;;  %v714_v43 = vshrl.u32 %v2949_v36, 16  ;;  %v2952_v44 = vpack.c.bf16 %v617_v37, %v617_v37  ;;  %v717_v48 = vshll.u32 %v2949_v36, 16  ;;  %v831_v37 = vld [vmem:[#allocation2 + $0x38] sm:$0xf] }
 0x176   : > { %v615_v49 = vmax.f32 %v607_v38, 0.0  ;;  %v612_v50 = vadd.f32 %v4033_v19, %v597_v39  ;;  %v595_v51 = vmul.f32 %v4028_v17, %v569_v40  ;;  %v3161_v52 = vpop.f32.mrf.mxu0  ;;  %v834_v38 = vld [vmem:[#allocation2 + $0x3c] sm:$0x1] }
 0x177   : > { %v735_v53 = vor.u32 %v733_v42, %v732_v41  ;;  %v736_v54 = vrot.slane %v732_v41, 4  ;;  %v716_v55 = vrot.slane %v714_v43, 7  ;;  %v738_v56 = vshrl.u32 %v2952_v44, 16  ;;  %v819_v43 = vld [vmem:[#allocation2 + $0x28] sm:$0xf] }
 0x178   : > { %v741_v59 = vshll.u32 %v2952_v44, 16  ;;  %v2950_v60 = vpack.c.bf16 %v615_v49, %v615_v49  ;;  %v620_v61 = vmax.f32 %v612_v50, 0.0  ;;  %v610_v62 = vadd.f32 %v4033_v19, %v595_v51  ;;  %v572_v7 = vpop.f32.mrf.mxu0  ;;  %v822_v44 = vld [vmem:[#allocation2 + $0x2c] sm:$0x1] }
 0x179   : > { %v808_v63 = vsel %vm4045_vm6, %v735_v53, %v807_v46  ;;  %v811_v0 = vsel %vm3982_vm3, %v736_v54, %v810_v47  ;;  %v719_v1 = vor.u32 %v717_v48, %v716_v55  ;;  %v720_v2 = vrot.slane %v716_v55, 4 }
 0x17a   : > { %809 = vst [vmem:[#allocation2 + $0x18] sm:$0xf] %v808_v63  ;;  %812 = vst [vmem:[#allocation2 + $0x1c] sm:$0x1] %v811_v0  ;;  %v740_v3 = vrot.slane %v738_v56, 7  ;;  %v722_v4 = vshrl.u32 %v2950_v60, 16  ;;  %v2955_v6 = vpack.c.bf16 %v620_v61, %v620_v61  ;;  %v598_v13 = vmul.f32 %v3161_v52, %v4028_v17 }
 0x17b   : > { %v725_v5 = vshll.u32 %v2950_v60, 16  ;;  %v796_v8 = vsel %vm4045_vm6, %v719_v1, %v795_v57  ;;  %v799_v9 = vsel %vm3982_vm3, %v720_v2, %v798_v58  ;;  %v618_v12 = vmax.f32 %v610_v62, 0.0  ;;  %v837_v62 = vld [vmem:[#allocation2 + $0x40] sm:$0xf]  ;;  %v840_v63 = vld [vmem:[#allocation2 + $0x44] sm:$0x1] }
 0x17c   : > { %797 = vst [vmem:[#allocation2 + $0x8] sm:$0xf] %v796_v8  ;;  %800 = vst [vmem:[#allocation2 + $0xc] sm:$0x1] %v799_v9  ;;  %v743_v15 = vor.u32 %v741_v59, %v740_v3  ;;  %v744_v16 = vrot.slane %v740_v3, 4  ;;  %v724_v18 = vrot.slane %v722_v4, 7  ;;  %v613_v26 = vadd.f32 %v4033_v19, %v598_v13 }
 0x17d   : > { %v762_v20 = vshrl.u32 %v2955_v6, 16  ;;  %v765_v24 = vshll.u32 %v2955_v6, 16  ;;  %v2953_v25 = vpack.c.bf16 %v618_v12, %v618_v12  ;;  %v596_v27 = vmul.f32 %v4028_v17, %v572_v7 }
 0x17e   : > { %v814_v28 = vsel %vm4045_vm6, %v743_v15, %v813_v10  ;;  %v817_v29 = vsel %vm3982_vm3, %v744_v16, %v816_v11  ;;  %v727_v30 = vor.u32 %v725_v5, %v724_v18  ;;  %v728_v31 = vrot.slane %v724_v18, 4  ;;  %v825_v5 = vld [vmem:[#allocation2 + $0x30] sm:$0xf] }
 0x17f   : > { %815 = vst [vmem:[#allocation2 + $0x20] sm:$0xf] %v814_v28  ;;  %818 = vst [vmem:[#allocation2 + $0x24] sm:$0x1] %v817_v29  ;;  %v764_v32 = vrot.slane %v762_v20, 7  ;;  %v746_v33 = vshrl.u32 %v2953_v25, 16  ;;  %v611_v39 = vadd.f32 %v4033_v19, %v596_v27 }
 0x180   : > { %v749_v34 = vshll.u32 %v2953_v25, 16  ;;  %v621_v35 = vmax.f32 %v613_v26, 0.0  ;;  %v802_v36 = vsel %vm4045_vm6, %v727_v30, %v801_v22  ;;  %v805_v17 = vsel %vm3982_vm3, %v728_v31, %v804_v23  ;;  %v828_v20 = vld [vmem:[#allocation2 + $0x34] sm:$0x1] }
 0x181   : > { %803 = vst [vmem:[#allocation2 + $0x10] sm:$0xf] %v802_v36  ;;  %806 = vst [vmem:[#allocation2 + $0x14] sm:$0x1] %v805_v17  ;;  %v767_v40 = vor.u32 %v765_v24, %v764_v32  ;;  %v768_v41 = vrot.slane %v764_v32, 4  ;;  %v748_v42 = vrot.slane %v746_v33, 7 }
 0x182   : > { %v2956_v46 = vpack.c.bf16 %v621_v35, %v621_v35  ;;  %v619_v47 = vmax.f32 %v611_v39, 0.0  ;;  %v1069_v48 = vld [vmem:[#allocation2 + $0x1c] sm:$0x1]  ;;  %v1077_v49 = vld [vmem:[#allocation2 + $0x18] sm:$0xe] }
 0x183   : > { %v832_v50 = vsel %vm4045_vm6, %v767_v40, %v831_v37  ;;  %v835_v51 = vsel %vm3982_vm3, %v768_v41, %v834_v38  ;;  %v751_v52 = vor.u32 %v749_v34, %v748_v42  ;;  %v752_v53 = vrot.slane %v748_v42, 4  ;;  %v1067_v19 = vld [vmem:[#allocation2 + $0xc] sm:$0x1]  ;;  %v4076_v54 = vld [vmem:[#allocation2 + $0x18] sm:$0xf] }
 0x184   : > { %833 = vst [vmem:[#allocation2 + $0x38] sm:$0xf] %v832_v50  ;;  %836 = vst [vmem:[#allocation2 + $0x3c] sm:$0x1] %v835_v51  ;;  %v770_v55 = vshrl.u32 %v2956_v46, 16  ;;  %v773_v56 = vshll.u32 %v2956_v46, 16  ;;  %v2954_v57 = vpack.c.bf16 %v619_v47, %v619_v47  ;;  %v2802_v8 = vcombine.low %v1077_v49, %v1069_v48 }
 0x185   : > { %v1075_v58 = vld [vmem:[#allocation2 + $0x8] sm:$0xe]  ;;  %v820_v60 = vsel %vm4045_vm6, %v751_v52, %v819_v43  ;;  %v823_v61 = vsel %vm3982_vm3, %v752_v53, %v822_v44  ;;  %v2794_v10 = vcombine.low %v4076_v54, %v1069_v48  ;;  %v4103_v38 = vld [vmem:[#allocation2 + $0x4] sm:$0x1]  ;;  %v859_v39 = vld [vmem:[#allocation2] sm:$0xe] }
 0x186   : > { %v4078_v59 = vld [vmem:[#allocation2 + $0x8] sm:$0xf]  ;;  %821 = vst [vmem:[#allocation2 + $0x28] sm:$0xf] %v820_v60  ;;  %824 = vst [vmem:[#allocation2 + $0x2c] sm:$0x1] %v823_v61  ;;  %v2800_v6 = vcombine.low %v1075_v58, %v1067_v19 }
 0x187   : > { %v4085_v0 = vcombine.low %v4078_v59, %v1067_v19  ;;  %v772_v1 = vrot.slane %v770_v55, 7  ;;  %v754_v2 = vshrl.u32 %v2954_v57, 16  ;;  %v757_v3 = vshll.u32 %v2954_v57, 16  ;;  %v1070_v4 = vld [vmem:[#allocation2 + $0x24] sm:$0x1] }
 0x188   : > { %v1078_v7 = vld [vmem:[#allocation2 + $0x20] sm:$0xe]  ;;  %v1068_v15 = vld [vmem:[#allocation2 + $0x14] sm:$0x1]  ;;  %v1076_v16 = vld [vmem:[#allocation2 + $0x10] sm:$0xe] }
 0x189   : > { %v4087_v9 = vld [vmem:[#allocation2 + $0x20] sm:$0xf]  ;;  %v775_v11 = vor.u32 %v773_v56, %v772_v1  ;;  %v776_v12 = vrot.slane %v772_v1, 4  ;;  %v756_v13 = vrot.slane %v754_v2, 7  ;;  %v2803_v18 = vcombine.low %v1078_v7, %v1070_v4  ;;  %v4090_v23 = vld [vmem:[#allocation2 + $0x10] sm:$0xf] }
 0x18a   : > { %v2801_v22 = vcombine.low %v1076_v16, %v1068_v15  ;;  %v1126_v24 = vshll.u32 %v4085_v0, 16  ;;  %v2795_v25 = vcombine.low %v4087_v9, %v1070_v4  ;;  %v1203_v30 = vrot.slane %v2800_v6, 1  ;;  %v3387_v44 = vld [vmem:[#allocation9 + $0xb0] sm:$0xff]   ;;  %v4106_v45 = vld [vmem:[#allocation2 + $0xc] sm:$0x1] }
 0x18b   : > { %v838_v26 = vsel %vm4045_vm6, %v775_v11, %v837_v62  ;;  %v841_v27 = vsel %vm3982_vm3, %v776_v12, %v840_v63  ;;  %v759_v28 = vor.u32 %v757_v3, %v756_v13  ;;  %v760_v29 = vrot.slane %v756_v13, 4  ;;  %v1081_v37 = vld [vmem:[#allocation2 + $0x38] sm:$0xe]  ;;  %v1073_v46 = vld [vmem:[#allocation2 + $0x3c] sm:$0x1]  ;;  %v3396_v12 = vld [vmem:[#allocation9 + $0x70] sm:$0xff]  }
 0x18c   : > { %839 = vst [vmem:[#allocation2 + $0x40] sm:$0xf] %v838_v26  ;;  %842 = vst [vmem:[#allocation2 + $0x44] sm:$0x1] %v841_v27  ;;  %v1204_v31 = vrot.slane %v2801_v22, 1  ;;  %v1206_v32 = vrot.slane %v2803_v18, 1  ;;  %v2793_v33 = vcombine.low %v4090_v23, %v1068_v15  ;;  %v2806_v55 = vcombine.low %v1081_v37, %v1073_v46 }
 0x18d   : > { %v826_v34 = vsel %vm4045_vm6, %v759_v28, %v825_v5  ;;  %v829_v35 = vsel %vm3982_vm3, %v760_v29, %v828_v20  ;;  %v1205_v36 = vrot.slane %v2802_v8, 1  ;;  %v1140_v17 = vshll.u32 %v2794_v10, 16  ;;  %v1071_v49 = vld [vmem:[#allocation2 + $0x2c] sm:$0x1]  ;;  %v1079_v50 = vld [vmem:[#allocation2 + $0x28] sm:$0xe] }
 0x18e   : > { %827 = vst [vmem:[#allocation2 + $0x30] sm:$0xf] %v826_v34  ;;  %830 = vst [vmem:[#allocation2 + $0x34] sm:$0x1] %v829_v35  ;;  %v2810_v40 = vcombine.low %v1203_v30, %v1204_v31  ;;  %v1124_v41 = vshrl.u32 %v4085_v0, 16  ;;  %v1128_v42 = vrot.slane %v1126_v24, 1  ;;  %v2804_v19 = vcombine.low %v1079_v50, %v1071_v49 }
 0x18f   : > { %v1133_v43 = vshll.u32 %v2793_v33, 16  ;;  %v2813_v47 = vcombine.low %v1205_v36, %v1206_v32  ;;  %v1142_v21 = vrot.slane %v1140_v17, 1  ;;  %v1147_v48 = vshll.u32 %v2795_v25, 16  ;;  %v4108_v53 = vld [vmem:[#allocation2 + $0x28] sm:$0xf]  ;;  %v3397_v63 = vld [vmem:[#allocation9 + $0xa8] sm:$0xff]  }
 0x190   : > { %3178 = vmatprep.mubr.bf16.mxu0 %v2810_v40  ;;  %v1131_v51 = vshrl.u32 %v2793_v33, 16  ;;  %v860_v56 = vld [vmem:[#allocation2 + $0x8] sm:$0xe]  ;;  %v1138_v57 = vshrl.u32 %v2794_v10, 16  ;;  %v1145_v58 = vshrl.u32 %v2795_v25, 16  ;;  %v1129_v61 = vor.u32 %v1128_v42, %v1124_v41  ;;  %v3408_v37 = vld [vmem:[#allocation9 + $0x68] sm:$0xff]  }
 0x191   : > { %v1135_v52 = vrot.slane %v1133_v43, 1  ;;  %3179 = vmatmul.mubr.bf16.vlgmr.msra.gmra.mxu0 %v2813_v47  ;;  %v1149_v60 = vrot.slane %v1147_v48, 1  ;;  %v4111_v0 = vld [vmem:[#allocation2 + $0x38] sm:$0xf]  ;;  %v2784_v1 = vcombine.low %v859_v39, %v4103_v38  ;;  %v2796_v4 = vcombine.low %v4108_v53, %v1071_v49  ;;  %v3402_v32 = vld [vmem:[#allocation9 + $0x30] sm:$0xff]   ;;  %v3413_v47 = vld [vmem:[#allocation9 + $0x98] sm:$0xff]  }
 0x192   : > { %3187 = vmatpush3.bf16.msra.mxu0 %v4023_v14  ;;  %v1143_v2 = vor.u32 %v1142_v21, %v1138_v57  ;;  %v2785_v8 = vcombine.low %v860_v56, %v4106_v45  ;;  %v3389_v14 = vld [vmem:[#allocation9 + $0x38] sm:$0xff]   ;;  %v1207_v11 = vrot.slane %v2804_v19, 1  ;;  %v1209_v15 = vrot.slane %v2806_v55, 1  ;;  %v4129_v17 = vld [vmem:[#allocation2] sm:$0xf]  ;;  %v3412_v55 = vld [vmem:[#allocation9 + $0x60] sm:$0xff]  }
 0x193   : > { %v1136_v62 = vor.u32 %v1135_v52, %v1131_v51  ;;  %3188 = vmatprep.subr.bf16.mxu0 %v3387_v44  ;;  %v1150_v3 = vor.u32 %v1149_v60, %v1145_v58  ;;  %v4115_v5 = vld [vmem:[#allocation2 + $0x40] sm:$0xf]  ;;  %v1074_v6 = vld [vmem:[#allocation2 + $0x44] sm:$0x1]  ;;  %v2808_v16 = vcombine.low %v4078_v59, %v4090_v23  ;;  %v4123_v24 = vcombine.low %v4111_v0, %v1073_v46  ;;  %v3409_v23 = vld [vmem:[#allocation9 + $0xa0] sm:$0xff]  }
 0x194   : > { %v1082_v7 = vld [vmem:[#allocation2 + $0x40] sm:$0xe]  ;;  %v4126_v25 = vcombine.low %v4115_v5, %v1074_v6  ;;  %v987_v59 = vrot.slane %v2784_v1, 1  ;;  %v1154_v30 = vshll.u32 %v2796_v4, 16  ;;  %v988_v33 = vrot.slane %v2785_v8, 1 }
 0x195   : > { %v2809_v10 = vcombine.low %v1129_v61, %v1136_v62  ;;  %v2807_v13 = vcombine.low %v1082_v7, %v1074_v6  ;;  %v4120_v18 = vld [vmem:[#allocation2 + $0x30] sm:$0xf]  ;;  %v1072_v20 = vld [vmem:[#allocation2 + $0x34] sm:$0x1]  ;;  %v2812_v26 = vcombine.low %v1143_v2, %v1150_v3  ;;  %v1152_v34 = vshrl.u32 %v2796_v4, 16  ;;  %v3411_v48 = vld [vmem:[#allocation9 + $0x28] sm:$0xff]  }
 0x196   : > { %v1080_v22 = vld [vmem:[#allocation2 + $0x30] sm:$0xe]  ;;  %3189 = vmatpush3.bf16.msra.mxu0 %v3387_v44  ;;  %v2797_v27 = vcombine.low %v4120_v18, %v1072_v20  ;;  %v1156_v39 = vrot.slane %v1154_v30, 1  ;;  %v4131_v42 = vld [vmem:[#allocation2 + $0x8] sm:$0xf]  ;;  %v1168_v44 = vshll.u32 %v4123_v24, 16  ;;  %v2846_v21 = vcombine.low %v987_v59, %v988_v33 }
 0x197   : > { %1476 = vmatprep.mubr.bf16.mxu1 %v2809_v10  ;;  %v2805_v28 = vcombine.low %v1080_v22, %v1072_v20  ;;  %v1210_v29 = vrot.slane %v2807_v13, 1  ;;  %3190 = vmatprep.subr.bf16.mxu0 %v3397_v63  ;;  %v1175_v46 = vshll.u32 %v4126_v25, 16  ;;  %v4137_v51 = vcombine.low %v4129_v17, %v4103_v38  ;;  %v3416_v38 = vld [vmem:[#allocation9 + $0x90] sm:$0xff]   ;;  %v3415_v62 = vld [vmem:[#allocation9 + $0x58] sm:$0xff]   ;;  %v3420_v3 = vld [vmem:[#allocation9 + $0x88] sm:$0xff]  }
 0x198   : > { %1477 = vmatmul.mubr.bf16.vlgmr.msra.gmra.mxu1 %v2808_v16  ;;  %v1161_v35 = vshll.u32 %v2797_v27, 16  ;;  %v1159_v40 = vshrl.u32 %v2797_v27, 16  ;;  %v1157_v49 = vor.u32 %v1156_v39, %v1152_v34  ;;  %v4141_v52 = vcombine.low %v4131_v42, %v4106_v45  ;;  %v3414_v45 = vld [vmem:[#allocation9 + $0x20] sm:$0xff]   ;;  %v3419_v7 = vld [vmem:[#allocation9 + $0x50] sm:$0xff]   ;;  %v854_v10 = vld [vmem:[#allocation2 + $0x1c] sm:$0x1] }
 0x199   : > { %3023 = vmatpush3.bf16.msra.mxu1 %v3389_v14  ;;  %1484 = vmatprep.mubr.bf16.mxu1 %v2812_v26  ;;  %v1208_v31 = vrot.slane %v2805_v28, 1  ;;  %v2819_v36 = vcombine.low %v1209_v15, %v1210_v29  ;;  %v2811_v19 = vcombine.low %v4076_v54, %v4087_v9  ;;  %v1166_v56 = vshrl.u32 %v4123_v24, 16  ;;  %v3418_v54 = vld [vmem:[#allocation9 + $0x18] sm:$0xff]   ;;  %v853_v4 = vld [vmem:[#allocation2 + $0x14] sm:$0x1]  ;;  %v3422_v30 = vld [vmem:[#allocation9 + $0x48] sm:$0xff]  }
 0x19a   : > { %3024 = vmatprep.subr.bf16.mxu1 %v3396_v12  ;;  %3191 = vmatpush3.bf16.msra.mxu0 %v3397_v63  ;;  %v1163_v43 = vrot.slane %v1161_v35, 1  ;;  %v1170_v58 = vrot.slane %v1168_v44, 1  ;;  %v1173_v60 = vshrl.u32 %v4126_v25, 16  ;;  %v1177_v61 = vrot.slane %v1175_v46, 1  ;;  %v4149_v6 = vld [vmem:[#allocation2 + $0x10] sm:$0xf] }
 0x19b   : > { %v2816_v41 = vcombine.low %v1207_v11, %v1208_v31  ;;  %3192 = vmatprep.subr.bf16.mxu0 %v3409_v23  ;;  %v910_v1 = vshll.u32 %v4137_v51, 16  ;;  %v917_v2 = vshll.u32 %v4141_v52, 16  ;;  %v908_v8 = vshrl.u32 %v4137_v51, 16  ;;  %v861_v14 = vld [vmem:[#allocation2 + $0x10] sm:$0xe] }
 0x19c   : > { %v1164_v50 = vor.u32 %v1163_v43, %v1159_v40  ;;  %v1171_v9 = vor.u32 %v1170_v58, %v1166_v56  ;;  %v1178_v63 = vor.u32 %v1177_v61, %v1173_v60  ;;  %v2814_v11 = vcombine.low %v4108_v53, %v4120_v18  ;;  %v856_v12 = vld [vmem:[#allocation2 + $0x2c] sm:$0x1]  ;;  %v864_v13 = vld [vmem:[#allocation2 + $0x28] sm:$0xe]  ;;  %v4154_v15 = vld [vmem:[#allocation2 + $0x18] sm:$0xf] }
 0x19d   : > { %3182 = vmatprep.mubr.bf16.mxu0 %v2816_v41  ;;  %3025 = vmatpush3.bf16.msra.mxu1 %v3402_v32  ;;  %v912_v20 = vrot.slane %v910_v1, 1  ;;  %v919_v22 = vrot.slane %v917_v2, 1  ;;  %v862_v24 = vld [vmem:[#allocation2 + $0x18] sm:$0xe]  ;;  %v4157_v25 = vcombine.low %v4149_v6, %v853_v4  ;;  %v2786_v27 = vcombine.low %v861_v14, %v853_v4  ;;  %v855_v28 = vld [vmem:[#allocation2 + $0x24] sm:$0x1] }
 0x19e   : > { %3183 = vmatmul.mubr.bf16.gmra.mxu0 %v2819_v36  ;;  %3026 = vmatprep.subr.bf16.mxu1 %v3408_v37  ;;  %v2815_v57 = vcombine.low %v1157_v49, %v1164_v50  ;;  %v2818_v16 = vcombine.low %v1171_v9, %v1178_v63  ;;  %v3423_v26 = vld [vmem:[#allocation9 + $0x80] sm:$0xff]   ;;  %v863_v29 = vld [vmem:[#allocation2 + $0x20] sm:$0xe]  ;;  %v915_v18 = vshrl.u32 %v4141_v52, 16  ;;  %v2789_v59 = vcombine.low %v864_v13, %v856_v12  ;;  %v3429_v40 = vld [vmem:[#allocation9 + $0x238] sm:$0xff]  }
 0x19f   : > { %3202 = vmatprep.mubr.bf16.mxu0 %v2846_v21  ;;  %3193 = vmatpush3.bf16.msra.mxu0 %v3409_v23  ;;  %v3421_v53 = vld [vmem:[#allocation9 + $0x10] sm:$0xff]   ;;  %v4161_v23 = vcombine.low %v4154_v15, %v854_v10  ;;  %v2787_v31 = vcombine.low %v862_v24, %v854_v10  ;;  %v3425_v32 = vld [vmem:[#allocation9 + $0x8] sm:$0xff]   ;;  %v913_v33 = vor.u32 %v912_v20, %v908_v8  ;;  %v924_v37 = vshll.u32 %v4157_v25, 16  ;;  %v857_v43 = vld [vmem:[#allocation2 + $0x34] sm:$0x1] }
 0x1a0   : > { %1485 = vmatmul.mubr.bf16.gmra.mxu1 %v2811_v19  ;;  %3194 = vmatprep.subr.bf16.mxu0 %v3413_v47  ;;  %v920_v34 = vor.u32 %v919_v22, %v915_v18  ;;  %v4163_v35 = vld [vmem:[#allocation2 + $0x20] sm:$0xf]  ;;  %v2788_v36 = vcombine.low %v863_v29, %v855_v28  ;;  %v989_v39 = vrot.slane %v2786_v27, 1  ;;  %v4166_v41 = vld [vmem:[#allocation2 + $0x28] sm:$0xf]  ;;  %v992_v44 = vrot.slane %v2789_v59, 1 }
 0x1a1   : > { %3027 = vmatpush3.bf16.msra.mxu1 %v3411_v48  ;;  %1492 = vmatprep.mubr.bf16.mxu1 %v2815_v57  ;;  %v931_v46 = vshll.u32 %v4161_v23, 16  ;;  %v866_v21 = vld [vmem:[#allocation2 + $0x38] sm:$0xe]  ;;  %v2817_v48 = vcombine.low %v4111_v0, %v4115_v5  ;;  %v990_v50 = vrot.slane %v2787_v31, 1  ;;  %v4172_v51 = vcombine.low %v4163_v35, %v855_v28  ;;  %v4174_v52 = vld [vmem:[#allocation2 + $0x14] sm:$0x1] }
 0x1a2   : > { %3028 = vmatprep.subr.bf16.mxu1 %v3412_v55  ;;  %v3426_v49 = vld [vmem:[#allocation9 + $0x40] sm:$0xff]   ;;  %v2845_v55 = vcombine.low %v913_v33, %v920_v34  ;;  %v4177_v56 = vcombine.low %v4166_v41, %v856_v12  ;;  %v991_v57 = vrot.slane %v2788_v36, 1  ;;  %v926_v58 = vrot.slane %v924_v37, 1  ;;  %v858_v60 = vld [vmem:[#allocation2 + $0x3c] sm:$0x1]  ;;  %v3436_v0 = vld [vmem:[#allocation9 + $0x230] sm:$0xff]  }
 0x1a3   : > { %3195 = vmatpush3.bf16.msra.mxu0 %v3413_v47  ;;  %v865_v47 = vld [vmem:[#allocation2 + $0x30] sm:$0xe]  ;;  %v2849_v61 = vcombine.low %v989_v39, %v990_v50  ;;  %v922_v63 = vshrl.u32 %v4157_v25, 16  ;;  %v933_v1 = vrot.slane %v931_v46, 1  ;;  %v3445_v13 = vld [vmem:[#allocation9 + $0x228] sm:$0xff]   ;;  %v938_v24 = vshll.u32 %v4172_v51, 16 }
 0x1a4   : > { %3196 = vmatprep.subr.bf16.mxu0 %v3416_v38  ;;  %v1889_v19 = vld [vmem:[#allocation2 + $0x10] sm:$0xe]  ;;  %v2790_v5 = vcombine.low %v865_v47, %v857_v43  ;;  %v2852_v9 = vcombine.low %v991_v57, %v992_v44  ;;  %v945_v14 = vshll.u32 %v4177_v56, 16  ;;  %v2844_v25 = vcombine.low %v4129_v17, %v4131_v42  ;;  %v3444_v28 = vld [vmem:[#allocation9 + $0x1f0] sm:$0xff]   ;;  %v3452_v33 = vld [vmem:[#allocation9 + $0x1e8] sm:$0xff]  }
 0x1a5   : > { %3029 = vmatpush3.bf16.msra.mxu1 %v3414_v45  ;;  %v4179_v45 = vld [vmem:[#allocation2 + $0x1c] sm:$0x1]  ;;  %v2888_v2 = vcombine.low %v1889_v19, %v4174_v52  ;;  %v927_v4 = vor.u32 %v926_v58, %v922_v63  ;;  %v4184_v8 = vld [vmem:[#allocation2 + $0x30] sm:$0xf]  ;;  %v943_v18 = vshrl.u32 %v4177_v56, 16  ;;  %v3446_v42 = vld [vmem:[#allocation9 + $0x1b0] sm:$0xff]  }
 0x1a6   : > { %3030 = vmatprep.subr.bf16.mxu1 %v3415_v62  ;;  %v1890_v62 = vld [vmem:[#allocation2 + $0x18] sm:$0xe]  ;;  %v2782_v27 = vcombine.low %v4184_v8, %v857_v43  ;;  %v947_v59 = vrot.slane %v945_v14, 1  ;;  %v936_v34 = vshrl.u32 %v4172_v51, 16  ;;  %v4197_v39 = vld [vmem:[#allocation2 + $0x10] sm:$0xf] }
 0x1a7   : > { %3197 = vmatpush3.bf16.msra.mxu0 %v3416_v38  ;;  %v2791_v38 = vcombine.low %v866_v21, %v858_v60  ;;  %v2889_v10 = vcombine.low %v1890_v62, %v4179_v45  ;;  %v2017_v22 = vrot.slane %v2888_v2, 1  ;;  %v3455_v43 = vld [vmem:[#allocation9 + $0x1a8] sm:$0xff]   ;;  %v2847_v21 = vcombine.low %v4149_v6, %v4154_v15  ;;  %v3460_v19 = vld [vmem:[#allocation9 + $0x210] sm:$0xff]   ;;  %v3458_v56 = vld [vmem:[#allocation9 + $0x1a0] sm:$0xff]  }
 0x1a8   : > { %1493 = vmatmul.mubr.bf16.gmra.mxu1 %v2814_v11  ;;  %3198 = vmatprep.subr.bf16.mxu0 %v3420_v3  ;;  %v993_v11 = vrot.slane %v2790_v5, 1  ;;  %v948_v36 = vor.u32 %v947_v59, %v943_v18  ;;  %v952_v37 = vshll.u32 %v2782_v27, 16  ;;  %v4199_v47 = vld [vmem:[#allocation2 + $0x18] sm:$0xf]  ;;  %v950_v57 = vshrl.u32 %v2782_v27, 16  ;;  %v3459_v6 = vld [vmem:[#allocation9 + $0x1d8] sm:$0xff]  }
 0x1a9   : > { %3031 = vmatpush3.bf16.msra.mxu1 %v3418_v54  ;;  %1500 = vmatprep.mubr.bf16.mxu1 %v2818_v16  ;;  %v3430_v54 = vld [vmem:[#allocation9] sm:$0xff]   ;;  %v994_v12 = vrot.slane %v2791_v38, 1  ;;  %v3437_v16 = vld [vmem:[#allocation9 + $0x1b8] sm:$0xff]   ;;  %v1883_v5 = vld [vmem:[#allocation2 + $0x24] sm:$0x1]  ;;  %v2850_v2 = vcombine.low %v4163_v35, %v4166_v41 }
 0x1aa   : > { %3032 = vmatprep.subr.bf16.mxu1 %v3419_v7  ;;  %v929_v7 = vshrl.u32 %v4161_v23, 16  ;;  %v954_v51 = vrot.slane %v952_v37, 1  ;;  %v3462_v15 = vld [vmem:[#allocation9 + $0x198] sm:$0xff]  }
 0x1ab   : > { %3199 = vmatpush3.bf16.msra.mxu0 %v3420_v3  ;;  %v3435_v3 = vld [vmem:[#allocation9 + $0x1f8] sm:$0xff]   ;;  %v2855_v23 = vcombine.low %v993_v11, %v994_v12  ;;  %v1891_v11 = vld [vmem:[#allocation2 + $0x20] sm:$0xe] }
 0x1ac   : > { %3200 = vmatprep.subr.bf16.mxu0 %v3423_v26  ;;  %v934_v20 = vor.u32 %v933_v1, %v929_v7  ;;  %v1884_v38 = vld [vmem:[#allocation2 + $0x2c] sm:$0x1]  ;;  %v4207_v62 = vld [vmem:[#allocation2 + $0x28] sm:$0xf]  ;;  %v1885_v1 = vld [vmem:[#allocation2 + $0x34] sm:$0x1] }
 0x1ad   : > { %3033 = vmatpush3.bf16.msra.mxu1 %v3421_v53  ;;  %v2018_v53 = vrot.slane %v2889_v10, 1  ;;  %v1892_v63 = vld [vmem:[#allocation2 + $0x28] sm:$0xe]  ;;  %v4211_v7 = vld [vmem:[#allocation2 + $0x20] sm:$0xf]  ;;  %v2883_v12 = vcombine.low %v4207_v62, %v1884_v38 }
 0x1ae   : > { %3034 = vmatprep.subr.bf16.mxu1 %v3422_v30  ;;  %v2848_v29 = vcombine.low %v927_v4, %v934_v20  ;;  %v3453_v30 = vld [vmem:[#allocation9 + $0x220] sm:$0xff]   ;;  %v2891_v20 = vcombine.low %v1892_v63, %v1884_v38  ;;  %v2882_v27 = vcombine.low %v4211_v7, %v1883_v5 }
 0x1af   : > { %3201 = vmatpush3.bf16.msra.mxu0 %v3423_v26  ;;  %v4191_v26 = vld [vmem:[#allocation2 + $0x38] sm:$0xf]  ;;  %v2898_v31 = vcombine.low %v2017_v22, %v2018_v53  ;;  %v1886_v22 = vld [vmem:[#allocation2 + $0x3c] sm:$0x1]  ;;  %v1961_v59 = vshll.u32 %v2883_v12, 16 }
 0x1b0   : > { %1501 = vmatmul.mubr.bf16.gmra.mxu1 %v2817_v48  ;;  %3210 = vmatprep.subr.bf16.mxu0 %v3429_v40  ;;  %v2783_v17 = vcombine.low %v4191_v26, %v858_v60  ;;  %v3456_v48 = vld [vmem:[#allocation9 + $0x1e0] sm:$0xff]   ;;  %v2853_v37 = vcombine.low %v4184_v8, %v4191_v26 }
 0x1b1   : > { %3035 = vmatpush3.bf16.msra.mxu1 %v3425_v32  ;;  %1774 = vmatprep.mubr.bf16.mxu1 %v2845_v55  ;;  %v940_v32 = vrot.slane %v938_v24, 1  ;;  %v2881_v55 = vcombine.low %v4199_v47, %v4179_v45  ;;  %v1894_v4 = vld [vmem:[#allocation2 + $0x38] sm:$0xe]  ;;  %v3465_v24 = vld [vmem:[#allocation9 + $0x190] sm:$0xff]  }
 0x1b2   : > { %3036 = vmatprep.subr.bf16.mxu1 %v3426_v49  ;;  %3203 = vmatmul.mubr.bf16.vlgmr.msra.gmra.mxu0 %v2849_v61  ;;  %v959_v46 = vshll.u32 %v2783_v17, 16  ;;  %v2880_v49 = vcombine.low %v4197_v39, %v4174_v52  ;;  %v957_v58 = vshrl.u32 %v2783_v17, 16  ;;  %v955_v52 = vor.u32 %v954_v51, %v950_v57  ;;  %v3464_v61 = vld [vmem:[#allocation9 + $0x208] sm:$0xff]   ;;  %v1896_v17 = vld [vmem:[#allocation2 + $0x48] sm:$0xe]  ;;  %v3473_v57 = vld [vmem:[#allocation9 + $0x180] sm:$0xff]  }
 0x1b3   : > { %3206 = vmatprep.mubr.bf16.mxu0 %v2852_v9  ;;  %3211 = vmatpush3.bf16.msra.mxu0 %v3429_v40  ;;  %v3457_v40 = vld [vmem:[#allocation9 + $0x218] sm:$0xff]   ;;  %v941_v44 = vor.u32 %v940_v32, %v936_v34  ;;  %v1947_v9 = vshll.u32 %v2881_v55, 16  ;;  %v1945_v18 = vshrl.u32 %v2881_v55, 16  ;;  %v1954_v34 = vshll.u32 %v2882_v27, 16 }
 0x1b4   : > { %3212 = vmatprep.subr.bf16.mxu0 %v3436_v0  ;;  %v961_v60 = vrot.slane %v959_v46, 1  ;;  %v1888_v51 = vld [vmem:[#allocation2 + $0x4c] sm:$0x1] }
 0x1b5   : > { %3037 = vmatpush3.bf16.msra.mxu1 %v3430_v54  ;;  %v2851_v50 = vcombine.low %v941_v44, %v948_v36  ;;  %v3463_v54 = vld [vmem:[#allocation9 + $0x1d0] sm:$0xff]   ;;  %v1949_v35 = vrot.slane %v1947_v9, 1  ;;  %v1878_v44 = vld [vmem:[#allocation2 + $0x38] sm:$0xf]  ;;  %v1956_v26 = vrot.slane %v1954_v34, 1 }
 0x1b6   : > { %3074 = vmatprep.subr.bf16.mxu1 %v3435_v3  ;;  %v962_v45 = vor.u32 %v961_v60, %v957_v58  ;;  %v1893_v3 = vld [vmem:[#allocation2 + $0x30] sm:$0xe]  ;;  %v1895_v36 = vld [vmem:[#allocation2 + $0x40] sm:$0xe]  ;;  %v2885_v58 = vcombine.low %v1878_v44, %v1886_v22  ;;  %v1952_v60 = vshrl.u32 %v2882_v27, 16 }
 0x1b7   : > { %3213 = vmatpush3.bf16.msra.mxu0 %v3436_v0  ;;  %v1940_v0 = vshll.u32 %v2880_v49, 16  ;;  %v2892_v41 = vcombine.low %v1893_v3, %v1885_v1 }
 0x1b8   : > { %1775 = vmatmul.mubr.bf16.vlgmr.msra.gmra.mxu1 %v2844_v25  ;;  %3214 = vmatprep.subr.bf16.mxu0 %v3445_v13  ;;  %v2854_v10 = vcombine.low %v955_v52, %v962_v45  ;;  %v2893_v25 = vcombine.low %v1894_v4, %v1886_v22  ;;  %v1879_v52 = vld [vmem:[#allocation2 + $0x40] sm:$0xf]  ;;  %v1957_v38 = vor.u32 %v1956_v26, %v1952_v60  ;;  %v1975_v45 = vshll.u32 %v2885_v58, 16 }
 0x1b9   : > { %3075 = vmatpush3.bf16.msra.mxu1 %v3437_v16  ;;  %1782 = vmatprep.mubr.bf16.mxu1 %v2848_v29  ;;  %v1942_v14 = vrot.slane %v1940_v0, 1  ;;  %v1938_v16 = vshrl.u32 %v2880_v49, 16  ;;  %v2890_v29 = vcombine.low %v1891_v11, %v1883_v5  ;;  %v2021_v32 = vrot.slane %v2892_v41, 1 }
 0x1ba   : > { %3207 = vmatmul.mubr.bf16.gmra.mxu0 %v2855_v23  ;;  %3076 = vmatprep.subr.bf16.mxu1 %v3444_v28  ;;  %v3466_v28 = vld [vmem:[#allocation9 + $0x1c8] sm:$0xff]   ;;  %v2020_v23 = vrot.slane %v2891_v20, 1  ;;  %v1963_v49 = vrot.slane %v1961_v59, 1  ;;  %v2899_v20 = vcombine.low %v4211_v7, %v4207_v62  ;;  %v3488_v62 = vld [vmem:[#allocation11 + $0x30] sm:$0xff]   ;;  %v3491_v59 = vld [vmem:[#allocation11 + $0x18] sm:$0xff]  }
 0x1bb   : > { %3215 = vmatpush3.bf16.msra.mxu0 %v3445_v13  ;;  %3226 = vmatprep.mubr.bf16.mxu0 %v2898_v31  ;;  %v3467_v13 = vld [vmem:[#allocation9 + $0x200] sm:$0xff]   ;;  %v1943_v53 = vor.u32 %v1942_v14, %v1938_v16  ;;  %v1950_v31 = vor.u32 %v1949_v35, %v1945_v18  ;;  %v1977_v14 = vrot.slane %v1975_v45, 1  ;;  %v3489_v7 = vld [vmem:[#allocation11 + $0x28] sm:$0xff]  }
 0x1bc   : > { %3216 = vmatprep.subr.bf16.mxu0 %v3453_v30  ;;  %v3490_v18 = vld [vmem:[#allocation11 + $0x20] sm:$0xff]  }
 0x1bd   : > { %3077 = vmatpush3.bf16.msra.mxu1 %v3446_v42  ;;  %v3469_v42 = vld [vmem:[#allocation9 + $0x188] sm:$0xff]   ;;  %v2897_v46 = vcombine.low %v1943_v53, %v1950_v31  ;;  %v3487_v53 = vld [vmem:[#allocation11 + $0x38] sm:$0xff]  }
 0x1be   : > { %3078 = vmatprep.subr.bf16.mxu1 %v3452_v33  ;;  %v2022_v33 = vrot.slane %v2893_v25, 1 }
 0x1bf   : > { %3217 = vmatpush3.bf16.msra.mxu0 %v3453_v30  ;;  %v4215_v30 = vld [vmem:[#allocation2 + $0x30] sm:$0xf] }
 0x1c0   : > { %1783 = vmatmul.mubr.bf16.gmra.mxu1 %v2847_v21  ;;  %3218 = vmatprep.subr.bf16.mxu0 %v3457_v40  ;;  %v2884_v21 = vcombine.low %v4215_v30, %v1885_v1  ;;  %v2904_v8 = vcombine.low %v2021_v32, %v2022_v33  ;;  %v2902_v27 = vcombine.low %v4215_v30, %v1878_v44  ;;  %v3493_v30 = vld [vmem:[#allocation11 + $0x8] sm:$0xff]  }
 0x1c1   : > { %3079 = vmatpush3.bf16.msra.mxu1 %v3455_v43  ;;  %1790 = vmatprep.mubr.bf16.mxu1 %v2851_v50  ;;  %v2019_v43 = vrot.slane %v2890_v29, 1  ;;  %v1887_v50 = vld [vmem:[#allocation2 + $0x44] sm:$0x1] }
 0x1c2   : > { %3080 = vmatprep.subr.bf16.mxu1 %v3456_v48  ;;  %v1959_v48 = vshrl.u32 %v2883_v12, 16  ;;  %v2894_v55 = vcombine.low %v1895_v36, %v1887_v50  ;;  %v2886_v63 = vcombine.low %v1879_v52, %v1887_v50  ;;  %v1966_v4 = vshrl.u32 %v2884_v21, 16 }
 0x1c3   : > { %3219 = vmatpush3.bf16.msra.mxu0 %v3457_v40  ;;  %v3470_v40 = vld [vmem:[#allocation9 + $0x1c0] sm:$0xff]  }
 0x1c4   : > { %3220 = vmatprep.subr.bf16.mxu0 %v3460_v19  ;;  %v2023_v0 = vrot.slane %v2894_v55, 1  ;;  %v1982_v12 = vshll.u32 %v2886_v63, 16 }
 0x1c5   : > { %3081 = vmatpush3.bf16.msra.mxu1 %v3458_v56  ;;  %v2895_v56 = vcombine.low %v1896_v17, %v1888_v51  ;;  %v3494_v17 = vld [vmem:[#allocation11] sm:$0xff]  }
 0x1c6   : > { %3082 = vmatprep.subr.bf16.mxu1 %v3459_v6  ;;  %v1964_v6 = vor.u32 %v1963_v49, %v1959_v48 }
 0x1c7   : > { %3221 = vmatpush3.bf16.msra.mxu0 %v3460_v19  ;;  %v2901_v19 = vcombine.low %v2019_v43, %v2020_v23  ;;  %v2024_v5 = vrot.slane %v2895_v56, 1  ;;  %v3492_v23 = vld [vmem:[#allocation11 + $0x10] sm:$0xff]  }
 0x1c8   : > { %1791 = vmatmul.mubr.bf16.gmra.mxu1 %v2850_v2  ;;  %3222 = vmatprep.subr.bf16.mxu0 %v3464_v61  ;;  %v2900_v9 = vcombine.low %v1957_v38, %v1964_v6 }
 0x1c9   : > { %3083 = vmatpush3.bf16.msra.mxu1 %v3462_v15  ;;  %1798 = vmatprep.mubr.bf16.mxu1 %v2854_v10  ;;  %v1968_v15 = vshll.u32 %v2884_v21, 16  ;;  %v2907_v3 = vcombine.low %v2023_v0, %v2024_v5  ;;  %v1973_v10 = vshrl.u32 %v2885_v58, 16 }
 0x1ca   : > { %3084 = vmatprep.subr.bf16.mxu1 %v3463_v54  ;;  %v2896_v54 = vcombine.low %v4197_v39, %v4199_v47  ;;  %v1980_v47 = vshrl.u32 %v2886_v63, 16 }
 0x1cb   : > { %3223 = vmatpush3.bf16.msra.mxu0 %v3464_v61  ;;  %v1880_v61 = vld [vmem:[#allocation2 + $0x48] sm:$0xf]  ;;  %v1970_v2 = vrot.slane %v1968_v15, 1  ;;  %v1978_v16 = vor.u32 %v1977_v14, %v1973_v10 }
 0x1cc   : > { %3224 = vmatprep.subr.bf16.mxu0 %v3467_v13  ;;  %v2887_v1 = vcombine.low %v1880_v61, %v1888_v51  ;;  %v2905_v29 = vcombine.low %v1879_v52, %v1880_v61 }
 0x1cd   : > { %3085 = vmatpush3.bf16.msra.mxu1 %v3465_v24  ;;  %v1971_v11 = vor.u32 %v1970_v2, %v1966_v4  ;;  %v1984_v24 = vrot.slane %v1982_v12, 1 }
 0x1ce   : > { %3086 = vmatprep.subr.bf16.mxu1 %v3466_v28  ;;  %v1987_v22 = vshrl.u32 %v2887_v1, 16 }
 0x1cf   : > { %3225 = vmatpush3.bf16.msra.mxu0 %v3467_v13  ;;  %v1989_v13 = vshll.u32 %v2887_v1, 16  ;;  %v2903_v39 = vcombine.low %v1971_v11, %v1978_v16  ;;  %v1985_v41 = vor.u32 %v1984_v24, %v1980_v47 }
 0x1d0   : > { %1799 = vmatmul.mubr.bf16.gmra.mxu1 %v2853_v37 }
 0x1d1   : > { %3087 = vmatpush3.bf16.msra.mxu1 %v3469_v42  ;;  %2290 = vmatprep.mubr.bf16.mxu1 %v2897_v46  ;;  %v1991_v35 = vrot.slane %v1989_v13, 1 }
 0x1d2   : > { %3088 = vmatprep.subr.bf16.mxu1 %v3470_v40  ;;  %3227 = vmatmul.mubr.bf16.vlgmr.msra.gmra.mxu0 %v2901_v19 }
 0x1d3   : > { %3230 = vmatprep.mubr.bf16.mxu0 %v2904_v8  ;;  %v1992_v25 = vor.u32 %v1991_v35, %v1987_v22 }
 0x1d5   : > { %3089 = vmatpush3.bf16.msra.mxu1 %v3473_v57  ;;  %v2906_v28 = vcombine.low %v1985_v41, %v1992_v25 }
 0x1d6   : > { %3234 = vmatprep.subr.bf16.mxu1 %v3487_v53 }
 0x1d8   : > { %2291 = vmatmul.mubr.bf16.vlgmr.msra.gmra.mxu1 %v2896_v54 }
 0x1d9   : > { %2298 = vmatprep.mubr.bf16.mxu1 %v2900_v9  ;;  %3235 = vmatpush3.bf16.msra.mxu1 %v3487_v53 }
 0x1da   : > { %3231 = vmatmul.mubr.bf16.gmra.mxu0 %v2907_v3  ;;  %3236 = vmatprep.subr.bf16.mxu1 %v3488_v62 }
 0x1dd   : > { %3237 = vmatpush3.bf16.msra.mxu1 %v3488_v62 }
 0x1de   : > { %3238 = vmatprep.subr.bf16.mxu1 %v3489_v7 }
 0x1e0   : > { %2299 = vmatmul.mubr.bf16.gmra.mxu1 %v2899_v20 }
 0x1e1   : > { %2306 = vmatprep.mubr.bf16.mxu1 %v2903_v39  ;;  %3239 = vmatpush3.bf16.msra.mxu1 %v3489_v7 }
 0x1e2   : > { %3240 = vmatprep.subr.bf16.mxu1 %v3490_v18 }
 0x1e5   : > { %3241 = vmatpush3.bf16.msra.mxu1 %v3490_v18 }
 0x1e6   : > { %3242 = vmatprep.subr.bf16.mxu1 %v3491_v59 }
 0x1e8   : > { %2307 = vmatmul.mubr.bf16.gmra.mxu1 %v2902_v27 }
 0x1e9   : > { %2314 = vmatprep.mubr.bf16.mxu1 %v2906_v28  ;;  %3243 = vmatpush3.bf16.msra.mxu1 %v3491_v59 }
 0x1ea   : > { %3244 = vmatprep.subr.bf16.mxu1 %v3492_v23 }
 0x1ed   : > { %3245 = vmatpush3.bf16.msra.mxu1 %v3492_v23 }
 0x1ee   : > { %3246 = vmatprep.subr.bf16.mxu1 %v3493_v30 }
 0x1f0   : > { %2315 = vmatmul.mubr.bf16.gmra.mxu1 %v2905_v29 }
 0x1f1   : > { %3247 = vmatpush3.bf16.msra.mxu1 %v3493_v30 }
 0x1f2   : > { %3248 = vmatprep.subr.bf16.mxu1 %v3494_v17 }
 0x1f5   : > { %3249 = vmatpush3.bf16.msra.mxu1 %v3494_v17 }
 0x251   : > { %v4225_v42 = vpop.f32.mrf.mxu0 }
 0x253   : > { %v1543_v34 = vpop.f32.mrf.mxu0 }
 0x255   : > { %v4227_v40 = vpop.f32.mrf.mxu0 }
 0x257   : > { %v1546_v21 = vpop.f32.mrf.mxu0 }
 0x258   : > { %v2986_v31 = vpop.f32.mrf.mxu1 }
 0x25a   : > { %v2987_v32 = vpop.f32.mrf.mxu1 }
 0x25b   : > { %v2988_v33 = vadd.f32 %v2987_v32, %v2986_v31 }
 0x25c   : > { %v2989_v36 = vpop.f32.mrf.mxu1 }
 0x25d   : > { %v1544_v28 = vadd.f32 %v2988_v33, %v1543_v34  ;;  %v4276_v34 = vld [vmem:[%s441_s27] ss:$0 sm:$0xff] }
 0x25e   : > { %v2990_v37 = vpop.f32.mrf.mxu1  ;;  %v4231_v50 = vpop.f32.mrf.mxu0 }
 0x25f   : > { %v2991_v29 = vadd.f32 %v2990_v37, %v2989_v36 }
 0x260   : > { %v2992_v43 = vpop.f32.mrf.mxu1  ;;  %v4235_v56 = vpop.f32.mrf.mxu0 }
 0x261   : > { %v1547_v23 = vadd.f32 %v2991_v29, %v1546_v21 }
 0x262   : > { %v2993_v44 = vpop.f32.mrf.mxu1  ;;  %v4241_v8 = vpop.f32.mrf.mxu0 }
 0x263   : > { %v4229_v46 = vadd.f32 %v2993_v44, %v2992_v43 }
 0x264   : > { %v2995_v48 = vpop.f32.mrf.mxu1  ;;  %v4245_v15 = vpop.f32.mrf.mxu0 }
 0x265   : > { %v1552_v37 = vadd.f32 %v4225_v42, %v4229_v46 }
 0x266   : > { %v2996_v49 = vpop.f32.mrf.mxu1 }
 0x267   : > { %v2997_v33 = vadd.f32 %v2996_v49, %v2995_v48  ;;  %v4285_v48 = vld [vmem:[%s4402_s7] ss:$0 sm:$0xff] }
 0x268   : > { %v2998_v51 = vpop.f32.mrf.mxu1 }
 0x26a   : > { %v2999_v19 = vpop.f32.mrf.mxu1 }
 0x26b   : > { %v4233_v55 = vadd.f32 %v2999_v19, %v2998_v51 }
 0x26c   : > { %v4237_v57 = vpop.f32.mrf.mxu1 }
 0x26e   : > { %v4239_v58 = vpop.f32.mrf.mxu1 }
 0x270   : > { %v3004_v26 = vpop.f32.mrf.mxu1 }
 0x272   : > { %v3005_v60 = vpop.f32.mrf.mxu1  ;;  %v4249_v61 = vpop.f32.mrf.mxu0 }
 0x273   : > { %v4243_v6 = vadd.f32 %v3005_v60, %v3004_v26 }
 0x274   : > { %v4247_v52 = vpop.f32.mrf.mxu1  ;;  %v1841_v38 = vpop.f32.mrf.mxu0 }
 0x276   : > { %v4251_v0 = vpop.f32.mrf.mxu1  ;;  %v4253_v9 = vpop.f32.mrf.mxu0 }
 0x278   : > { %v3038_v5 = vpop.f32.mrf.mxu1  ;;  %v1844_v2 = vpop.f32.mrf.mxu0 }
 0x27a   : > { %v3039_v45 = vpop.f32.mrf.mxu1  ;;  %v4255_v10 = vpop.f32.mrf.mxu0 }
 0x27b   : > { %v3040_v25 = vadd.f32 %v3039_v45, %v3038_v5 }
 0x27c   : > { %v3041_v54 = vpop.f32.mrf.mxu1  ;;  %v4257_v12 = vpop.f32.mrf.mxu0 }
 0x27d   : > { %v1777_v7 = vadd.f32 %v3040_v25, %v1544_v28 }
 0x27e   : > { %v3042_v63 = vpop.f32.mrf.mxu1  ;;  %v4259_v20 = vpop.f32.mrf.mxu0 }
 0x27f   : > { %v3043_v18 = vadd.f32 %v3042_v63, %v3041_v54  ;;  %v1842_v32 = vadd.f32 %v1841_v38, %v1777_v7 }
 0x280   : > { %v3044_v1 = vpop.f32.mrf.mxu1  ;;  %v4263_v47 = vpop.f32.mrf.mxu0 }
 0x281   : > { %v1780_v43 = vadd.f32 %v3043_v18, %v1547_v23 }
 0x282   : > { %v3045_v3 = vpop.f32.mrf.mxu1 }
 0x283   : > { %v3046_v44 = vadd.f32 %v3045_v3, %v3044_v1  ;;  %v1845_v45 = vadd.f32 %v1844_v2, %v1780_v43  ;;  %v1555_v1 = vadd.f32 %v4227_v40, %v2997_v33  ;;  %v1560_v40 = vadd.f32 %v4233_v55, %v4235_v56 }
 0x284   : > { %v3047_v4 = vpop.f32.mrf.mxu1 }
 0x285   : > { %v1785_v54 = vadd.f32 %v3046_v44, %v1552_v37 }
 0x286   : > { %v3048_v14 = vpop.f32.mrf.mxu1 }
 0x287   : > { %v3049_v26 = vadd.f32 %v3048_v14, %v3047_v4  ;;  %v1850_v2 = vadd.f32 %v4249_v61, %v1785_v54 }
 0x288   : > { %v3050_v11 = vpop.f32.mrf.mxu1 }
 0x289   : > { %v1788_v46 = vadd.f32 %v3049_v26, %v1555_v1 }
 0x28a   : > { %v3051_v13 = vpop.f32.mrf.mxu1 }
 0x28b   : > { %v3052_v25 = vadd.f32 %v3051_v13, %v3050_v11  ;;  %v1853_v13 = vadd.f32 %v4253_v9, %v1788_v46 }
 0x28c   : > { %v3053_v16 = vpop.f32.mrf.mxu1 }
 0x28d   : > { %v1793_v23 = vadd.f32 %v3052_v25, %v1560_v40 }
 0x28e   : > { %v3054_v22 = vpop.f32.mrf.mxu1 }
 0x28f   : > { %v3055_v61 = vadd.f32 %v3054_v22, %v3053_v16  ;;  %v1858_v16 = vadd.f32 %v4257_v12, %v1793_v23 }
 0x290   : > { %v4261_v39 = vpop.f32.mrf.mxu1 }
 0x292   : > { %v4265_v24 = vpop.f32.mrf.mxu1  ;;  %v3228_v35 = vpop.f32.mrf.mxu0 }
 0x294   : > { %v4268_v41 = vpop.f32.mrf.mxu1  ;;  %v2357_v53 = vpop.f32.mrf.mxu0 }
 0x296   : > { %v4270_v27 = vpop.f32.mrf.mxu1  ;;  %v3229_v17 = vpop.f32.mrf.mxu0 }
 0x298   : > { %v3090_v62 = vpop.f32.mrf.mxu1  ;;  %v2360_v60 = vpop.f32.mrf.mxu0 }
 0x29a   : > { %v3091_v59 = vpop.f32.mrf.mxu1  ;;  %v3232_v4 = vpop.f32.mrf.mxu0 }
 0x29b   : > { %v3092_v30 = vadd.f32 %v3091_v59, %v3090_v62  ;;  %v3003_v62 = vadd.f32 %v4239_v58, %v4237_v57 }
 0x29c   : > { %v3093_v31 = vpop.f32.mrf.mxu1 }
 0x29d   : > { %v2358_v51 = vadd.f32 %v3092_v30, %v2357_v53  ;;  %v2373_v30 = vpop.f32.mrf.mxu0  ;;  %v1563_v55 = vadd.f32 %v3003_v62, %v4245_v15  ;;  %v1568_v15 = vadd.f32 %v4231_v50, %v4243_v6 }
 0x29e   : > { %v3094_v36 = vpop.f32.mrf.mxu1 }
 0x29f   : > { %v2388_v19 = vadd.f32 %v2358_v51, %v1842_v32  ;;  %v3095_v21 = vadd.f32 %v3094_v36, %v3093_v31  ;;  %v1796_v33 = vadd.f32 %v3055_v61, %v1563_v55  ;;  %v3058_v36 = vadd.f32 %v4265_v24, %v4261_v39  ;;  %v3233_v9 = vpop.f32.mrf.mxu0 }
 0x2a0   : > { %v3096_v5 = vpop.f32.mrf.mxu1 }
 0x2a1   : > { %v2403_v63 = vmul.f32 %v4276_v34, %v2388_v19  ;;  %v2361_v38 = vadd.f32 %v3095_v21, %v2360_v60  ;;  %v3009_v21 = vadd.f32 %v4251_v0, %v4247_v52  ;;  %v1801_v12 = vadd.f32 %v3058_v36, %v1568_v15  ;;  %v2376_v54 = vpop.f32.mrf.mxu0  ;;  %v3497_v36 = vld [vmem:[%s3954_s19 + $0x18] sm:$0xff] }
 0x2a2   : > { %v3097_v3 = vpop.f32.mrf.mxu1 }
 0x2a3   : > { %v2389_v49 = vadd.f32 %v2361_v38, %v1845_v45  ;;  %v3098_v42 = vadd.f32 %v3097_v3, %v3096_v5  ;;  %v2418_v53 = vadd.f32 %v4285_v48, %v2403_v63  ;;  %v1861_v5 = vadd.f32 %v4263_v47, %v1796_v33 }
 0x2a4   : > { %v3099_v14 = vpop.f32.mrf.mxu1  ;;  %v3061_v45 = vadd.f32 %v4270_v27, %v4268_v41  ;;  %v1571_v52 = vadd.f32 %v4241_v8, %v3009_v21  ;;  %v1866_v47 = vadd.f32 %v4255_v10, %v1801_v12 }
 0x2a5   : > { %v2404_v28 = vmul.f32 %v4276_v34, %v2389_v49  ;;  %v2366_v29 = vadd.f32 %v3228_v35, %v3098_v42  ;;  %v2426_v43 = vmax.f32 %v2418_v53, 0.0 }
 0x2a6   : > { %v3100_v7 = vpop.f32.mrf.mxu1  ;;  %v1804_v46 = vadd.f32 %v3061_v45, %v1571_v52  ;;  %v3500_v45 = vld [vmem:[%s3954_s19 + $0x20] sm:$0xff] }
 0x2a7   : > { %v2390_v18 = vadd.f32 %v2366_v29, %v1850_v2  ;;  %v3101_v59 = vadd.f32 %v3100_v7, %v3099_v14  ;;  %v2419_v11 = vadd.f32 %v4285_v48, %v2404_v28 }
 0x2a8   : > { %v3102_v31 = vpop.f32.mrf.mxu1  ;;  %v1869_v8 = vadd.f32 %v4259_v20, %v1804_v46 }
 0x2a9   : > { %v2405_v35 = vmul.f32 %v4276_v34, %v2390_v18  ;;  %v2369_v32 = vadd.f32 %v3229_v17, %v3101_v59  ;;  %v2427_v44 = vmax.f32 %v2419_v11, 0.0 }
 0x2aa   : > { %v3103_v56 = vpop.f32.mrf.mxu1 }
 0x2ab   : > { %v2391_v57 = vadd.f32 %v2369_v32, %v1853_v13  ;;  %v3104_v58 = vadd.f32 %v3103_v56, %v3102_v31  ;;  %v2434_v51 = vpack.c.bf16 %v2427_v44, %v2426_v43  ;;  %v2420_v22 = vadd.f32 %v4285_v48, %v2405_v35 }
 0x2ac   : > { %v3105_v37 = vpop.f32.mrf.mxu1 }
 0x2ad   : > { %v2406_v17 = vmul.f32 %v4276_v34, %v2391_v57  ;;  %v2374_v19 = vadd.f32 %v3104_v58, %v2373_v30  ;;  %3250 = vmatprep.mubr.bf16.mxu1 %v2434_v51  ;;  %v2428_v38 = vmax.f32 %v2420_v22, 0.0  ;;  %v2934_v30 = vld [vmem:[%s4403_s8] ss:$0 sm:$0xff]  ;;  %v3498_v22 = vld [vmem:[%s3954_s19 + $0x8] sm:$0xff] }
 0x2ae   : > { %v3106_v26 = vpop.f32.mrf.mxu1 }
 0x2af   : > { %v2421_v60 = vadd.f32 %v4285_v48, %v2406_v17  ;;  %v2392_v39 = vadd.f32 %v2374_v19, %v1858_v16  ;;  %v3107_v24 = vadd.f32 %v3106_v26, %v3105_v37 }
 0x2b0   : > { %v3108_v63 = vpop.f32.mrf.mxu1 }
 0x2b1   : > { %v2429_v1 = vmax.f32 %v2421_v60, 0.0  ;;  %v2407_v50 = vmul.f32 %v4276_v34, %v2392_v39  ;;  %v2377_v6 = vadd.f32 %v3107_v24, %v2376_v54  ;;  %v3499_v60 = vld [vmem:[%s3954_s19 + $0x30] sm:$0xff] }
 0x2b2   : > { %v3109_v0 = vpop.f32.mrf.mxu1 }
 0x2b3   : > { %v2435_v3 = vpack.c.bf16 %v2429_v1, %v2428_v38  ;;  %v2393_v49 = vadd.f32 %v2377_v6, %v1861_v5  ;;  %v3110_v42 = vadd.f32 %v3109_v0, %v3108_v63  ;;  %v2422_v27 = vadd.f32 %v4285_v48, %v2407_v50  ;;  %v3501_v50 = vld [vmem:[%s3954_s19 + $0x38] sm:$0xff] }
 0x2b4   : > { %v3111_v25 = vpop.f32.mrf.mxu1 }
 0x2b5   : > { %v2408_v14 = vmul.f32 %v4276_v34, %v2393_v49  ;;  %v2382_v41 = vadd.f32 %v3232_v4, %v3110_v42  ;;  %3251 = vmatmul.mubr.bf16.vlgmr.msra.gmra.mxu1 %v2435_v3  ;;  %v2430_v7 = vmax.f32 %v2422_v27, 0.0  ;;  %v3502_v3 = vld [vmem:[%s3954_s19 + $0x28] sm:$0xff] }
 0x2b6   : > { %v3112_v2 = vpop.f32.mrf.mxu1 }
 0x2b7   : > { %v2394_v28 = vadd.f32 %v2382_v41, %v1866_v47  ;;  %v3113_v29 = vadd.f32 %v3112_v2, %v3111_v25  ;;  %v2423_v53 = vadd.f32 %v4285_v48, %v2408_v14 }
 0x2b9   : > { %v2409_v40 = vmul.f32 %v4276_v34, %v2394_v28  ;;  %v2385_v62 = vadd.f32 %v3233_v9, %v3113_v29  ;;  %v2431_v18 = vmax.f32 %v2423_v53, 0.0 }
 0x2bb   : > { %v2395_v10 = vadd.f32 %v2385_v62, %v1869_v8  ;;  %v2436_v59 = vpack.c.bf16 %v2431_v18, %v2430_v7  ;;  %v2424_v11 = vadd.f32 %v4285_v48, %v2409_v40 }
 0x2bd   : > { %v2410_v4 = vmul.f32 %v4276_v34, %v2395_v10  ;;  %3254 = vmatprep.mubr.bf16.mxu1 %v2436_v59  ;;  %v2432_v23 = vmax.f32 %v2424_v11, 0.0  ;;  %v3495_v34 = vld [vmem:[%s3954_s19 + $0x10] sm:$0xff] }
 0x2bf   : > { %v2425_v13 = vadd.f32 %v4285_v48, %v2410_v4  ;;  %v3496_v48 = vld [vmem:[%s3954_s19] sm:$0xff] }
 0x2c1   : > { %v2433_v61 = vmax.f32 %v2425_v13, 0.0 }
 0x2c3   : > { %v2437_v20 = vpack.c.bf16 %v2433_v61, %v2432_v23 }
 0x2c5   : > { %3255 = vmatmul.mubr.bf16.gmra.mxu1 %v2437_v20 }
 0x375   : > { %v3252_v31 = vpop.f32.mrf.mxu1 }
 0x376   : > { %v2552_v35 = vadd.f32 %v3252_v31, %v2934_v30 }
 0x377   : > { %v2543_v32 = vpop.f32.mrf.mxu1 }
 0x378   : > { %v2576_v43 = vadd.f32 %v3495_v34, %v2552_v35  ;;  %v2544_v44 = vadd.f32 %v2934_v30, %v2543_v32 }
 0x379   : > { %v3253_v55 = vpop.f32.mrf.mxu1 }
 0x37a   : > { %v2584_v56 = vmax.f32 %v2576_v43, 0.0  ;;  %v2574_v57 = vadd.f32 %v3496_v48, %v2544_v44  ;;  %v2555_v58 = vadd.f32 %v3253_v55, %v2934_v30 }
 0x37b   : > { %v2546_v51 = vpop.f32.mrf.mxu1 }
 0x37c   : > { %2592 = vst [vmem:[%s4329_s24 + $0x10] sm:$0xff] %v2584_v56  ;;  %v2582_v33 = vmax.f32 %v2574_v57, 0.0  ;;  %v2577_v9 = vadd.f32 %v3497_v36, %v2555_v58  ;;  %v2547_v37 = vadd.f32 %v2934_v30, %v2546_v51 }
 0x37e   : > { %2590 = vst [vmem:[%s4329_s24] sm:$0xff] %v2582_v33  ;;  %v2585_v16 = vmax.f32 %v2577_v9, 0.0  ;;  %v2575_v17 = vadd.f32 %v3498_v22, %v2547_v37 }
 0x380   : > { %2593 = vst [vmem:[%s4329_s24 + $0x18] sm:$0xff] %v2585_v16  ;;  %v2583_v19 = vmax.f32 %v2575_v17, 0.0 }
 0x382   : > { %2591 = vst [vmem:[%s4329_s24 + $0x8] sm:$0xff] %v2583_v19 }
 0x385   : > { %v3256_v15 = vpop.f32.mrf.mxu1 }
 0x386   : > { %v2568_v21 = vadd.f32 %v3256_v15, %v2934_v30 }
 0x387   : > { %v2559_v26 = vpop.f32.mrf.mxu1 }
 0x388   : > { %v2580_v39 = vadd.f32 %v3499_v60, %v2568_v21  ;;  %v2560_v24 = vadd.f32 %v2934_v30, %v2559_v26 }
 0x389   : > { %v3257_v5 = vpop.f32.mrf.mxu1 }
 0x38a   : > { %v2588_v12 = vmax.f32 %v2580_v39, 0.0  ;;  %v2578_v54 = vadd.f32 %v3500_v45, %v2560_v24  ;;  %v2571_v63 = vadd.f32 %v3257_v5, %v2934_v30 }
 0x38b   : > { %v2562_v38 = vpop.f32.mrf.mxu1 }
 0x38c   : > { %2596 = vst [vmem:[%s4329_s24 + $0x30] sm:$0xff] %v2588_v12  ;;  %v2586_v1 = vmax.f32 %v2578_v54, 0.0  ;;  %v2581_v6 = vadd.f32 %v3501_v50, %v2571_v63  ;;  %v2563_v52 = vadd.f32 %v2934_v30, %v2562_v38 }
 0x38e   : > { %2594 = vst [vmem:[%s4329_s24 + $0x20] sm:$0xff] %v2586_v1  ;;  %v2589_v0 = vmax.f32 %v2581_v6, 0.0  ;;  %v2579_v49 = vadd.f32 %v3502_v3, %v2563_v52 }
 0x390   : > { %2597 = vst [vmem:[%s4329_s24 + $0x38] sm:$0xff] %v2589_v0  ;;  %v2587_v42 = vmax.f32 %v2579_v49, 0.0 }
 0x392   : > { %2595 = vst [vmem:[%s4329_s24 + $0x28] sm:$0xff] %v2587_v42 }
 0x393   : > { %3650 = shalt.err (!%p3647_p4)
}
 0x394   : > { %s3651_s19 = scalar_lea.hbm %s4350_s29, 1024  ;;  %s3655_s21 = scalar_lea.hbm %s4404_s9, 2048 }
 0x395   : > { %p3652_p8 = scmp.ne.s32.totalorder %s4350_s29, %s3651_s19  ;;  %p3656_p6 = scmp.lt.s32.totalorder %s4350_s29, %s4404_s9 }
 0x396   : > { %p3657_p12 = scmp.lt.s32.totalorder %s3655_s21, %s3651_s19 }
 0x397   : > { %p3653_p11 = pnand %p3652_p8, %p4440_p3 }
 0x398   : > { %p3658_p0 = por %p3657_p12, %p3656_p6 }
 0x399   : > { %p3654_p1 = pneg %p3653_p11 }
 0x39b   : > { %p3659_p5 = pnand %p3658_p0, %p3654_p1 }
 0x39d   : > { %3662 = shalt.err (!%p3659_p5)
}
 0x39e   : > { %s3726_s23 = smov 128   ;;  %s3727_s24 = smov 8  }
 0x39f   : > { %3274 = dma.vmem_to_hbm [thread:$0]  (%p4440_p3), %s4343_s26, 1024, %s4350_s29, %s2599_s15, %s3726_s23, %s3726_s23, %s3727_s24  }
 0x3a0 PF: > { %s2627_s4 = sand.u32 1, %s3701_s30   ;;  %p4441_p7 = scmp.ne.s32.totalorder %s4416_s16, 0 }
 0x3a1   : > { %p4442_p9 = scmp.ge.s32.totalorder %s3713_s12, 2  ;;  %s2628_s5 = scalar_lea.sflag [#allocation5], %s2627_s4 }
 0x3a3   : > { %p3294_p2 = pnand %p4442_p9, %p4441_p7 }
 0x3a5   : > { %p3295_p10 = pneg %p3294_p2 }
 0x3a7   : > { %3696 = dma.done.wait (%p3295_p10), %s2628_s5, 1024  }
 0x3a8   : > { %3698 = vsyncadd (%p3295_p10), %s2628_s5, 4294966272  ;;  %s4443_s17 = sld [smem:[#allocation18_spill]]  ;;  %p26_p13 = scmp.ge.s32.totalorder %s3858_s22, 4  }
 0x3a9   : > { %s4444_s11 = sld [smem:[#allocation19_spill]]  ;;  %s4445_s30 = smov %s3705_s10 }
 0x3aa   : > { %s4447_s12 = smov %s3858_s22  ;;  %28 = sbr.rel (!%p26_p13) target bundleno = 13 (0xd), region = 134 }
 0x3ae   : > { %s4446_s10 = smov %s4443_s17 }
 0x3af   :  { %2633 = vsyncpa [#allocation4], 1 }
 0x3b0   :  { %2635 = vsyncpa [#allocation4 + $0x1], 1 }
 0x3b1   :  { %2636 = vsyncpa [#allocation7], 1 }
 0x3b2   :  { %2638 = vsyncpa [#allocation7 + $0x1], 1 }
 0x3b3   :  { %2639 = vsyncpa [#allocation10], 1 }
 0x3b4   :  { %2640 = vsyncpa [#allocation5], 1 }
 0x3b5   :  { %2642 = vsyncpa [#allocation5 + $0x1], 1 }

// kernel: tpu_custom_call.1
= control target key start
LH: loop header
LB: loop body
LE: loop exit
PB: predicated region body
PF: predicated region fallthrough
CT: control target
= control target key end

     0   :  { %s4395_s0 = inlined_call_operand.hbm [shape: f32[2,8,8,128], index: 0, kind: input, shape index: {}]   ;;  %s4396_s1 = inlined_call_operand.hbm [shape: f32[2,1,128], index: 1, kind: input, shape index: {}]   ;;  %s4397_s2 = inlined_call_operand.vmem [shape: f32[2,1,128], index: 2, kind: input, shape index: {}]   ;;  %s4398_s3 = inlined_call_operand.hbm [shape: bf16[128,128], index: 3, kind: input, shape index: {}]   ;;  %s4399_s4 = inlined_call_operand.hbm [shape: bf16[3,384,128], index: 4, kind: input, shape index: {}]   ;;  %s4400_s5 = inlined_call_operand.hbm [shape: bf16[128,128], index: 5, kind: input, shape index: {}]   ;;  %s4401_s6 = inlined_call_operand.vmem [shape: f32[1,128], index: 6, kind: input, shape index: {}]   ;;  %s4402_s7 = inlined_call_operand.vmem [shape: f32[1,128], index: 7, kind: input, shape index: {}]   ;;  %s4403_s8 = inlined_call_operand.vmem [shape: f32[1,128], index: 8, kind: input, shape index: {}]   ;;  %s4404_s9 = inlined_call_operand.hbm [shape: f32[2,8,8,128], index: 9, kind: output, shape index: {}]  }
   0x1   :  { %4410 = sst [smem:[#allocation20_spill]] %s4395_s0 }
   0x2   :  { %4411 = sst [smem:[#allocation21_spill]] %s4398_s3 }
   0x3   :  { %4412 = sst [smem:[#allocation22_spill]] %s4399_s4 }
   0x4   :  { %4413 = sst [smem:[#allocation23_spill]] %s4400_s5 }
   0x5   :  { %14 = vsyncpa [#allocation4], 0 }
   0x6   :  { %16 = vsyncpa [#allocation4 + $0x1], 0 }
   0x7   :  { %17 = vsyncpa [#allocation7], 0 }
   0x8   :  { %19 = vsyncpa [#allocation7 + $0x1], 0 }
   0x9   :  { %20 = vsyncpa [#allocation10], 0 }
   0xa   :  { %21 = vsyncpa [#allocation5], 0 }
   0xb   :  { %23 = vsyncpa [#allocation5 + $0x1], 0  ;;  %s3778_s30 = smov 0   ;;  %s3780_s10 = smov 0  }
   0xc   :  { %s3782_s11 = smov 0   ;;  %s3784_s12 = smov 0  }
   0xd LB: > { %4414 = sst [smem:[#allocation18_spill]] %s3709_s11  ;;  %s3799_s13 = sadd.s32 4294967295, %s3713_s12   ;;  %s3713_s12 = sphi %s3784_s12, %s4447_s12   ;;  %s3709_s11 = sphi %s3782_s11, %s4444_s11   ;;  %s3705_s10 = sphi %s3780_s10, %s4446_s10   ;;  %s3701_s30 = sphi %s3778_s30, %s4445_s30  }
   0xe   : > { %s2742_s14 = sadd.s32 4294967294, %s3713_s12   ;;  %p49_p0 = scmp.ne.s32.totalorder %s3705_s10, %s3701_s30 }
   0xf   : > { %p4405_p1 = scmp.eq.s32.totalorder %s3799_s13, 0  ;;  %p257_p3 = scmp.eq.s32.totalorder %s2742_s14, 1 }
  0x10   : > { %p2743_p5 = scmp.ge.s32.totalorder %s3713_s12, 1  ;;  %p264_p7 = scmp.lt.s32.totalorder %s3713_s12, 3 }
  0x11   : > { %p3808_p4 = por %p4405_p1, %p49_p0  ;;  %p3813_p6 = por %p257_p3, %p49_p0 }
  0x12   : > { %p3818_p8 = pnand %p2743_p5, %p264_p7  ;;  %s3715_s18 = smov [#allocation8]  }
  0x13   : > { %s4415_s15 = scalar_select %p3808_p4, 1, 0 }
  0x14   : > { %s4416_s16 = scalar_select %p3813_p6, 1, 0 }
  0x15   : > { %s4417_s17 = scalar_select %p3818_p8, 1, 0 }
  0x16   : > { %s276_s19 = sshll.u32 %s3715_s18, 4  ;;  %p3276_p9 = pneg %p3818_p8  ;;  %s277_s19 = int_to_ptr.vmem [resolvable:$true] %s276_s19 }
  0x17   : > { %s3716_s21 = smov [#allocation9]   ;;  %s3717_s23 = smov [#allocation11]  }
  0x18   : > { %p3827_p11 = pnand %p3276_p9, %p4405_p1  ;;  %s289_s22 = sshll.u32 %s3716_s21, 4  ;;  %s290_s22 = int_to_ptr.vmem [resolvable:$true] %s289_s22 }
  0x19   : > { %s302_s24 = sshll.u32 %s3717_s23, 4  ;;  %s3514_s25 = scalar_lea.vmem %s277_s19, 1024  ;;  %s303_s24 = int_to_ptr.vmem [resolvable:$true] %s302_s24 }
  0x1a   : > { %p3505_p12 = pneg %p3827_p11  ;;  %p3515_p13 = scmp.ne.s32.totalorder %s277_s19, %s3514_s25 }
  0x1b   : > { %p3522_p5 = scmp.lt.s32.totalorder %s277_s19, %s277_s19  ;;  %p3523_p7 = scmp.lt.s32.totalorder %s3514_s25, %s3514_s25 }
  0x1c   : > { %p3517_p0 = pnand %p3515_p13, %p3505_p12 }
  0x1d   : > { %p3524_p9 = por %p3523_p7, %p3522_p5 }
  0x1e   : > { %p3518_p3 = pneg %p3517_p0 }
  0x20   : > { %p3525_p10 = pnand %p3524_p9, %p3518_p3 }
  0x22   : > { %3528 = shalt.err (!%p3525_p10)
}
  0x23   : > { %s3718_s26 = smov 64   ;;  %s3719_s27 = smov 4  }
  0x24   : > { %s4419_s3 = sld [smem:[#allocation21_spill]]  ;;  %s3540_s14 = scalar_lea.vmem %s290_s22, 9216 }
  0x25   : > { %p3541_p1 = scmp.ne.s32.totalorder %s290_s22, %s3540_s14  ;;  %p3548_p2 = scmp.lt.s32.totalorder %s290_s22, %s290_s22 }
  0x26   : > { %p3549_p6 = scmp.lt.s32.totalorder %s3540_s14, %s3540_s14 }
  0x27   : > { %p3543_p13 = pnand %p3541_p1, %p3505_p12 }
  0x28   : > { %p3550_p5 = por %p3549_p6, %p3548_p2 }
  0x29   : > { %p3544_p0 = pneg %p3543_p13 }
  0x2a   : > { %3279 = dma.hbm_to_vmem [thread:$0]  (!%p3827_p11), %s4419_s3, 1024, %s277_s19, [#allocation7], %s3718_s26, %s3718_s26, %s3719_s27  }
  0x2b   : > { %p3551_p3 = pnand %p3550_p5, %p3544_p0 }
  0x2d   : > { %3554 = shalt.err (!%p3551_p3)
}
  0x2e   : > { %s4420_s4 = sld [smem:[#allocation22_spill]]  ;;  %s3566_s19 = scalar_lea.vmem %s303_s24, 1024 }
  0x2f   : > { %p3567_p10 = scmp.ne.s32.totalorder %s303_s24, %s3566_s19  ;;  %p3574_p9 = scmp.lt.s32.totalorder %s303_s24, %s303_s24 }
  0x30   : > { %p3575_p13 = scmp.lt.s32.totalorder %s3566_s19, %s3566_s19 }
  0x31   : > { %p3569_p7 = pnand %p3567_p10, %p3505_p12 }
  0x32   : > { %p3576_p4 = por %p3575_p13, %p3574_p9 }
  0x33   : > { %p3570_p1 = pneg %p3569_p7 }
  0x34   : > { %3282 = dma.hbm_to_vmem [thread:$0]  (!%p3827_p11), %s4420_s4, 9216, %s290_s22, [#allocation10], %s3718_s26, %s3718_s26, %s3719_s27  }
  0x35   : > { %p3577_p2 = pnand %p3576_p4, %p3570_p1 }
  0x37   : > { %3580 = shalt.err (!%p3577_p2)
}
  0x38   : > { %s4421_s5 = sld [smem:[#allocation23_spill]]  ;;  %s3858_s22 = sadd.s32 1, %s3713_s12  }
  0x39   : > { %s33_s28 = ssub.s32 %s3713_s12, %s3858_s22  ;;  %s36_s20 = sadd.s32 1, %s3709_s11 }
  0x3a   : > { %p34_p4 = scmp.eq.s32.totalorder %s33_s28, 0  ;;  %p43_p6 = scmp.ne.s32.totalorder %s3709_s11, %s3705_s10 }
  0x3b   : > { %p44_p12 = scmp.eq.s32.totalorder %s3713_s12, 0  ;;  %p3300_p0 = scmp.lt.s32.totalorder %s3713_s12, 2 }
  0x3c   : > { %s3868_s29 = scalar_select %p34_p4, %s3709_s11, %s36_s20  }
  0x3d   : > { %p45_p5 = por %p44_p12, %p43_p6  ;;  %p4423_p3 = scmp.eq.s32.totalorder %s3799_s13, 1 }
  0x3e   : > { %3285 = dma.hbm_to_vmem [thread:$0]  (!%p3827_p11), %s4421_s5, 1024, %s303_s24, [#allocation10], %s3718_s26, %s3718_s26, %s3719_s27  }
  0x3f   : > { %4422 = sst [smem:[#allocation19_spill]] %s3868_s29  ;;  %p3872_p10 = por %p4423_p3, %p43_p6 }
  0x40   : > { %s3877_s18 = sand.u32 1, %s3709_s11   ;;  %s2948_s24 = sshll.u32 %s3713_s12, 10 }
  0x41   : > { %s4424_s14 = scalar_select %p3872_p10, 1, 0 }
  0x42   : > { %s2748_s26 = sshll.u32 %s3877_s18, 6  ;;  %s4425_s0 = sld [smem:[#allocation20_spill]] }
  0x43   : > { %s329_s23 = scalar_lea.vmem [#allocation3], %s2748_s26  ;;  %p3886_p11 = pnand %p3300_p0, %p45_p5 }
  0x44   : > { %s336_s25 = sshll.u32 %s329_s23, 4  ;;  %s3890_s25 = int_to_ptr.vmem [resolvable:$true] %s336_s25 }
  0x45   : > { %p3583_p1 = pneg %p3886_p11 }
  0x48   : > { %s3884_s19 = scalar_lea.hbm %s4425_s0, %s2948_s24  ;;  %s3586_s27 = scalar_lea.hbm %s4425_s0, 2048 }
  0x49   : > { %s3581_s3 = scalar_lea.hbm %s3884_s19, 1024  ;;  %p3587_p2 = scmp.lt.s32.totalorder %s3884_s19, %s4425_s0 }
  0x4a   : > { %p3582_p7 = scmp.ne.s32.totalorder %s3884_s19, %s3581_s3  ;;  %p3588_p4 = scmp.lt.s32.totalorder %s3586_s27, %s3581_s3 }
  0x4c   : > { %p3584_p9 = pnand %p3583_p1, %p3582_p7  ;;  %p3589_p6 = por %p3588_p4, %p3587_p2 }
  0x4e   : > { %p3585_p13 = pneg %p3584_p9 }
  0x50   : > { %p3590_p12 = pnand %p3589_p6, %p3585_p13 }
  0x52   : > { %3593 = shalt.err (!%p3590_p12)
}
  0x53   : > { %s3594_s20 = scalar_lea.vmem %s3890_s25, 1024  ;;  %s3720_s24 = smov [#allocation3]  }
  0x54   : > { %p3595_p0 = scmp.ne.s32.totalorder %s3890_s25, %s3594_s20  ;;  %s3599_s26 = sshll.u32 %s3720_s24, 4  ;;  %s3600_s26 = int_to_ptr.vmem [resolvable:$false] %s3599_s26 }
  0x55   : > { %s3601_s4 = scalar_lea.vmem %s3600_s26, 2048  ;;  %p3602_p7 = scmp.lt.s32.totalorder %s3890_s25, %s3600_s26 }
  0x56   : > { %p3597_p5 = pnand %p3595_p0, %p3583_p1  ;;  %p3603_p9 = scmp.lt.s32.totalorder %s3601_s4, %s3594_s20 }
  0x58   : > { %p3598_p3 = pneg %p3597_p5  ;;  %p3604_p10 = por %p3603_p9, %p3602_p7 }
  0x5a   : > { %p3605_p2 = pnand %p3604_p10, %p3598_p3 }
  0x5c   : > { %3608 = shalt.err (!%p3605_p2)
}
  0x5d   : > { %s3721_s3 = smov 128   ;;  %s3722_s27 = smov 8  }
  0x5e   : > { %s4427_s21 = scalar_lea.sflag [#allocation4], %s3877_s18  ;;  %s346_s23 = sand.u32 1, %s3713_s12  }
  0x5f   : > { %3289 = dma.hbm_to_vmem [thread:$0]  (!%p3886_p11), %s3884_s19, 1024, %s3890_s25, %s4427_s21, %s3721_s3, %s3721_s3, %s3722_s27  }
  0x60   : > { %s2751_s24 = sshll.u32 %s3713_s12, 4  ;;  %s349_s0 = scalar_lea.vmem [#allocation6], %s3877_s18 }
  0x61   : > { %s3924_s20 = scalar_lea.hbm %s4396_s1, %s2751_s24  ;;  %s356_s5 = sshll.u32 %s349_s0, 4  ;;  %s357_s5 = int_to_ptr.vmem [resolvable:$true] %s356_s5 }
  0x62   : > { %s347_s29 = scalar_lea.sflag [#allocation7], %s346_s23  ;;  %s3609_s11 = scalar_lea.hbm %s3924_s20, 16 }
  0x63   : > { %p3610_p10 = scmp.ne.s32.totalorder %s3924_s20, %s3609_s11  ;;  %s3614_s3 = scalar_lea.hbm %s4396_s1, 32 }
  0x64   : > { %p3615_p6 = scmp.lt.s32.totalorder %s3924_s20, %s4396_s1  ;;  %p3616_p12 = scmp.lt.s32.totalorder %s3614_s3, %s3609_s11 }
  0x65   : > { %p3612_p13 = pnand %p3610_p10, %p3583_p1 }
  0x66   : > { %p3617_p0 = por %p3616_p12, %p3615_p6 }
  0x67   : > { %p3613_p4 = pneg %p3612_p13 }
  0x69   : > { %p3618_p5 = pnand %p3617_p0, %p3613_p4 }
  0x6b   : > { %3621 = shalt.err (!%p3618_p5)
}
  0x6c   : > { %s3622_s0 = scalar_lea.vmem %s357_s5, 16  ;;  %s3723_s18 = smov [#allocation6]  }
  0x6d   : > { %p3623_p3 = scmp.ne.s32.totalorder %s357_s5, %s3622_s0  ;;  %s3627_s23 = sshll.u32 %s3723_s18, 4  ;;  %s3628_s23 = int_to_ptr.vmem [resolvable:$false] %s3627_s23 }
  0x6e   : > { %s3629_s24 = scalar_lea.vmem %s3628_s23, 32  ;;  %p3630_p2 = scmp.lt.s32.totalorder %s357_s5, %s3628_s23 }
  0x6f   : > { %p3625_p7 = pnand %p3623_p3, %p3583_p1  ;;  %p3631_p10 = scmp.lt.s32.totalorder %s3629_s24, %s3622_s0 }
  0x71   : > { %p3626_p9 = pneg %p3625_p7  ;;  %p3632_p13 = por %p3631_p10, %p3630_p2 }
  0x73   : > { %p3633_p8 = pnand %p3632_p13, %p3626_p9 }
  0x75   : > { %3636 = shalt.err (!%p3633_p8)
}
  0x76   : > { %3292 = dma.hbm_to_vmem [thread:$0]  (!%p3886_p11), %s3924_s20, 16, %s357_s5, %s347_s29  }
  0x77   : > { %p4428_p4 = scmp.ne.s32.totalorder %s4417_s17, 0 }
  0x78   : > { %s3948_s11 = sand.u32 (!%p4428_p4), 1, %s3705_s10   ;;  %p4429_p8 = scmp.ne.s32.totalorder (!%p4428_p4), %s4415_s15, 0 }
  0x79   : > { %371 = sbr.rel (%p4428_p4) target bundleno = 928 (0x3a0), region = 56  ;;  %s2753_s26 = sshll.u32 (!%p4428_p4), %s3948_s11, 6 }
  0x7a   : > { %s374_s4 = scalar_lea.sflag (!%p4428_p4), [#allocation4], %s3948_s11  ;;  %s3954_s19 = scalar_lea.vmem (!%p4428_p4), [#allocation3], %s2753_s26 }
  0x7e   : > { %3680 = dma.done.wait (%p4429_p8), %s374_s4, 1024  }
  0x7f   : > { %3682 = vsyncadd (%p4429_p8), %s374_s4, 4294966272  ;;  %s382_s5 = sand.u32 1, %s3799_s13   ;;  %s385_s29 = scalar_lea.vmem [#allocation6], %s3948_s11 }
  0x80   : > { %s383_s17 = scalar_lea.sflag [#allocation7], %s382_s5 }
  0x81   : > { %3684 = dma.done.wait (%p4429_p8), %s383_s17, 16  }
  0x82   : > { %3686 = vsyncadd (%p4429_p8), %s383_s17, 4294967280  ;;  %p4430_p11 = scmp.eq.s32.totalorder %s3799_s13, 0 }
  0x84   : > { %3688 = dma.done.wait (%p4430_p11), [#allocation7], 1024   ;;  %p4431_p1 = pmov %p4430_p11 }
  0x86   : > { %3690 = vsyncadd (%p4431_p1), [#allocation7], 4294966272  ;;  %p4432_p6 = pmov %p4431_p1 }
  0x87   : > { %p4433_p12 = pmov %p4431_p1 }
  0x88   : > { %3692 = dma.done.wait (%p4432_p6), [#allocation10], 10240  }
  0x89   : > { %3694 = vsyncadd (%p4433_p12), [#allocation10], 4294957056  ;;  %v3347_v0 = vld [vmem:[#allocation8 + $0x38] sm:$0xff]   ;;  %v3348_v1 = vld [vmem:[#allocation8 + $0x30] sm:$0xff]   ;;  %vm628_vm0 = vcmask 1040384   ;;  %vm793_vm5 = vcmask 1043456  }
  0x8a   : > { %3138 = vmatprep.subr.bf16.mxu0 %v3347_v0  ;;  %v3349_v2 = vld [vmem:[#allocation8 + $0x28] sm:$0xff]   ;;  %v3350_v3 = vld [vmem:[#allocation8 + $0x20] sm:$0xff]   ;;  %v3351_v7 = vld [vmem:[#allocation8 + $0x18] sm:$0xff]   ;;  %vm629_vm1 = vsmask.f32 256  ;;  %p439_p0 = scmp.lt.s32.totalorder %s3799_s13, 1 }
  0x8b   : > { %3139 = vmatpush3.bf16.msra.mxu0 %v3347_v0  ;;  %v443_v4 = vld [vmem:[%s3954_s19] sm:$0xff]  ;;  %v444_v5 = vld [vmem:[%s3954_s19 + $0x8] sm:$0xff]  ;;  %v3352_v8 = vld [vmem:[#allocation8 + $0x10] sm:$0xff]   ;;  %vm655_vm2 = vsmask.f32 7938  ;;  %s4329_s24 = scalar_lea.vmem [#allocation12], %s2753_s26 }
  0x8c   : > { %3140 = vmatprep.subr.bf16.mxu0 %v3348_v1  ;;  %v451_v6 = vpack.c.bf16 %v444_v5, %v443_v4  ;;  %v3353_v9 = vld [vmem:[#allocation8 + $0x8] sm:$0xff]   ;;  %v3354_v10 = vld [vmem:[#allocation8] sm:$0xff]   ;;  %v446_v12 = vld [vmem:[%s3954_s19 + $0x18] sm:$0xff]  ;;  %s440_s20 = scalar_select %p439_p0, %s3799_s13, 1 }
  0x8d   : > { %v445_v11 = vld [vmem:[%s3954_s19 + $0x10] sm:$0xff]  ;;  %v447_v13 = vld [vmem:[%s3954_s19 + $0x20] sm:$0xff]  ;;  %v448_v14 = vld [vmem:[%s3954_s19 + $0x28] sm:$0xff]  ;;  %s2612_s26 = sshll.u32 %s4329_s24, 4  ;;  %s2957_s4 = sshll.u32 %s3799_s13, 10  ;;  %s4343_s26 = int_to_ptr.vmem [resolvable:$true] %s2612_s26 }
  0x8e   : > { %3154 = vmatprep.mubr.bf16.mxu0 %v451_v6  ;;  %v452_v15 = vpack.c.bf16 %v446_v12, %v445_v11  ;;  %v453_v16 = vpack.c.bf16 %v448_v14, %v447_v13  ;;  %v449_v17 = vld [vmem:[%s3954_s19 + $0x30] sm:$0xff]  ;;  %v450_v18 = vld [vmem:[%s3954_s19 + $0x38] sm:$0xff]  ;;  %vm3982_vm3 = vmand %vm628_vm0, %vm629_vm1  ;;  %s441_s27 = scalar_lea.vmem %s4397_s2, %s440_s20  ;;  %s2599_s15 = scalar_lea.sflag [#allocation5], %s3948_s11 }
  0x8f   : > { %3141 = vmatpush3.bf16.msra.mxu0 %v3348_v1  ;;  %v454_v19 = vpack.c.bf16 %v450_v18, %v449_v17  ;;  %v3355_v20 = vld [vmem:[#allocation9 + $0x178] sm:$0xff]   ;;  %v637_v22 = vld [vmem:[#allocation2 + $0x18] sm:$0x1]  ;;  %v663_v23 = vld [vmem:[#allocation2 + $0x1c] sm:$0x1]  ;;  %s3637_s28 = scalar_lea.vmem %s4343_s26, 1024 }
  0x90   : > { %3142 = vmatprep.subr.bf16.mxu0 %v3349_v2  ;;  %v638_v24 = vsel %vm3982_vm3, 0, %v637_v22  ;;  %vm3989_vm4 = vmand %vm628_vm0, %vm655_vm2  ;;  %v631_v27 = vld [vmem:[#allocation2 + $0x8] sm:$0x1]  ;;  %v657_v28 = vld [vmem:[#allocation2 + $0xc] sm:$0x1]  ;;  %p3638_p5 = scmp.ne.s32.totalorder %s4343_s26, %s3637_s28  ;;  %p4440_p3 = scmp.ne.s32.totalorder %s4424_s14, 0 }
  0x91   : > { %639 = vst [vmem:[#allocation2 + $0x18] sm:$0x1] %v638_v24  ;;  %v664_v26 = vsel %vm3989_vm4, 0, %v663_v23  ;;  %v3357_v29 = vld [vmem:[#allocation9 + $0x170] sm:$0xff]   ;;  %v632_v30 = vsel %vm3982_vm3, 0, %v631_v27  ;;  %v658_v31 = vsel %vm3989_vm4, 0, %v657_v28  ;;  %vm4045_vm6 = vmand %vm793_vm5, %vm655_vm2 }
  0x92   : > { %665 = vst [vmem:[#allocation2 + $0x1c] sm:$0x1] %v664_v26  ;;  %v3356_v32 = vld [vmem:[#allocation9 + $0x138] sm:$0xff]   ;;  %633 = vst [vmem:[#allocation2 + $0x8] sm:$0x1] %v632_v30  ;;  %v3360_v42 = vld [vmem:[#allocation9 + $0x168] sm:$0xff]   ;;  %p3639_p7 = pnand %p3638_p5, %p4440_p3 }
  0x93   : > { %3143 = vmatpush3.bf16.msra.mxu0 %v3349_v2  ;;  %659 = vst [vmem:[#allocation2 + $0xc] sm:$0x1] %v658_v31  ;;  %v640_v33 = vld [vmem:[#allocation2 + $0x20] sm:$0x1]  ;;  %v666_v34 = vld [vmem:[#allocation2 + $0x24] sm:$0x1]  ;;  %2970 = vmatprep.subr.bf16.mxu1 %v3356_v32 }
  0x94   : > { %3144 = vmatprep.subr.bf16.mxu0 %v3350_v3  ;;  %v3358_v35 = vld [vmem:[#allocation9 + $0xf8] sm:$0xff]   ;;  %v641_v36 = vsel %vm3982_vm3, 0, %v640_v33  ;;  %v667_v37 = vsel %vm3989_vm4, 0, %v666_v34  ;;  %v660_v39 = vld [vmem:[#allocation2 + $0x14] sm:$0x1]  ;;  %v3359_v43 = vld [vmem:[#allocation9 + $0x130] sm:$0xff]   ;;  %p3640_p9 = pneg %p3639_p7 }
  0x95   : > { %642 = vst [vmem:[#allocation2 + $0x20] sm:$0x1] %v641_v36  ;;  %668 = vst [vmem:[#allocation2 + $0x24] sm:$0x1] %v667_v37  ;;  %2971 = vmatpush3.bf16.msra.mxu1 %v3358_v35  ;;  %v634_v38 = vld [vmem:[#allocation2 + $0x10] sm:$0x1] }
  0x96   : > { %v635_v40 = vsel %vm3982_vm3, 0, %v634_v38  ;;  %v661_v41 = vsel %vm3989_vm4, 0, %v660_v39  ;;  %v643_v44 = vld [vmem:[#allocation2 + $0x28] sm:$0x1]  ;;  %v669_v45 = vld [vmem:[#allocation2 + $0x2c] sm:$0x1]  ;;  %2972 = vmatprep.subr.bf16.mxu1 %v3359_v43 }
  0x97   : > { %3145 = vmatpush3.bf16.msra.mxu0 %v3350_v3  ;;  %636 = vst [vmem:[#allocation2 + $0x10] sm:$0x1] %v635_v40  ;;  %662 = vst [vmem:[#allocation2 + $0x14] sm:$0x1] %v661_v41  ;;  %v3361_v46 = vld [vmem:[#allocation9 + $0xf0] sm:$0xff]   ;;  %v644_v51 = vsel %vm3982_vm3, 0, %v643_v44 }
  0x98   : > { %3146 = vmatprep.subr.bf16.mxu0 %v3351_v7  ;;  %v649_v47 = vld [vmem:[#allocation2 + $0x38] sm:$0x1]  ;;  %v675_v48 = vld [vmem:[#allocation2 + $0x3c] sm:$0x1]  ;;  %v670_v52 = vsel %vm3989_vm4, 0, %v669_v45  ;;  %v3366_v60 = vld [vmem:[#allocation9 + $0x158] sm:$0xff]  }
  0x99   : > { %v650_v49 = vsel %vm3982_vm3, 0, %v649_v47  ;;  %v676_v50 = vsel %vm3989_vm4, 0, %v675_v48  ;;  %2973 = vmatpush3.bf16.msra.mxu1 %v3361_v46  ;;  %645 = vst [vmem:[#allocation2 + $0x28] sm:$0x1] %v644_v51  ;;  %671 = vst [vmem:[#allocation2 + $0x2c] sm:$0x1] %v670_v52 }
  0x9a   : > { %651 = vst [vmem:[#allocation2 + $0x38] sm:$0x1] %v650_v49  ;;  %677 = vst [vmem:[#allocation2 + $0x3c] sm:$0x1] %v676_v50  ;;  %v3362_v53 = vld [vmem:[#allocation9 + $0x128] sm:$0xff]   ;;  %v3363_v54 = vld [vmem:[#allocation9 + $0x160] sm:$0xff]  }
  0x9b   : > { %3147 = vmatpush3.bf16.msra.mxu0 %v3351_v7  ;;  %v652_v55 = vld [vmem:[#allocation2 + $0x40] sm:$0x1]  ;;  %v678_v57 = vld [vmem:[#allocation2 + $0x44] sm:$0x1]  ;;  %2974 = vmatprep.subr.bf16.mxu1 %v3362_v53  ;;  %v646_v61 = vld [vmem:[#allocation2 + $0x30] sm:$0x1] }
  0x9c   : > { %3148 = vmatprep.subr.bf16.mxu0 %v3352_v8  ;;  %v653_v56 = vsel %vm3982_vm3, 0, %v652_v55  ;;  %v3364_v58 = vld [vmem:[#allocation9 + $0xe8] sm:$0xff]   ;;  %v679_v59 = vsel %vm3989_vm4, 0, %v678_v57  ;;  %v672_v62 = vld [vmem:[#allocation2 + $0x34] sm:$0x1]  ;;  %v647_v0 = vsel %vm3982_vm3, 0, %v646_v61 }
  0x9d   : > { %654 = vst [vmem:[#allocation2 + $0x40] sm:$0x1] %v653_v56  ;;  %680 = vst [vmem:[#allocation2 + $0x44] sm:$0x1] %v679_v59  ;;  %2975 = vmatpush3.bf16.msra.mxu1 %v3364_v58  ;;  %v3365_v63 = vld [vmem:[#allocation9 + $0x120] sm:$0xff]   ;;  %v673_v1 = vsel %vm3989_vm4, 0, %v672_v62 }
  0x9e   : > { %v3367_v2 = vld [vmem:[#allocation9 + $0xe0] sm:$0xff]   ;;  %648 = vst [vmem:[#allocation2 + $0x30] sm:$0x1] %v647_v0  ;;  %674 = vst [vmem:[#allocation2 + $0x34] sm:$0x1] %v673_v1  ;;  %2976 = vmatprep.subr.bf16.mxu1 %v3365_v63  ;;  %v3724_v3 = vmov 0  }
  0x9f   : > { %3149 = vmatpush3.bf16.msra.mxu0 %v3352_v8  ;;  %622 = vst [vmem:[#allocation2] sm:$0xf] %v3724_v3  ;;  %623 = vst [vmem:[#allocation2 + $0x4] sm:$0x1] %v3724_v3  ;;  %v3368_v4 = vld [vmem:[#allocation9 + $0x118] sm:$0xff]   ;;  %v3369_v5 = vld [vmem:[#allocation9 + $0x150] sm:$0xff]  }
  0xa0   : > { %3150 = vmatprep.subr.bf16.mxu0 %v3353_v9  ;;  %625 = vst [vmem:[#allocation2 + $0x48] sm:$0xf] %v3724_v3  ;;  %626 = vst [vmem:[#allocation2 + $0x4c] sm:$0x1] %v3724_v3  ;;  %v3370_v6 = vld [vmem:[#allocation9 + $0xd8] sm:$0xff]   ;;  %v3372_v7 = vld [vmem:[#allocation9 + $0x148] sm:$0xff]  }
  0xa1   : > { %2977 = vmatpush3.bf16.msra.mxu1 %v3367_v2  ;;  %v3371_v8 = vld [vmem:[#allocation9 + $0x110] sm:$0xff]   ;;  %v3375_v11 = vld [vmem:[#allocation9 + $0x140] sm:$0xff]   ;;  %v3376_v12 = vld [vmem:[#allocation9 + $0xc8] sm:$0xff]   ;;  %s3725_s13 = smov [#allocation12]  }
  0xa2   : > { %2978 = vmatprep.subr.bf16.mxu1 %v3368_v4  ;;  %v3377_v13 = vld [vmem:[#allocation9 + $0x100] sm:$0xff]   ;;  %v4023_v14 = vld [vmem:[#allocation9 + $0xb8] sm:$0xff]   ;;  %v4028_v17 = vld [vmem:[%s385_s29] ss:$0 sm:$0xff]  ;;  %s4350_s29 = scalar_lea.hbm %s4404_s9, %s2957_s4  ;;  %s3641_s20 = sshll.u32 %s3725_s13, 4  ;;  %s3642_s20 = int_to_ptr.vmem [resolvable:$false] %s3641_s20 }
  0xa3   : > { %3151 = vmatpush3.bf16.msra.mxu0 %v3353_v9  ;;  %v3373_v9 = vld [vmem:[#allocation9 + $0xd0] sm:$0xff]   ;;  %v807_v46 = vld [vmem:[#allocation2 + $0x18] sm:$0xf]  ;;  %v810_v47 = vld [vmem:[#allocation2 + $0x1c] sm:$0x1]  ;;  %s3643_s25 = scalar_lea.vmem %s3642_s20, 2048  ;;  %p3644_p2 = scmp.lt.s32.totalorder %s4343_s26, %s3642_s20 }
  0xa4   : > { %3152 = vmatprep.subr.bf16.mxu0 %v3354_v10  ;;  %v795_v57 = vld [vmem:[#allocation2 + $0x8] sm:$0xf]  ;;  %v798_v58 = vld [vmem:[#allocation2 + $0xc] sm:$0x1]  ;;  %p3645_p10 = scmp.lt.s32.totalorder %s3643_s25, %s3637_s28 }
  0xa5   : > { %2979 = vmatpush3.bf16.msra.mxu1 %v3370_v6 }
  0xa6   : > { %2980 = vmatprep.subr.bf16.mxu1 %v3371_v8  ;;  %p3646_p13 = por %p3645_p10, %p3644_p2 }
  0xa7   : > { %3153 = vmatpush3.bf16.msra.mxu0 %v3354_v10  ;;  %v3374_v10 = vld [vmem:[#allocation9 + $0x108] sm:$0xff]  }
  0xa8   : > { %3162 = vmatprep.subr.bf16.mxu0 %v3355_v20  ;;  %p3647_p4 = pnand %p3646_p13, %p3640_p9 }
  0xa9   : > { %2981 = vmatpush3.bf16.msra.mxu1 %v3373_v9 }
  0xaa   : > { %3155 = vmatmul.mubr.bf16.vlgmr.msra.gmra.mxu0 %v452_v15  ;;  %2982 = vmatprep.subr.bf16.mxu1 %v3374_v10  ;;  %v3381_v15 = vld [vmem:[#allocation9 + $0xc0] sm:$0xff]   ;;  %v813_v10 = vld [vmem:[#allocation2 + $0x20] sm:$0xf] }
  0xab   : > { %3158 = vmatprep.mubr.bf16.mxu0 %v453_v16  ;;  %3163 = vmatpush3.bf16.msra.mxu0 %v3355_v20  ;;  %v3386_v16 = vld [vmem:[#allocation9 + $0x78] sm:$0xff]  }
  0xac   : > { %3164 = vmatprep.subr.bf16.mxu0 %v3357_v29 }
  0xad   : > { %2983 = vmatpush3.bf16.msra.mxu1 %v3376_v12 }
  0xae   : > { %2984 = vmatprep.subr.bf16.mxu1 %v3377_v13 }
  0xaf   : > { %3165 = vmatpush3.bf16.msra.mxu0 %v3357_v29 }
  0xb0   : > { %3166 = vmatprep.subr.bf16.mxu0 %v3360_v42 }
  0xb1   : > { %2985 = vmatpush3.bf16.msra.mxu1 %v3381_v15 }
  0xb2   : > { %3159 = vmatmul.mubr.bf16.gmra.mxu0 %v454_v19  ;;  %3022 = vmatprep.subr.bf16.mxu1 %v3386_v16  ;;  %v4033_v19 = vld [vmem:[%s4401_s6] ss:$0 sm:$0xff] }
  0xb3   : > { %3167 = vmatpush3.bf16.msra.mxu0 %v3360_v42 }
  0xb4   : > { %3168 = vmatprep.subr.bf16.mxu0 %v3363_v54 }
  0xb7   : > { %3169 = vmatpush3.bf16.msra.mxu0 %v3363_v54 }
  0xb8   : > { %3170 = vmatprep.subr.bf16.mxu0 %v3366_v60 }
  0xbb   : > { %3171 = vmatpush3.bf16.msra.mxu0 %v3366_v60 }
  0xbc   : > { %3172 = vmatprep.subr.bf16.mxu0 %v3369_v5 }
  0xbf   : > { %3173 = vmatpush3.bf16.msra.mxu0 %v3369_v5 }
  0xc0   : > { %3174 = vmatprep.subr.bf16.mxu0 %v3372_v7 }
  0xc3   : > { %3175 = vmatpush3.bf16.msra.mxu0 %v3372_v7 }
  0xc4   : > { %3176 = vmatprep.subr.bf16.mxu0 %v3375_v11 }
  0xc7   : > { %3177 = vmatpush3.bf16.msra.mxu0 %v3375_v11  ;;  %v816_v11 = vld [vmem:[#allocation2 + $0x24] sm:$0x1] }
  0xc8   : > { %3186 = vmatprep.subr.bf16.mxu0 %v4023_v14 }
 0x16a   : > { %v3156_v18 = vpop.f32.mrf.mxu0 }
 0x16b   : > { %v593_v20 = vmul.f32 %v3156_v18, %v4028_v17 }
 0x16c   : > { %v553_v22 = vpop.f32.mrf.mxu0 }
 0x16d   : > { %v608_v23 = vadd.f32 %v4033_v19, %v593_v20  ;;  %v591_v24 = vmul.f32 %v4028_v17, %v553_v22  ;;  %v801_v22 = vld [vmem:[#allocation2 + $0x10] sm:$0xf] }
 0x16e   : > { %v3157_v25 = vpop.f32.mrf.mxu0 }
 0x16f   : > { %v616_v26 = vmax.f32 %v608_v23, 0.0  ;;  %v606_v27 = vadd.f32 %v4033_v19, %v591_v24  ;;  %v594_v28 = vmul.f32 %v3157_v25, %v4028_v17  ;;  %v804_v23 = vld [vmem:[#allocation2 + $0x14] sm:$0x1] }
 0x170   : > { %v556_v29 = vpop.f32.mrf.mxu0 }
 0x171   : > { %v2951_v30 = vpack.c.bf16 %v616_v26, %v616_v26  ;;  %v614_v31 = vmax.f32 %v606_v27, 0.0  ;;  %v609_v32 = vadd.f32 %v4033_v19, %v594_v28  ;;  %v592_v33 = vmul.f32 %v4028_v17, %v556_v29 }
 0x172   : > { %v3160_v34 = vpop.f32.mrf.mxu0 }
 0x173   : > { %v730_v35 = vshrl.u32 %v2951_v30, 16  ;;  %v2949_v36 = vpack.c.bf16 %v614_v31, %v614_v31  ;;  %v617_v37 = vmax.f32 %v609_v32, 0.0  ;;  %v607_v38 = vadd.f32 %v4033_v19, %v592_v33 }
 0x174   : > { %v597_v39 = vmul.f32 %v3160_v34, %v4028_v17  ;;  %v569_v40 = vpop.f32.mrf.mxu0  ;;  %v733_v42 = vshll.u32 %v2951_v30, 16 }
 0x175   : > { %v732_v41 = vrot.slane %v730_v35, 7  ;;  %v714_v43 = vshrl.u32 %v2949_v36, 16  ;;  %v2952_v44 = vpack.c.bf16 %v617_v37, %v617_v37  ;;  %v717_v48 = vshll.u32 %v2949_v36, 16  ;;  %v831_v37 = vld [vmem:[#allocation2 + $0x38] sm:$0xf] }
 0x176   : > { %v615_v49 = vmax.f32 %v607_v38, 0.0  ;;  %v612_v50 = vadd.f32 %v4033_v19, %v597_v39  ;;  %v595_v51 = vmul.f32 %v4028_v17, %v569_v40  ;;  %v3161_v52 = vpop.f32.mrf.mxu0  ;;  %v834_v38 = vld [vmem:[#allocation2 + $0x3c] sm:$0x1] }
 0x177   : > { %v735_v53 = vor.u32 %v733_v42, %v732_v41  ;;  %v736_v54 = vrot.slane %v732_v41, 4  ;;  %v716_v55 = vrot.slane %v714_v43, 7  ;;  %v738_v56 = vshrl.u32 %v2952_v44, 16  ;;  %v819_v43 = vld [vmem:[#allocation2 + $0x28] sm:$0xf] }
 0x178   : > { %v741_v59 = vshll.u32 %v2952_v44, 16  ;;  %v2950_v60 = vpack.c.bf16 %v615_v49, %v615_v49  ;;  %v620_v61 = vmax.f32 %v612_v50, 0.0  ;;  %v610_v62 = vadd.f32 %v4033_v19, %v595_v51  ;;  %v572_v7 = vpop.f32.mrf.mxu0  ;;  %v822_v44 = vld [vmem:[#allocation2 + $0x2c] sm:$0x1] }
 0x179   : > { %v808_v63 = vsel %vm4045_vm6, %v735_v53, %v807_v46  ;;  %v811_v0 = vsel %vm3982_vm3, %v736_v54, %v810_v47  ;;  %v719_v1 = vor.u32 %v717_v48, %v716_v55  ;;  %v720_v2 = vrot.slane %v716_v55, 4 }
 0x17a   : > { %809 = vst [vmem:[#allocation2 + $0x18] sm:$0xf] %v808_v63  ;;  %812 = vst [vmem:[#allocation2 + $0x1c] sm:$0x1] %v811_v0  ;;  %v740_v3 = vrot.slane %v738_v56, 7  ;;  %v722_v4 = vshrl.u32 %v2950_v60, 16  ;;  %v2955_v6 = vpack.c.bf16 %v620_v61, %v620_v61  ;;  %v598_v13 = vmul.f32 %v3161_v52, %v4028_v17 }
 0x17b   : > { %v725_v5 = vshll.u32 %v2950_v60, 16  ;;  %v796_v8 = vsel %vm4045_vm6, %v719_v1, %v795_v57  ;;  %v799_v9 = vsel %vm3982_vm3, %v720_v2, %v798_v58  ;;  %v618_v12 = vmax.f32 %v610_v62, 0.0  ;;  %v837_v62 = vld [vmem:[#allocation2 + $0x40] sm:$0xf]  ;;  %v840_v63 = vld [vmem:[#allocation2 + $0x44] sm:$0x1] }
 0x17c   : > { %797 = vst [vmem:[#allocation2 + $0x8] sm:$0xf] %v796_v8  ;;  %800 = vst [vmem:[#allocation2 + $0xc] sm:$0x1] %v799_v9  ;;  %v743_v15 = vor.u32 %v741_v59, %v740_v3  ;;  %v744_v16 = vrot.slane %v740_v3, 4  ;;  %v724_v18 = vrot.slane %v722_v4, 7  ;;  %v613_v26 = vadd.f32 %v4033_v19, %v598_v13 }
 0x17d   : > { %v762_v20 = vshrl.u32 %v2955_v6, 16  ;;  %v765_v24 = vshll.u32 %v2955_v6, 16  ;;  %v2953_v25 = vpack.c.bf16 %v618_v12, %v618_v12  ;;  %v596_v27 = vmul.f32 %v4028_v17, %v572_v7 }
 0x17e   : > { %v814_v28 = vsel %vm4045_vm6, %v743_v15, %v813_v10  ;;  %v817_v29 = vsel %vm3982_vm3, %v744_v16, %v816_v11  ;;  %v727_v30 = vor.u32 %v725_v5, %v724_v18  ;;  %v728_v31 = vrot.slane %v724_v18, 4  ;;  %v825_v5 = vld [vmem:[#allocation2 + $0x30] sm:$0xf] }
 0x17f   : > { %815 = vst [vmem:[#allocation2 + $0x20] sm:$0xf] %v814_v28  ;;  %818 = vst [vmem:[#allocation2 + $0x24] sm:$0x1] %v817_v29  ;;  %v764_v32 = vrot.slane %v762_v20, 7  ;;  %v746_v33 = vshrl.u32 %v2953_v25, 16  ;;  %v611_v39 = vadd.f32 %v4033_v19, %v596_v27 }
 0x180   : > { %v749_v34 = vshll.u32 %v2953_v25, 16  ;;  %v621_v35 = vmax.f32 %v613_v26, 0.0  ;;  %v802_v36 = vsel %vm4045_vm6, %v727_v30, %v801_v22  ;;  %v805_v17 = vsel %vm3982_vm3, %v728_v31, %v804_v23  ;;  %v828_v20 = vld [vmem:[#allocation2 + $0x34] sm:$0x1] }
 0x181   : > { %803 = vst [vmem:[#allocation2 + $0x10] sm:$0xf] %v802_v36  ;;  %806 = vst [vmem:[#allocation2 + $0x14] sm:$0x1] %v805_v17  ;;  %v767_v40 = vor.u32 %v765_v24, %v764_v32  ;;  %v768_v41 = vrot.slane %v764_v32, 4  ;;  %v748_v42 = vrot.slane %v746_v33, 7 }
 0x182   : > { %v2956_v46 = vpack.c.bf16 %v621_v35, %v621_v35  ;;  %v619_v47 = vmax.f32 %v611_v39, 0.0  ;;  %v1069_v48 = vld [vmem:[#allocation2 + $0x1c] sm:$0x1]  ;;  %v1077_v49 = vld [vmem:[#allocation2 + $0x18] sm:$0xe] }
 0x183   : > { %v832_v50 = vsel %vm4045_vm6, %v767_v40, %v831_v37  ;;  %v835_v51 = vsel %vm3982_vm3, %v768_v41, %v834_v38  ;;  %v751_v52 = vor.u32 %v749_v34, %v748_v42  ;;  %v752_v53 = vrot.slane %v748_v42, 4  ;;  %v1067_v19 = vld [vmem:[#allocation2 + $0xc] sm:$0x1]  ;;  %v4076_v54 = vld [vmem:[#allocation2 + $0x18] sm:$0xf] }
 0x184   : > { %833 = vst [vmem:[#allocation2 + $0x38] sm:$0xf] %v832_v50  ;;  %836 = vst [vmem:[#allocation2 + $0x3c] sm:$0x1] %v835_v51  ;;  %v770_v55 = vshrl.u32 %v2956_v46, 16  ;;  %v773_v56 = vshll.u32 %v2956_v46, 16  ;;  %v2954_v57 = vpack.c.bf16 %v619_v47, %v619_v47  ;;  %v2802_v8 = vcombine.low %v1077_v49, %v1069_v48 }
 0x185   : > { %v1075_v58 = vld [vmem:[#allocation2 + $0x8] sm:$0xe]  ;;  %v820_v60 = vsel %vm4045_vm6, %v751_v52, %v819_v43  ;;  %v823_v61 = vsel %vm3982_vm3, %v752_v53, %v822_v44  ;;  %v2794_v10 = vcombine.low %v4076_v54, %v1069_v48  ;;  %v4103_v38 = vld [vmem:[#allocation2 + $0x4] sm:$0x1]  ;;  %v859_v39 = vld [vmem:[#allocation2] sm:$0xe] }
 0x186   : > { %v4078_v59 = vld [vmem:[#allocation2 + $0x8] sm:$0xf]  ;;  %821 = vst [vmem:[#allocation2 + $0x28] sm:$0xf] %v820_v60  ;;  %824 = vst [vmem:[#allocation2 + $0x2c] sm:$0x1] %v823_v61  ;;  %v2800_v6 = vcombine.low %v1075_v58, %v1067_v19 }
 0x187   : > { %v4085_v0 = vcombine.low %v4078_v59, %v1067_v19  ;;  %v772_v1 = vrot.slane %v770_v55, 7  ;;  %v754_v2 = vshrl.u32 %v2954_v57, 16  ;;  %v757_v3 = vshll.u32 %v2954_v57, 16  ;;  %v1070_v4 = vld [vmem:[#allocation2 + $0x24] sm:$0x1] }
 0x188   : > { %v1078_v7 = vld [vmem:[#allocation2 + $0x20] sm:$0xe]  ;;  %v1068_v15 = vld [vmem:[#allocation2 + $0x14] sm:$0x1]  ;;  %v1076_v16 = vld [vmem:[#allocation2 + $0x10] sm:$0xe] }
 0x189   : > { %v4087_v9 = vld [vmem:[#allocation2 + $0x20] sm:$0xf]  ;;  %v775_v11 = vor.u32 %v773_v56, %v772_v1  ;;  %v776_v12 = vrot.slane %v772_v1, 4  ;;  %v756_v13 = vrot.slane %v754_v2, 7  ;;  %v2803_v18 = vcombine.low %v1078_v7, %v1070_v4  ;;  %v4090_v23 = vld [vmem:[#allocation2 + $0x10] sm:$0xf] }
 0x18a   : > { %v2801_v22 = vcombine.low %v1076_v16, %v1068_v15  ;;  %v1126_v24 = vshll.u32 %v4085_v0, 16  ;;  %v2795_v25 = vcombine.low %v4087_v9, %v1070_v4  ;;  %v1203_v30 = vrot.slane %v2800_v6, 1  ;;  %v3387_v44 = vld [vmem:[#allocation9 + $0xb0] sm:$0xff]   ;;  %v4106_v45 = vld [vmem:[#allocation2 + $0xc] sm:$0x1] }
 0x18b   : > { %v838_v26 = vsel %vm4045_vm6, %v775_v11, %v837_v62  ;;  %v841_v27 = vsel %vm3982_vm3, %v776_v12, %v840_v63  ;;  %v759_v28 = vor.u32 %v757_v3, %v756_v13  ;;  %v760_v29 = vrot.slane %v756_v13, 4  ;;  %v1081_v37 = vld [vmem:[#allocation2 + $0x38] sm:$0xe]  ;;  %v1073_v46 = vld [vmem:[#allocation2 + $0x3c] sm:$0x1]  ;;  %v3396_v12 = vld [vmem:[#allocation9 + $0x70] sm:$0xff]  }
 0x18c   : > { %839 = vst [vmem:[#allocation2 + $0x40] sm:$0xf] %v838_v26  ;;  %842 = vst [vmem:[#allocation2 + $0x44] sm:$0x1] %v841_v27  ;;  %v1204_v31 = vrot.slane %v2801_v22, 1  ;;  %v1206_v32 = vrot.slane %v2803_v18, 1  ;;  %v2793_v33 = vcombine.low %v4090_v23, %v1068_v15  ;;  %v2806_v55 = vcombine.low %v1081_v37, %v1073_v46 }
 0x18d   : > { %v826_v34 = vsel %vm4045_vm6, %v759_v28, %v825_v5  ;;  %v829_v35 = vsel %vm3982_vm3, %v760_v29, %v828_v20  ;;  %v1205_v36 = vrot.slane %v2802_v8, 1  ;;  %v1140_v17 = vshll.u32 %v2794_v10, 16  ;;  %v1071_v49 = vld [vmem:[#allocation2 + $0x2c] sm:$0x1]  ;;  %v1079_v50 = vld [vmem:[#allocation2 + $0x28] sm:$0xe] }
 0x18e   : > { %827 = vst [vmem:[#allocation2 + $0x30] sm:$0xf] %v826_v34  ;;  %830 = vst [vmem:[#allocation2 + $0x34] sm:$0x1] %v829_v35  ;;  %v2810_v40 = vcombine.low %v1203_v30, %v1204_v31  ;;  %v1124_v41 = vshrl.u32 %v4085_v0, 16  ;;  %v1128_v42 = vrot.slane %v1126_v24, 1  ;;  %v2804_v19 = vcombine.low %v1079_v50, %v1071_v49 }
 0x18f   : > { %v1133_v43 = vshll.u32 %v2793_v33, 16  ;;  %v2813_v47 = vcombine.low %v1205_v36, %v1206_v32  ;;  %v1142_v21 = vrot.slane %v1140_v17, 1  ;;  %v1147_v48 = vshll.u32 %v2795_v25, 16  ;;  %v4108_v53 = vld [vmem:[#allocation2 + $0x28] sm:$0xf]  ;;  %v3397_v63 = vld [vmem:[#allocation9 + $0xa8] sm:$0xff]  }
 0x190   : > { %3178 = vmatprep.mubr.bf16.mxu0 %v2810_v40  ;;  %v1131_v51 = vshrl.u32 %v2793_v33, 16  ;;  %v860_v56 = vld [vmem:[#allocation2 + $0x8] sm:$0xe]  ;;  %v1138_v57 = vshrl.u32 %v2794_v10, 16  ;;  %v1145_v58 = vshrl.u32 %v2795_v25, 16  ;;  %v1129_v61 = vor.u32 %v1128_v42, %v1124_v41  ;;  %v3408_v37 = vld [vmem:[#allocation9 + $0x68] sm:$0xff]  }
 0x191   : > { %v1135_v52 = vrot.slane %v1133_v43, 1  ;;  %3179 = vmatmul.mubr.bf16.vlgmr.msra.gmra.mxu0 %v2813_v47  ;;  %v1149_v60 = vrot.slane %v1147_v48, 1  ;;  %v4111_v0 = vld [vmem:[#allocation2 + $0x38] sm:$0xf]  ;;  %v2784_v1 = vcombine.low %v859_v39, %v4103_v38  ;;  %v2796_v4 = vcombine.low %v4108_v53, %v1071_v49  ;;  %v3402_v32 = vld [vmem:[#allocation9 + $0x30] sm:$0xff]   ;;  %v3413_v47 = vld [vmem:[#allocation9 + $0x98] sm:$0xff]  }
 0x192   : > { %3187 = vmatpush3.bf16.msra.mxu0 %v4023_v14  ;;  %v1143_v2 = vor.u32 %v1142_v21, %v1138_v57  ;;  %v2785_v8 = vcombine.low %v860_v56, %v4106_v45  ;;  %v3389_v14 = vld [vmem:[#allocation9 + $0x38] sm:$0xff]   ;;  %v1207_v11 = vrot.slane %v2804_v19, 1  ;;  %v1209_v15 = vrot.slane %v2806_v55, 1  ;;  %v4129_v17 = vld [vmem:[#allocation2] sm:$0xf]  ;;  %v3412_v55 = vld [vmem:[#allocation9 + $0x60] sm:$0xff]  }
 0x193   : > { %v1136_v62 = vor.u32 %v1135_v52, %v1131_v51  ;;  %3188 = vmatprep.subr.bf16.mxu0 %v3387_v44  ;;  %v1150_v3 = vor.u32 %v1149_v60, %v1145_v58  ;;  %v4115_v5 = vld [vmem:[#allocation2 + $0x40] sm:$0xf]  ;;  %v1074_v6 = vld [vmem:[#allocation2 + $0x44] sm:$0x1]  ;;  %v2808_v16 = vcombine.low %v4078_v59, %v4090_v23  ;;  %v4123_v24 = vcombine.low %v4111_v0, %v1073_v46  ;;  %v3409_v23 = vld [vmem:[#allocation9 + $0xa0] sm:$0xff]  }
 0x194   : > { %v1082_v7 = vld [vmem:[#allocation2 + $0x40] sm:$0xe]  ;;  %v4126_v25 = vcombine.low %v4115_v5, %v1074_v6  ;;  %v987_v59 = vrot.slane %v2784_v1, 1  ;;  %v1154_v30 = vshll.u32 %v2796_v4, 16  ;;  %v988_v33 = vrot.slane %v2785_v8, 1 }
 0x195   : > { %v2809_v10 = vcombine.low %v1129_v61, %v1136_v62  ;;  %v2807_v13 = vcombine.low %v1082_v7, %v1074_v6  ;;  %v4120_v18 = vld [vmem:[#allocation2 + $0x30] sm:$0xf]  ;;  %v1072_v20 = vld [vmem:[#allocation2 + $0x34] sm:$0x1]  ;;  %v2812_v26 = vcombine.low %v1143_v2, %v1150_v3  ;;  %v1152_v34 = vshrl.u32 %v2796_v4, 16  ;;  %v3411_v48 = vld [vmem:[#allocation9 + $0x28] sm:$0xff]  }
 0x196   : > { %v1080_v22 = vld [vmem:[#allocation2 + $0x30] sm:$0xe]  ;;  %3189 = vmatpush3.bf16.msra.mxu0 %v3387_v44  ;;  %v2797_v27 = vcombine.low %v4120_v18, %v1072_v20  ;;  %v1156_v39 = vrot.slane %v1154_v30, 1  ;;  %v4131_v42 = vld [vmem:[#allocation2 + $0x8] sm:$0xf]  ;;  %v1168_v44 = vshll.u32 %v4123_v24, 16  ;;  %v2846_v21 = vcombine.low %v987_v59, %v988_v33 }
 0x197   : > { %1476 = vmatprep.mubr.bf16.mxu1 %v2809_v10  ;;  %v2805_v28 = vcombine.low %v1080_v22, %v1072_v20  ;;  %v1210_v29 = vrot.slane %v2807_v13, 1  ;;  %3190 = vmatprep.subr.bf16.mxu0 %v3397_v63  ;;  %v1175_v46 = vshll.u32 %v4126_v25, 16  ;;  %v4137_v51 = vcombine.low %v4129_v17, %v4103_v38  ;;  %v3416_v38 = vld [vmem:[#allocation9 + $0x90] sm:$0xff]   ;;  %v3415_v62 = vld [vmem:[#allocation9 + $0x58] sm:$0xff]   ;;  %v3420_v3 = vld [vmem:[#allocation9 + $0x88] sm:$0xff]  }
 0x198   : > { %1477 = vmatmul.mubr.bf16.vlgmr.msra.gmra.mxu1 %v2808_v16  ;;  %v1161_v35 = vshll.u32 %v2797_v27, 16  ;;  %v1159_v40 = vshrl.u32 %v2797_v27, 16  ;;  %v1157_v49 = vor.u32 %v1156_v39, %v1152_v34  ;;  %v4141_v52 = vcombine.low %v4131_v42, %v4106_v45  ;;  %v3414_v45 = vld [vmem:[#allocation9 + $0x20] sm:$0xff]   ;;  %v3419_v7 = vld [vmem:[#allocation9 + $0x50] sm:$0xff]   ;;  %v854_v10 = vld [vmem:[#allocation2 + $0x1c] sm:$0x1] }
 0x199   : > { %3023 = vmatpush3.bf16.msra.mxu1 %v3389_v14  ;;  %1484 = vmatprep.mubr.bf16.mxu1 %v2812_v26  ;;  %v1208_v31 = vrot.slane %v2805_v28, 1  ;;  %v2819_v36 = vcombine.low %v1209_v15, %v1210_v29  ;;  %v2811_v19 = vcombine.low %v4076_v54, %v4087_v9  ;;  %v1166_v56 = vshrl.u32 %v4123_v24, 16  ;;  %v3418_v54 = vld [vmem:[#allocation9 + $0x18] sm:$0xff]   ;;  %v853_v4 = vld [vmem:[#allocation2 + $0x14] sm:$0x1]  ;;  %v3422_v30 = vld [vmem:[#allocation9 + $0x48] sm:$0xff]  }
 0x19a   : > { %3024 = vmatprep.subr.bf16.mxu1 %v3396_v12  ;;  %3191 = vmatpush3.bf16.msra.mxu0 %v3397_v63  ;;  %v1163_v43 = vrot.slane %v1161_v35, 1  ;;  %v1170_v58 = vrot.slane %v1168_v44, 1  ;;  %v1173_v60 = vshrl.u32 %v4126_v25, 16  ;;  %v1177_v61 = vrot.slane %v1175_v46, 1  ;;  %v4149_v6 = vld [vmem:[#allocation2 + $0x10] sm:$0xf] }
 0x19b   : > { %v2816_v41 = vcombine.low %v1207_v11, %v1208_v31  ;;  %3192 = vmatprep.subr.bf16.mxu0 %v3409_v23  ;;  %v910_v1 = vshll.u32 %v4137_v51, 16  ;;  %v917_v2 = vshll.u32 %v4141_v52, 16  ;;  %v908_v8 = vshrl.u32 %v4137_v51, 16  ;;  %v861_v14 = vld [vmem:[#allocation2 + $0x10] sm:$0xe] }
 0x19c   : > { %v1164_v50 = vor.u32 %v1163_v43, %v1159_v40  ;;  %v1171_v9 = vor.u32 %v1170_v58, %v1166_v56  ;;  %v1178_v63 = vor.u32 %v1177_v61, %v1173_v60  ;;  %v2814_v11 = vcombine.low %v4108_v53, %v4120_v18  ;;  %v856_v12 = vld [vmem:[#allocation2 + $0x2c] sm:$0x1]  ;;  %v864_v13 = vld [vmem:[#allocation2 + $0x28] sm:$0xe]  ;;  %v4154_v15 = vld [vmem:[#allocation2 + $0x18] sm:$0xf] }
 0x19d   : > { %3182 = vmatprep.mubr.bf16.mxu0 %v2816_v41  ;;  %3025 = vmatpush3.bf16.msra.mxu1 %v3402_v32  ;;  %v912_v20 = vrot.slane %v910_v1, 1  ;;  %v919_v22 = vrot.slane %v917_v2, 1  ;;  %v862_v24 = vld [vmem:[#allocation2 + $0x18] sm:$0xe]  ;;  %v4157_v25 = vcombine.low %v4149_v6, %v853_v4  ;;  %v2786_v27 = vcombine.low %v861_v14, %v853_v4  ;;  %v855_v28 = vld [vmem:[#allocation2 + $0x24] sm:$0x1] }
 0x19e   : > { %3183 = vmatmul.mubr.bf16.gmra.mxu0 %v2819_v36  ;;  %3026 = vmatprep.subr.bf16.mxu1 %v3408_v37  ;;  %v2815_v57 = vcombine.low %v1157_v49, %v1164_v50  ;;  %v2818_v16 = vcombine.low %v1171_v9, %v1178_v63  ;;  %v3423_v26 = vld [vmem:[#allocation9 + $0x80] sm:$0xff]   ;;  %v863_v29 = vld [vmem:[#allocation2 + $0x20] sm:$0xe]  ;;  %v915_v18 = vshrl.u32 %v4141_v52, 16  ;;  %v2789_v59 = vcombine.low %v864_v13, %v856_v12  ;;  %v3429_v40 = vld [vmem:[#allocation9 + $0x238] sm:$0xff]  }
 0x19f   : > { %3202 = vmatprep.mubr.bf16.mxu0 %v2846_v21  ;;  %3193 = vmatpush3.bf16.msra.mxu0 %v3409_v23  ;;  %v3421_v53 = vld [vmem:[#allocation9 + $0x10] sm:$0xff]   ;;  %v4161_v23 = vcombine.low %v4154_v15, %v854_v10  ;;  %v2787_v31 = vcombine.low %v862_v24, %v854_v10  ;;  %v3425_v32 = vld [vmem:[#allocation9 + $0x8] sm:$0xff]   ;;  %v913_v33 = vor.u32 %v912_v20, %v908_v8  ;;  %v924_v37 = vshll.u32 %v4157_v25, 16  ;;  %v857_v43 = vld [vmem:[#allocation2 + $0x34] sm:$0x1] }
 0x1a0   : > { %1485 = vmatmul.mubr.bf16.gmra.mxu1 %v2811_v19  ;;  %3194 = vmatprep.subr.bf16.mxu0 %v3413_v47  ;;  %v920_v34 = vor.u32 %v919_v22, %v915_v18  ;;  %v4163_v35 = vld [vmem:[#allocation2 + $0x20] sm:$0xf]  ;;  %v2788_v36 = vcombine.low %v863_v29, %v855_v28  ;;  %v989_v39 = vrot.slane %v2786_v27, 1  ;;  %v4166_v41 = vld [vmem:[#allocation2 + $0x28] sm:$0xf]  ;;  %v992_v44 = vrot.slane %v2789_v59, 1 }
 0x1a1   : > { %3027 = vmatpush3.bf16.msra.mxu1 %v3411_v48  ;;  %1492 = vmatprep.mubr.bf16.mxu1 %v2815_v57  ;;  %v931_v46 = vshll.u32 %v4161_v23, 16  ;;  %v866_v21 = vld [vmem:[#allocation2 + $0x38] sm:$0xe]  ;;  %v2817_v48 = vcombine.low %v4111_v0, %v4115_v5  ;;  %v990_v50 = vrot.slane %v2787_v31, 1  ;;  %v4172_v51 = vcombine.low %v4163_v35, %v855_v28  ;;  %v4174_v52 = vld [vmem:[#allocation2 + $0x14] sm:$0x1] }
 0x1a2   : > { %3028 = vmatprep.subr.bf16.mxu1 %v3412_v55  ;;  %v3426_v49 = vld [vmem:[#allocation9 + $0x40] sm:$0xff]   ;;  %v2845_v55 = vcombine.low %v913_v33, %v920_v34  ;;  %v4177_v56 = vcombine.low %v4166_v41, %v856_v12  ;;  %v991_v57 = vrot.slane %v2788_v36, 1  ;;  %v926_v58 = vrot.slane %v924_v37, 1  ;;  %v858_v60 = vld [vmem:[#allocation2 + $0x3c] sm:$0x1]  ;;  %v3436_v0 = vld [vmem:[#allocation9 + $0x230] sm:$0xff]  }
 0x1a3   : > { %3195 = vmatpush3.bf16.msra.mxu0 %v3413_v47  ;;  %v865_v47 = vld [vmem:[#allocation2 + $0x30] sm:$0xe]  ;;  %v2849_v61 = vcombine.low %v989_v39, %v990_v50  ;;  %v922_v63 = vshrl.u32 %v4157_v25, 16  ;;  %v933_v1 = vrot.slane %v931_v46, 1  ;;  %v3445_v13 = vld [vmem:[#allocation9 + $0x228] sm:$0xff]   ;;  %v938_v24 = vshll.u32 %v4172_v51, 16 }
 0x1a4   : > { %3196 = vmatprep.subr.bf16.mxu0 %v3416_v38  ;;  %v1889_v19 = vld [vmem:[#allocation2 + $0x10] sm:$0xe]  ;;  %v2790_v5 = vcombine.low %v865_v47, %v857_v43  ;;  %v2852_v9 = vcombine.low %v991_v57, %v992_v44  ;;  %v945_v14 = vshll.u32 %v4177_v56, 16  ;;  %v2844_v25 = vcombine.low %v4129_v17, %v4131_v42  ;;  %v3444_v28 = vld [vmem:[#allocation9 + $0x1f0] sm:$0xff]   ;;  %v3452_v33 = vld [vmem:[#allocation9 + $0x1e8] sm:$0xff]  }
 0x1a5   : > { %3029 = vmatpush3.bf16.msra.mxu1 %v3414_v45  ;;  %v4179_v45 = vld [vmem:[#allocation2 + $0x1c] sm:$0x1]  ;;  %v2888_v2 = vcombine.low %v1889_v19, %v4174_v52  ;;  %v927_v4 = vor.u32 %v926_v58, %v922_v63  ;;  %v4184_v8 = vld [vmem:[#allocation2 + $0x30] sm:$0xf]  ;;  %v943_v18 = vshrl.u32 %v4177_v56, 16  ;;  %v3446_v42 = vld [vmem:[#allocation9 + $0x1b0] sm:$0xff]  }
 0x1a6   : > { %3030 = vmatprep.subr.bf16.mxu1 %v3415_v62  ;;  %v1890_v62 = vld [vmem:[#allocation2 + $0x18] sm:$0xe]  ;;  %v2782_v27 = vcombine.low %v4184_v8, %v857_v43  ;;  %v947_v59 = vrot.slane %v945_v14, 1  ;;  %v936_v34 = vshrl.u32 %v4172_v51, 16  ;;  %v4197_v39 = vld [vmem:[#allocation2 + $0x10] sm:$0xf] }
 0x1a7   : > { %3197 = vmatpush3.bf16.msra.mxu0 %v3416_v38  ;;  %v2791_v38 = vcombine.low %v866_v21, %v858_v60  ;;  %v2889_v10 = vcombine.low %v1890_v62, %v4179_v45  ;;  %v2017_v22 = vrot.slane %v2888_v2, 1  ;;  %v3455_v43 = vld [vmem:[#allocation9 + $0x1a8] sm:$0xff]   ;;  %v2847_v21 = vcombine.low %v4149_v6, %v4154_v15  ;;  %v3460_v19 = vld [vmem:[#allocation9 + $0x210] sm:$0xff]   ;;  %v3458_v56 = vld [vmem:[#allocation9 + $0x1a0] sm:$0xff]  }
 0x1a8   : > { %1493 = vmatmul.mubr.bf16.gmra.mxu1 %v2814_v11  ;;  %3198 = vmatprep.subr.bf16.mxu0 %v3420_v3  ;;  %v993_v11 = vrot.slane %v2790_v5, 1  ;;  %v948_v36 = vor.u32 %v947_v59, %v943_v18  ;;  %v952_v37 = vshll.u32 %v2782_v27, 16  ;;  %v4199_v47 = vld [vmem:[#allocation2 + $0x18] sm:$0xf]  ;;  %v950_v57 = vshrl.u32 %v2782_v27, 16  ;;  %v3459_v6 = vld [vmem:[#allocation9 + $0x1d8] sm:$0xff]  }
 0x1a9   : > { %3031 = vmatpush3.bf16.msra.mxu1 %v3418_v54  ;;  %1500 = vmatprep.mubr.bf16.mxu1 %v2818_v16  ;;  %v3430_v54 = vld [vmem:[#allocation9] sm:$0xff]   ;;  %v994_v12 = vrot.slane %v2791_v38, 1  ;;  %v3437_v16 = vld [vmem:[#allocation9 + $0x1b8] sm:$0xff]   ;;  %v1883_v5 = vld [vmem:[#allocation2 + $0x24] sm:$0x1]  ;;  %v2850_v2 = vcombine.low %v4163_v35, %v4166_v41 }
 0x1aa   : > { %3032 = vmatprep.subr.bf16.mxu1 %v3419_v7  ;;  %v929_v7 = vshrl.u32 %v4161_v23, 16  ;;  %v954_v51 = vrot.slane %v952_v37, 1  ;;  %v3462_v15 = vld [vmem:[#allocation9 + $0x198] sm:$0xff]  }
 0x1ab   : > { %3199 = vmatpush3.bf16.msra.mxu0 %v3420_v3  ;;  %v3435_v3 = vld [vmem:[#allocation9 + $0x1f8] sm:$0xff]   ;;  %v2855_v23 = vcombine.low %v993_v11, %v994_v12  ;;  %v1891_v11 = vld [vmem:[#allocation2 + $0x20] sm:$0xe] }
 0x1ac   : > { %3200 = vmatprep.subr.bf16.mxu0 %v3423_v26  ;;  %v934_v20 = vor.u32 %v933_v1, %v929_v7  ;;  %v1884_v38 = vld [vmem:[#allocation2 + $0x2c] sm:$0x1]  ;;  %v4207_v62 = vld [vmem:[#allocation2 + $0x28] sm:$0xf]  ;;  %v1885_v1 = vld [vmem:[#allocation2 + $0x34] sm:$0x1] }
 0x1ad   : > { %3033 = vmatpush3.bf16.msra.mxu1 %v3421_v53  ;;  %v2018_v53 = vrot.slane %v2889_v10, 1  ;;  %v1892_v63 = vld [vmem:[#allocation2 + $0x28] sm:$0xe]  ;;  %v4211_v7 = vld [vmem:[#allocation2 + $0x20] sm:$0xf]  ;;  %v2883_v12 = vcombine.low %v4207_v62, %v1884_v38 }
 0x1ae   : > { %3034 = vmatprep.subr.bf16.mxu1 %v3422_v30  ;;  %v2848_v29 = vcombine.low %v927_v4, %v934_v20  ;;  %v3453_v30 = vld [vmem:[#allocation9 + $0x220] sm:$0xff]   ;;  %v2891_v20 = vcombine.low %v1892_v63, %v1884_v38  ;;  %v2882_v27 = vcombine.low %v4211_v7, %v1883_v5 }
 0x1af   : > { %3201 = vmatpush3.bf16.msra.mxu0 %v3423_v26  ;;  %v4191_v26 = vld [vmem:[#allocation2 + $0x38] sm:$0xf]  ;;  %v2898_v31 = vcombine.low %v2017_v22, %v2018_v53  ;;  %v1886_v22 = vld [vmem:[#allocation2 + $0x3c] sm:$0x1]  ;;  %v1961_v59 = vshll.u32 %v2883_v12, 16 }
 0x1b0   : > { %1501 = vmatmul.mubr.bf16.gmra.mxu1 %v2817_v48  ;;  %3210 = vmatprep.subr.bf16.mxu0 %v3429_v40  ;;  %v2783_v17 = vcombine.low %v4191_v26, %v858_v60  ;;  %v3456_v48 = vld [vmem:[#allocation9 + $0x1e0] sm:$0xff]   ;;  %v2853_v37 = vcombine.low %v4184_v8, %v4191_v26 }
 0x1b1   : > { %3035 = vmatpush3.bf16.msra.mxu1 %v3425_v32  ;;  %1774 = vmatprep.mubr.bf16.mxu1 %v2845_v55  ;;  %v940_v32 = vrot.slane %v938_v24, 1  ;;  %v2881_v55 = vcombine.low %v4199_v47, %v4179_v45  ;;  %v1894_v4 = vld [vmem:[#allocation2 + $0x38] sm:$0xe]  ;;  %v3465_v24 = vld [vmem:[#allocation9 + $0x190] sm:$0xff]  }
 0x1b2   : > { %3036 = vmatprep.subr.bf16.mxu1 %v3426_v49  ;;  %3203 = vmatmul.mubr.bf16.vlgmr.msra.gmra.mxu0 %v2849_v61  ;;  %v959_v46 = vshll.u32 %v2783_v17, 16  ;;  %v2880_v49 = vcombine.low %v4197_v39, %v4174_v52  ;;  %v957_v58 = vshrl.u32 %v2783_v17, 16  ;;  %v955_v52 = vor.u32 %v954_v51, %v950_v57  ;;  %v3464_v61 = vld [vmem:[#allocation9 + $0x208] sm:$0xff]   ;;  %v1896_v17 = vld [vmem:[#allocation2 + $0x48] sm:$0xe]  ;;  %v3473_v57 = vld [vmem:[#allocation9 + $0x180] sm:$0xff]  }
 0x1b3   : > { %3206 = vmatprep.mubr.bf16.mxu0 %v2852_v9  ;;  %3211 = vmatpush3.bf16.msra.mxu0 %v3429_v40  ;;  %v3457_v40 = vld [vmem:[#allocation9 + $0x218] sm:$0xff]   ;;  %v941_v44 = vor.u32 %v940_v32, %v936_v34  ;;  %v1947_v9 = vshll.u32 %v2881_v55, 16  ;;  %v1945_v18 = vshrl.u32 %v2881_v55, 16  ;;  %v1954_v34 = vshll.u32 %v2882_v27, 16 }
 0x1b4   : > { %3212 = vmatprep.subr.bf16.mxu0 %v3436_v0  ;;  %v961_v60 = vrot.slane %v959_v46, 1  ;;  %v1888_v51 = vld [vmem:[#allocation2 + $0x4c] sm:$0x1] }
 0x1b5   : > { %3037 = vmatpush3.bf16.msra.mxu1 %v3430_v54  ;;  %v2851_v50 = vcombine.low %v941_v44, %v948_v36  ;;  %v3463_v54 = vld [vmem:[#allocation9 + $0x1d0] sm:$0xff]   ;;  %v1949_v35 = vrot.slane %v1947_v9, 1  ;;  %v1878_v44 = vld [vmem:[#allocation2 + $0x38] sm:$0xf]  ;;  %v1956_v26 = vrot.slane %v1954_v34, 1 }
 0x1b6   : > { %3074 = vmatprep.subr.bf16.mxu1 %v3435_v3  ;;  %v962_v45 = vor.u32 %v961_v60, %v957_v58  ;;  %v1893_v3 = vld [vmem:[#allocation2 + $0x30] sm:$0xe]  ;;  %v1895_v36 = vld [vmem:[#allocation2 + $0x40] sm:$0xe]  ;;  %v2885_v58 = vcombine.low %v1878_v44, %v1886_v22  ;;  %v1952_v60 = vshrl.u32 %v2882_v27, 16 }
 0x1b7   : > { %3213 = vmatpush3.bf16.msra.mxu0 %v3436_v0  ;;  %v1940_v0 = vshll.u32 %v2880_v49, 16  ;;  %v2892_v41 = vcombine.low %v1893_v3, %v1885_v1 }
 0x1b8   : > { %1775 = vmatmul.mubr.bf16.vlgmr.msra.gmra.mxu1 %v2844_v25  ;;  %3214 = vmatprep.subr.bf16.mxu0 %v3445_v13  ;;  %v2854_v10 = vcombine.low %v955_v52, %v962_v45  ;;  %v2893_v25 = vcombine.low %v1894_v4, %v1886_v22  ;;  %v1879_v52 = vld [vmem:[#allocation2 + $0x40] sm:$0xf]  ;;  %v1957_v38 = vor.u32 %v1956_v26, %v1952_v60  ;;  %v1975_v45 = vshll.u32 %v2885_v58, 16 }
 0x1b9   : > { %3075 = vmatpush3.bf16.msra.mxu1 %v3437_v16  ;;  %1782 = vmatprep.mubr.bf16.mxu1 %v2848_v29  ;;  %v1942_v14 = vrot.slane %v1940_v0, 1  ;;  %v1938_v16 = vshrl.u32 %v2880_v49, 16  ;;  %v2890_v29 = vcombine.low %v1891_v11, %v1883_v5  ;;  %v2021_v32 = vrot.slane %v2892_v41, 1 }
 0x1ba   : > { %3207 = vmatmul.mubr.bf16.gmra.mxu0 %v2855_v23  ;;  %3076 = vmatprep.subr.bf16.mxu1 %v3444_v28  ;;  %v3466_v28 = vld [vmem:[#allocation9 + $0x1c8] sm:$0xff]   ;;  %v2020_v23 = vrot.slane %v2891_v20, 1  ;;  %v1963_v49 = vrot.slane %v1961_v59, 1  ;;  %v2899_v20 = vcombine.low %v4211_v7, %v4207_v62  ;;  %v3488_v62 = vld [vmem:[#allocation11 + $0x30] sm:$0xff]   ;;  %v3491_v59 = vld [vmem:[#allocation11 + $0x18] sm:$0xff]  }
 0x1bb   : > { %3215 = vmatpush3.bf16.msra.mxu0 %v3445_v13  ;;  %3226 = vmatprep.mubr.bf16.mxu0 %v2898_v31  ;;  %v3467_v13 = vld [vmem:[#allocation9 + $0x200] sm:$0xff]   ;;  %v1943_v53 = vor.u32 %v1942_v14, %v1938_v16  ;;  %v1950_v31 = vor.u32 %v1949_v35, %v1945_v18  ;;  %v1977_v14 = vrot.slane %v1975_v45, 1  ;;  %v3489_v7 = vld [vmem:[#allocation11 + $0x28] sm:$0xff]  }
 0x1bc   : > { %3216 = vmatprep.subr.bf16.mxu0 %v3453_v30  ;;  %v3490_v18 = vld [vmem:[#allocation11 + $0x20] sm:$0xff]  }
 0x1bd   : > { %3077 = vmatpush3.bf16.msra.mxu1 %v3446_v42  ;;  %v3469_v42 = vld [vmem:[#allocation9 + $0x188] sm:$0xff]   ;;  %v2897_v46 = vcombine.low %v1943_v53, %v1950_v31  ;;  %v3487_v53 = vld [vmem:[#allocation11 + $0x38] sm:$0xff]  }
 0x1be   : > { %3078 = vmatprep.subr.bf16.mxu1 %v3452_v33  ;;  %v2022_v33 = vrot.slane %v2893_v25, 1 }
 0x1bf   : > { %3217 = vmatpush3.bf16.msra.mxu0 %v3453_v30  ;;  %v4215_v30 = vld [vmem:[#allocation2 + $0x30] sm:$0xf] }
 0x1c0   : > { %1783 = vmatmul.mubr.bf16.gmra.mxu1 %v2847_v21  ;;  %3218 = vmatprep.subr.bf16.mxu0 %v3457_v40  ;;  %v2884_v21 = vcombine.low %v4215_v30, %v1885_v1  ;;  %v2904_v8 = vcombine.low %v2021_v32, %v2022_v33  ;;  %v2902_v27 = vcombine.low %v4215_v30, %v1878_v44  ;;  %v3493_v30 = vld [vmem:[#allocation11 + $0x8] sm:$0xff]  }
 0x1c1   : > { %3079 = vmatpush3.bf16.msra.mxu1 %v3455_v43  ;;  %1790 = vmatprep.mubr.bf16.mxu1 %v2851_v50  ;;  %v2019_v43 = vrot.slane %v2890_v29, 1  ;;  %v1887_v50 = vld [vmem:[#allocation2 + $0x44] sm:$0x1] }
 0x1c2   : > { %3080 = vmatprep.subr.bf16.mxu1 %v3456_v48  ;;  %v1959_v48 = vshrl.u32 %v2883_v12, 16  ;;  %v2894_v55 = vcombine.low %v1895_v36, %v1887_v50  ;;  %v2886_v63 = vcombine.low %v1879_v52, %v1887_v50  ;;  %v1966_v4 = vshrl.u32 %v2884_v21, 16 }
 0x1c3   : > { %3219 = vmatpush3.bf16.msra.mxu0 %v3457_v40  ;;  %v3470_v40 = vld [vmem:[#allocation9 + $0x1c0] sm:$0xff]  }
 0x1c4   : > { %3220 = vmatprep.subr.bf16.mxu0 %v3460_v19  ;;  %v2023_v0 = vrot.slane %v2894_v55, 1  ;;  %v1982_v12 = vshll.u32 %v2886_v63, 16 }
 0x1c5   : > { %3081 = vmatpush3.bf16.msra.mxu1 %v3458_v56  ;;  %v2895_v56 = vcombine.low %v1896_v17, %v1888_v51  ;;  %v3494_v17 = vld [vmem:[#allocation11] sm:$0xff]  }
 0x1c6   : > { %3082 = vmatprep.subr.bf16.mxu1 %v3459_v6  ;;  %v1964_v6 = vor.u32 %v1963_v49, %v1959_v48 }
 0x1c7   : > { %3221 = vmatpush3.bf16.msra.mxu0 %v3460_v19  ;;  %v2901_v19 = vcombine.low %v2019_v43, %v2020_v23  ;;  %v2024_v5 = vrot.slane %v2895_v56, 1  ;;  %v3492_v23 = vld [vmem:[#allocation11 + $0x10] sm:$0xff]  }
 0x1c8   : > { %1791 = vmatmul.mubr.bf16.gmra.mxu1 %v2850_v2  ;;  %3222 = vmatprep.subr.bf16.mxu0 %v3464_v61  ;;  %v2900_v9 = vcombine.low %v1957_v38, %v1964_v6 }
 0x1c9   : > { %3083 = vmatpush3.bf16.msra.mxu1 %v3462_v15  ;;  %1798 = vmatprep.mubr.bf16.mxu1 %v2854_v10  ;;  %v1968_v15 = vshll.u32 %v2884_v21, 16  ;;  %v2907_v3 = vcombine.low %v2023_v0, %v2024_v5  ;;  %v1973_v10 = vshrl.u32 %v2885_v58, 16 }
 0x1ca   : > { %3084 = vmatprep.subr.bf16.mxu1 %v3463_v54  ;;  %v2896_v54 = vcombine.low %v4197_v39, %v4199_v47  ;;  %v1980_v47 = vshrl.u32 %v2886_v63, 16 }
 0x1cb   : > { %3223 = vmatpush3.bf16.msra.mxu0 %v3464_v61  ;;  %v1880_v61 = vld [vmem:[#allocation2 + $0x48] sm:$0xf]  ;;  %v1970_v2 = vrot.slane %v1968_v15, 1  ;;  %v1978_v16 = vor.u32 %v1977_v14, %v1973_v10 }
 0x1cc   : > { %3224 = vmatprep.subr.bf16.mxu0 %v3467_v13  ;;  %v2887_v1 = vcombine.low %v1880_v61, %v1888_v51  ;;  %v2905_v29 = vcombine.low %v1879_v52, %v1880_v61 }
 0x1cd   : > { %3085 = vmatpush3.bf16.msra.mxu1 %v3465_v24  ;;  %v1971_v11 = vor.u32 %v1970_v2, %v1966_v4  ;;  %v1984_v24 = vrot.slane %v1982_v12, 1 }
 0x1ce   : > { %3086 = vmatprep.subr.bf16.mxu1 %v3466_v28  ;;  %v1987_v22 = vshrl.u32 %v2887_v1, 16 }
 0x1cf   : > { %3225 = vmatpush3.bf16.msra.mxu0 %v3467_v13  ;;  %v1989_v13 = vshll.u32 %v2887_v1, 16  ;;  %v2903_v39 = vcombine.low %v1971_v11, %v1978_v16  ;;  %v1985_v41 = vor.u32 %v1984_v24, %v1980_v47 }
 0x1d0   : > { %1799 = vmatmul.mubr.bf16.gmra.mxu1 %v2853_v37 }
 0x1d1   : > { %3087 = vmatpush3.bf16.msra.mxu1 %v3469_v42  ;;  %2290 = vmatprep.mubr.bf16.mxu1 %v2897_v46  ;;  %v1991_v35 = vrot.slane %v1989_v13, 1 }
 0x1d2   : > { %3088 = vmatprep.subr.bf16.mxu1 %v3470_v40  ;;  %3227 = vmatmul.mubr.bf16.vlgmr.msra.gmra.mxu0 %v2901_v19 }
 0x1d3   : > { %3230 = vmatprep.mubr.bf16.mxu0 %v2904_v8  ;;  %v1992_v25 = vor.u32 %v1991_v35, %v1987_v22 }
 0x1d5   : > { %3089 = vmatpush3.bf16.msra.mxu1 %v3473_v57  ;;  %v2906_v28 = vcombine.low %v1985_v41, %v1992_v25 }
 0x1d6   : > { %3234 = vmatprep.subr.bf16.mxu1 %v3487_v53 }
 0x1d8   : > { %2291 = vmatmul.mubr.bf16.vlgmr.msra.gmra.mxu1 %v2896_v54 }
 0x1d9   : > { %2298 = vmatprep.mubr.bf16.mxu1 %v2900_v9  ;;  %3235 = vmatpush3.bf16.msra.mxu1 %v3487_v53 }
 0x1da   : > { %3231 = vmatmul.mubr.bf16.gmra.mxu0 %v2907_v3  ;;  %3236 = vmatprep.subr.bf16.mxu1 %v3488_v62 }
 0x1dd   : > { %3237 = vmatpush3.bf16.msra.mxu1 %v3488_v62 }
 0x1de   : > { %3238 = vmatprep.subr.bf16.mxu1 %v3489_v7 }
 0x1e0   : > { %2299 = vmatmul.mubr.bf16.gmra.mxu1 %v2899_v20 }
 0x1e1   : > { %2306 = vmatprep.mubr.bf16.mxu1 %v2903_v39  ;;  %3239 = vmatpush3.bf16.msra.mxu1 %v3489_v7 }
 0x1e2   : > { %3240 = vmatprep.subr.bf16.mxu1 %v3490_v18 }
 0x1e5   : > { %3241 = vmatpush3.bf16.msra.mxu1 %v3490_v18 }
 0x1e6   : > { %3242 = vmatprep.subr.bf16.mxu1 %v3491_v59 }
 0x1e8   : > { %2307 = vmatmul.mubr.bf16.gmra.mxu1 %v2902_v27 }
 0x1e9   : > { %2314 = vmatprep.mubr.bf16.mxu1 %v2906_v28  ;;  %3243 = vmatpush3.bf16.msra.mxu1 %v3491_v59 }
 0x1ea   : > { %3244 = vmatprep.subr.bf16.mxu1 %v3492_v23 }
 0x1ed   : > { %3245 = vmatpush3.bf16.msra.mxu1 %v3492_v23 }
 0x1ee   : > { %3246 = vmatprep.subr.bf16.mxu1 %v3493_v30 }
 0x1f0   : > { %2315 = vmatmul.mubr.bf16.gmra.mxu1 %v2905_v29 }
 0x1f1   : > { %3247 = vmatpush3.bf16.msra.mxu1 %v3493_v30 }
 0x1f2   : > { %3248 = vmatprep.subr.bf16.mxu1 %v3494_v17 }
 0x1f5   : > { %3249 = vmatpush3.bf16.msra.mxu1 %v3494_v17 }
 0x251   : > { %v4225_v42 = vpop.f32.mrf.mxu0 }
 0x253   : > { %v1543_v34 = vpop.f32.mrf.mxu0 }
 0x255   : > { %v4227_v40 = vpop.f32.mrf.mxu0 }
 0x257   : > { %v1546_v21 = vpop.f32.mrf.mxu0 }
 0x258   : > { %v2986_v31 = vpop.f32.mrf.mxu1 }
 0x25a   : > { %v2987_v32 = vpop.f32.mrf.mxu1 }
 0x25b   : > { %v2988_v33 = vadd.f32 %v2987_v32, %v2986_v31 }
 0x25c   : > { %v2989_v36 = vpop.f32.mrf.mxu1 }
 0x25d   : > { %v1544_v28 = vadd.f32 %v2988_v33, %v1543_v34  ;;  %v4276_v34 = vld [vmem:[%s441_s27] ss:$0 sm:$0xff] }
 0x25e   : > { %v2990_v37 = vpop.f32.mrf.mxu1  ;;  %v4231_v50 = vpop.f32.mrf.mxu0 }
 0x25f   : > { %v2991_v29 = vadd.f32 %v2990_v37, %v2989_v36 }
 0x260   : > { %v2992_v43 = vpop.f32.mrf.mxu1  ;;  %v4235_v56 = vpop.f32.mrf.mxu0 }
 0x261   : > { %v1547_v23 = vadd.f32 %v2991_v29, %v1546_v21 }
 0x262   : > { %v2993_v44 = vpop.f32.mrf.mxu1  ;;  %v4241_v8 = vpop.f32.mrf.mxu0 }
 0x263   : > { %v4229_v46 = vadd.f32 %v2993_v44, %v2992_v43 }
 0x264   : > { %v2995_v48 = vpop.f32.mrf.mxu1  ;;  %v4245_v15 = vpop.f32.mrf.mxu0 }
 0x265   : > { %v1552_v37 = vadd.f32 %v4225_v42, %v4229_v46 }
 0x266   : > { %v2996_v49 = vpop.f32.mrf.mxu1 }
 0x267   : > { %v2997_v33 = vadd.f32 %v2996_v49, %v2995_v48  ;;  %v4285_v48 = vld [vmem:[%s4402_s7] ss:$0 sm:$0xff] }
 0x268   : > { %v2998_v51 = vpop.f32.mrf.mxu1 }
 0x26a   : > { %v2999_v19 = vpop.f32.mrf.mxu1 }
 0x26b   : > { %v4233_v55 = vadd.f32 %v2999_v19, %v2998_v51 }
 0x26c   : > { %v4237_v57 = vpop.f32.mrf.mxu1 }
 0x26e   : > { %v4239_v58 = vpop.f32.mrf.mxu1 }
 0x270   : > { %v3004_v26 = vpop.f32.mrf.mxu1 }
 0x272   : > { %v3005_v60 = vpop.f32.mrf.mxu1  ;;  %v4249_v61 = vpop.f32.mrf.mxu0 }
 0x273   : > { %v4243_v6 = vadd.f32 %v3005_v60, %v3004_v26 }
 0x274   : > { %v4247_v52 = vpop.f32.mrf.mxu1  ;;  %v1841_v38 = vpop.f32.mrf.mxu0 }
 0x276   : > { %v4251_v0 = vpop.f32.mrf.mxu1  ;;  %v4253_v9 = vpop.f32.mrf.mxu0 }
 0x278   : > { %v3038_v5 = vpop.f32.mrf.mxu1  ;;  %v1844_v2 = vpop.f32.mrf.mxu0 }
 0x27a   : > { %v3039_v45 = vpop.f32.mrf.mxu1  ;;  %v4255_v10 = vpop.f32.mrf.mxu0 }
 0x27b   : > { %v3040_v25 = vadd.f32 %v3039_v45, %v3038_v5 }
 0x27c   : > { %v3041_v54 = vpop.f32.mrf.mxu1  ;;  %v4257_v12 = vpop.f32.mrf.mxu0 }
 0x27d   : > { %v1777_v7 = vadd.f32 %v3040_v25, %v1544_v28 }
 0x27e   : > { %v3042_v63 = vpop.f32.mrf.mxu1  ;;  %v4259_v20 = vpop.f32.mrf.mxu0 }
 0x27f   : > { %v3043_v18 = vadd.f32 %v3042_v63, %v3041_v54  ;;  %v1842_v32 = vadd.f32 %v1841_v38, %v1777_v7 }
 0x280   : > { %v3044_v1 = vpop.f32.mrf.mxu1  ;;  %v4263_v47 = vpop.f32.mrf.mxu0 }
 0x281   : > { %v1780_v43 = vadd.f32 %v3043_v18, %v1547_v23 }
 0x282   : > { %v3045_v3 = vpop.f32.mrf.mxu1 }
 0x283   : > { %v3046_v44 = vadd.f32 %v3045_v3, %v3044_v1  ;;  %v1845_v45 = vadd.f32 %v1844_v2, %v1780_v43  ;;  %v1555_v1 = vadd.f32 %v4227_v40, %v2997_v33  ;;  %v1560_v40 = vadd.f32 %v4233_v55, %v4235_v56 }
 0x284   : > { %v3047_v4 = vpop.f32.mrf.mxu1 }
 0x285   : > { %v1785_v54 = vadd.f32 %v3046_v44, %v1552_v37 }
 0x286   : > { %v3048_v14 = vpop.f32.mrf.mxu1 }
 0x287   : > { %v3049_v26 = vadd.f32 %v3048_v14, %v3047_v4  ;;  %v1850_v2 = vadd.f32 %v4249_v61, %v1785_v54 }
 0x288   : > { %v3050_v11 = vpop.f32.mrf.mxu1 }
 0x289   : > { %v1788_v46 = vadd.f32 %v3049_v26, %v1555_v1 }
 0x28a   : > { %v3051_v13 = vpop.f32.mrf.mxu1 }
 0x28b   : > { %v3052_v25 = vadd.f32 %v3051_v13, %v3050_v11  ;;  %v1853_v13 = vadd.f32 %v4253_v9, %v1788_v46 }
 0x28c   : > { %v3053_v16 = vpop.f32.mrf.mxu1 }
 0x28d   : > { %v1793_v23 = vadd.f32 %v3052_v25, %v1560_v40 }
 0x28e   : > { %v3054_v22 = vpop.f32.mrf.mxu1 }
 0x28f   : > { %v3055_v61 = vadd.f32 %v3054_v22, %v3053_v16  ;;  %v1858_v16 = vadd.f32 %v4257_v12, %v1793_v23 }
 0x290   : > { %v4261_v39 = vpop.f32.mrf.mxu1 }
 0x292   : > { %v4265_v24 = vpop.f32.mrf.mxu1  ;;  %v3228_v35 = vpop.f32.mrf.mxu0 }
 0x294   : > { %v4268_v41 = vpop.f32.mrf.mxu1  ;;  %v2357_v53 = vpop.f32.mrf.mxu0 }
 0x296   : > { %v4270_v27 = vpop.f32.mrf.mxu1  ;;  %v3229_v17 = vpop.f32.mrf.mxu0 }
 0x298   : > { %v3090_v62 = vpop.f32.mrf.mxu1  ;;  %v2360_v60 = vpop.f32.mrf.mxu0 }
 0x29a   : > { %v3091_v59 = vpop.f32.mrf.mxu1  ;;  %v3232_v4 = vpop.f32.mrf.mxu0 }
 0x29b   : > { %v3092_v30 = vadd.f32 %v3091_v59, %v3090_v62  ;;  %v3003_v62 = vadd.f32 %v4239_v58, %v4237_v57 }
 0x29c   : > { %v3093_v31 = vpop.f32.mrf.mxu1 }
 0x29d   : > { %v2358_v51 = vadd.f32 %v3092_v30, %v2357_v53  ;;  %v2373_v30 = vpop.f32.mrf.mxu0  ;;  %v1563_v55 = vadd.f32 %v3003_v62, %v4245_v15  ;;  %v1568_v15 = vadd.f32 %v4231_v50, %v4243_v6 }
 0x29e   : > { %v3094_v36 = vpop.f32.mrf.mxu1 }
 0x29f   : > { %v2388_v19 = vadd.f32 %v2358_v51, %v1842_v32  ;;  %v3095_v21 = vadd.f32 %v3094_v36, %v3093_v31  ;;  %v1796_v33 = vadd.f32 %v3055_v61, %v1563_v55  ;;  %v3058_v36 = vadd.f32 %v4265_v24, %v4261_v39  ;;  %v3233_v9 = vpop.f32.mrf.mxu0 }
 0x2a0   : > { %v3096_v5 = vpop.f32.mrf.mxu1 }
 0x2a1   : > { %v2403_v63 = vmul.f32 %v4276_v34, %v2388_v19  ;;  %v2361_v38 = vadd.f32 %v3095_v21, %v2360_v60  ;;  %v3009_v21 = vadd.f32 %v4251_v0, %v4247_v52  ;;  %v1801_v12 = vadd.f32 %v3058_v36, %v1568_v15  ;;  %v2376_v54 = vpop.f32.mrf.mxu0  ;;  %v3497_v36 = vld [vmem:[%s3954_s19 + $0x18] sm:$0xff] }
 0x2a2   : > { %v3097_v3 = vpop.f32.mrf.mxu1 }
 0x2a3   : > { %v2389_v49 = vadd.f32 %v2361_v38, %v1845_v45  ;;  %v3098_v42 = vadd.f32 %v3097_v3, %v3096_v5  ;;  %v2418_v53 = vadd.f32 %v4285_v48, %v2403_v63  ;;  %v1861_v5 = vadd.f32 %v4263_v47, %v1796_v33 }
 0x2a4   : > { %v3099_v14 = vpop.f32.mrf.mxu1  ;;  %v3061_v45 = vadd.f32 %v4270_v27, %v4268_v41  ;;  %v1571_v52 = vadd.f32 %v4241_v8, %v3009_v21  ;;  %v1866_v47 = vadd.f32 %v4255_v10, %v1801_v12 }
 0x2a5   : > { %v2404_v28 = vmul.f32 %v4276_v34, %v2389_v49  ;;  %v2366_v29 = vadd.f32 %v3228_v35, %v3098_v42  ;;  %v2426_v43 = vmax.f32 %v2418_v53, 0.0 }
 0x2a6   : > { %v3100_v7 = vpop.f32.mrf.mxu1  ;;  %v1804_v46 = vadd.f32 %v3061_v45, %v1571_v52  ;;  %v3500_v45 = vld [vmem:[%s3954_s19 + $0x20] sm:$0xff] }
 0x2a7   : > { %v2390_v18 = vadd.f32 %v2366_v29, %v1850_v2  ;;  %v3101_v59 = vadd.f32 %v3100_v7, %v3099_v14  ;;  %v2419_v11 = vadd.f32 %v4285_v48, %v2404_v28 }
 0x2a8   : > { %v3102_v31 = vpop.f32.mrf.mxu1  ;;  %v1869_v8 = vadd.f32 %v4259_v20, %v1804_v46 }
 0x2a9   : > { %v2405_v35 = vmul.f32 %v4276_v34, %v2390_v18  ;;  %v2369_v32 = vadd.f32 %v3229_v17, %v3101_v59  ;;  %v2427_v44 = vmax.f32 %v2419_v11, 0.0 }
 0x2aa   : > { %v3103_v56 = vpop.f32.mrf.mxu1 }
 0x2ab   : > { %v2391_v57 = vadd.f32 %v2369_v32, %v1853_v13  ;;  %v3104_v58 = vadd.f32 %v3103_v56, %v3102_v31  ;;  %v2434_v51 = vpack.c.bf16 %v2427_v44, %v2426_v43  ;;  %v2420_v22 = vadd.f32 %v4285_v48, %v2405_v35 }
 0x2ac   : > { %v3105_v37 = vpop.f32.mrf.mxu1 }
 0x2ad   : > { %v2406_v17 = vmul.f32 %v4276_v34, %v2391_v57  ;;  %v2374_v19 = vadd.f32 %v3104_v58, %v2373_v30  ;;  %3250 = vmatprep.mubr.bf16.mxu1 %v2434_v51  ;;  %v2428_v38 = vmax.f32 %v2420_v22, 0.0  ;;  %v2934_v30 = vld [vmem:[%s4403_s8] ss:$0 sm:$0xff]  ;;  %v3498_v22 = vld [vmem:[%s3954_s19 + $0x8] sm:$0xff] }
 0x2ae   : > { %v3106_v26 = vpop.f32.mrf.mxu1 }
 0x2af   : > { %v2421_v60 = vadd.f32 %v4285_v48, %v2406_v17  ;;  %v2392_v39 = vadd.f32 %v2374_v19, %v1858_v16  ;;  %v3107_v24 = vadd.f32 %v3106_v26, %v3105_v37 }
 0x2b0   : > { %v3108_v63 = vpop.f32.mrf.mxu1 }
 0x2b1   : > { %v2429_v1 = vmax.f32 %v2421_v60, 0.0  ;;  %v2407_v50 = vmul.f32 %v4276_v34, %v2392_v39  ;;  %v2377_v6 = vadd.f32 %v3107_v24, %v2376_v54  ;;  %v3499_v60 = vld [vmem:[%s3954_s19 + $0x30] sm:$0xff] }
 0x2b2   : > { %v3109_v0 = vpop.f32.mrf.mxu1 }
 0x2b3   : > { %v2435_v3 = vpack.c.bf16 %v2429_v1, %v2428_v38  ;;  %v2393_v49 = vadd.f32 %v2377_v6, %v1861_v5  ;;  %v3110_v42 = vadd.f32 %v3109_v0, %v3108_v63  ;;  %v2422_v27 = vadd.f32 %v4285_v48, %v2407_v50  ;;  %v3501_v50 = vld [vmem:[%s3954_s19 + $0x38] sm:$0xff] }
 0x2b4   : > { %v3111_v25 = vpop.f32.mrf.mxu1 }
 0x2b5   : > { %v2408_v14 = vmul.f32 %v4276_v34, %v2393_v49  ;;  %v2382_v41 = vadd.f32 %v3232_v4, %v3110_v42  ;;  %3251 = vmatmul.mubr.bf16.vlgmr.msra.gmra.mxu1 %v2435_v3  ;;  %v2430_v7 = vmax.f32 %v2422_v27, 0.0  ;;  %v3502_v3 = vld [vmem:[%s3954_s19 + $0x28] sm:$0xff] }
 0x2b6   : > { %v3112_v2 = vpop.f32.mrf.mxu1 }
 0x2b7   : > { %v2394_v28 = vadd.f32 %v2382_v41, %v1866_v47  ;;  %v3113_v29 = vadd.f32 %v3112_v2, %v3111_v25  ;;  %v2423_v53 = vadd.f32 %v4285_v48, %v2408_v14 }
 0x2b9   : > { %v2409_v40 = vmul.f32 %v4276_v34, %v2394_v28  ;;  %v2385_v62 = vadd.f32 %v3233_v9, %v3113_v29  ;;  %v2431_v18 = vmax.f32 %v2423_v53, 0.0 }
 0x2bb   : > { %v2395_v10 = vadd.f32 %v2385_v62, %v1869_v8  ;;  %v2436_v59 = vpack.c.bf16 %v2431_v18, %v2430_v7  ;;  %v2424_v11 = vadd.f32 %v4285_v48, %v2409_v40 }
 0x2bd   : > { %v2410_v4 = vmul.f32 %v4276_v34, %v2395_v10  ;;  %3254 = vmatprep.mubr.bf16.mxu1 %v2436_v59  ;;  %v2432_v23 = vmax.f32 %v2424_v11, 0.0  ;;  %v3495_v34 = vld [vmem:[%s3954_s19 + $0x10] sm:$0xff] }
 0x2bf   : > { %v2425_v13 = vadd.f32 %v4285_v48, %v2410_v4  ;;  %v3496_v48 = vld [vmem:[%s3954_s19] sm:$0xff] }
 0x2c1   : > { %v2433_v61 = vmax.f32 %v2425_v13, 0.0 }
 0x2c3   : > { %v2437_v20 = vpack.c.bf16 %v2433_v61, %v2432_v23 }
 0x2c5   : > { %3255 = vmatmul.mubr.bf16.gmra.mxu1 %v2437_v20 }
 0x375   : > { %v3252_v31 = vpop.f32.mrf.mxu1 }
 0x376   : > { %v2552_v35 = vadd.f32 %v3252_v31, %v2934_v30 }
 0x377   : > { %v2543_v32 = vpop.f32.mrf.mxu1 }
 0x378   : > { %v2576_v43 = vadd.f32 %v3495_v34, %v2552_v35  ;;  %v2544_v44 = vadd.f32 %v2934_v30, %v2543_v32 }
 0x379   : > { %v3253_v55 = vpop.f32.mrf.mxu1 }
 0x37a   : > { %v2584_v56 = vmax.f32 %v2576_v43, 0.0  ;;  %v2574_v57 = vadd.f32 %v3496_v48, %v2544_v44  ;;  %v2555_v58 = vadd.f32 %v3253_v55, %v2934_v30 }
 0x37b   : > { %v2546_v51 = vpop.f32.mrf.mxu1 }
 0x37c   : > { %2592 = vst [vmem:[%s4329_s24 + $0x10] sm:$0xff] %v2584_v56  ;;  %v2582_v33 = vmax.f32 %v2574_v57, 0.0  ;;  %v2577_v9 = vadd.f32 %v3497_v36, %v2555_v58  ;;  %v2547_v37 = vadd.f32 %v2934_v30, %v2546_v51 }
 0x37e   : > { %2590 = vst [vmem:[%s4329_s24] sm:$0xff] %v2582_v33  ;;  %v2585_v16 = vmax.f32 %v2577_v9, 0.0  ;;  %v2575_v17 = vadd.f32 %v3498_v22, %v2547_v37 }
 0x380   : > { %2593 = vst [vmem:[%s4329_s24 + $0x18] sm:$0xff] %v2585_v16  ;;  %v2583_v19 = vmax.f32 %v2575_v17, 0.0 }
 0x382   : > { %2591 = vst [vmem:[%s4329_s24 + $0x8] sm:$0xff] %v2583_v19 }
 0x385   : > { %v3256_v15 = vpop.f32.mrf.mxu1 }
 0x386   : > { %v2568_v21 = vadd.f32 %v3256_v15, %v2934_v30 }
 0x387   : > { %v2559_v26 = vpop.f32.mrf.mxu1 }
 0x388   : > { %v2580_v39 = vadd.f32 %v3499_v60, %v2568_v21  ;;  %v2560_v24 = vadd.f32 %v2934_v30, %v2559_v26 }
 0x389   : > { %v3257_v5 = vpop.f32.mrf.mxu1 }
 0x38a   : > { %v2588_v12 = vmax.f32 %v2580_v39, 0.0  ;;  %v2578_v54 = vadd.f32 %v3500_v45, %v2560_v24  ;;  %v2571_v63 = vadd.f32 %v3257_v5, %v2934_v30 }
 0x38b   : > { %v2562_v38 = vpop.f32.mrf.mxu1 }
 0x38c   : > { %2596 = vst [vmem:[%s4329_s24 + $0x30] sm:$0xff] %v2588_v12  ;;  %v2586_v1 = vmax.f32 %v2578_v54, 0.0  ;;  %v2581_v6 = vadd.f32 %v3501_v50, %v2571_v63  ;;  %v2563_v52 = vadd.f32 %v2934_v30, %v2562_v38 }
 0x38e   : > { %2594 = vst [vmem:[%s4329_s24 + $0x20] sm:$0xff] %v2586_v1  ;;  %v2589_v0 = vmax.f32 %v2581_v6, 0.0  ;;  %v2579_v49 = vadd.f32 %v3502_v3, %v2563_v52 }
 0x390   : > { %2597 = vst [vmem:[%s4329_s24 + $0x38] sm:$0xff] %v2589_v0  ;;  %v2587_v42 = vmax.f32 %v2579_v49, 0.0 }
 0x392   : > { %2595 = vst [vmem:[%s4329_s24 + $0x28] sm:$0xff] %v2587_v42 }
 0x393   : > { %3650 = shalt.err (!%p3647_p4)
}
 0x394   : > { %s3651_s19 = scalar_lea.hbm %s4350_s29, 1024  ;;  %s3655_s21 = scalar_lea.hbm %s4404_s9, 2048 }
 0x395   : > { %p3652_p8 = scmp.ne.s32.totalorder %s4350_s29, %s3651_s19  ;;  %p3656_p6 = scmp.lt.s32.totalorder %s4350_s29, %s4404_s9 }
 0x396   : > { %p3657_p12 = scmp.lt.s32.totalorder %s3655_s21, %s3651_s19 }
 0x397   : > { %p3653_p11 = pnand %p3652_p8, %p4440_p3 }
 0x398   : > { %p3658_p0 = por %p3657_p12, %p3656_p6 }
 0x399   : > { %p3654_p1 = pneg %p3653_p11 }
 0x39b   : > { %p3659_p5 = pnand %p3658_p0, %p3654_p1 }
 0x39d   : > { %3662 = shalt.err (!%p3659_p5)
}
 0x39e   : > { %s3726_s23 = smov 128   ;;  %s3727_s24 = smov 8  }
 0x39f   : > { %3274 = dma.vmem_to_hbm [thread:$0]  (%p4440_p3), %s4343_s26, 1024, %s4350_s29, %s2599_s15, %s3726_s23, %s3726_s23, %s3727_s24  }
 0x3a0 PF: > { %s2627_s4 = sand.u32 1, %s3701_s30   ;;  %p4441_p7 = scmp.ne.s32.totalorder %s4416_s16, 0 }
 0x3a1   : > { %p4442_p9 = scmp.ge.s32.totalorder %s3713_s12, 2  ;;  %s2628_s5 = scalar_lea.sflag [#allocation5], %s2627_s4 }
 0x3a3   : > { %p3294_p2 = pnand %p4442_p9, %p4441_p7 }
 0x3a5   : > { %p3295_p10 = pneg %p3294_p2 }
 0x3a7   : > { %3696 = dma.done.wait (%p3295_p10), %s2628_s5, 1024  }
 0x3a8   : > { %3698 = vsyncadd (%p3295_p10), %s2628_s5, 4294966272  ;;  %s4443_s17 = sld [smem:[#allocation18_spill]]  ;;  %p26_p13 = scmp.ge.s32.totalorder %s3858_s22, 4  }
 0x3a9   : > { %s4444_s11 = sld [smem:[#allocation19_spill]]  ;;  %s4445_s30 = smov %s3705_s10 }
 0x3aa   : > { %s4447_s12 = smov %s3858_s22  ;;  %28 = sbr.rel (!%p26_p13) target bundleno = 13 (0xd), region = 134 }
 0x3ae   : > { %s4446_s10 = smov %s4443_s17 }
 0x3af   :  { %2633 = vsyncpa [#allocation4], 1 }
 0x3b0   :  { %2635 = vsyncpa [#allocation4 + $0x1], 1 }
 0x3b1   :  { %2636 = vsyncpa [#allocation7], 1 }
 0x3b2   :  { %2638 = vsyncpa [#allocation7 + $0x1], 1 }
 0x3b3   :  { %2639 = vsyncpa [#allocation10], 1 }
 0x3b4   :  { %2640 = vsyncpa [#allocation5], 1 }
 0x3b5   :  { %2642 = vsyncpa [#allocation5 + $0x1], 1 }

</bundles_post_ra>
